<compile_context>
chip_gen: v7x
topology: tpu7x:2x2x1
jax: 0.10.0
libtpu: 0.0.40
codegen_flags: <defaults>
</compile_context>

<pallas_src>
import math
import functools

import jax
import jax.numpy as jnp
from jax.experimental import pallas as pl
from jax.experimental.pallas import tpu as pltpu


def encoder_block_kernel(
    q_ref, k_ref,
    ln1_w_ref, ln1_b_ref,
    wq_ref, wk_ref, wv_ref,
    bq_ref, bk_ref, bv_ref,
    wo_ref, bo_ref,
    ln2_w_ref, ln2_b_ref,
    w1_ref, b1_ref, w2_ref, b2_ref,
    out_ref,
    *, d_model: int, head_dim: int,
):
    # q_ref: (1, Lq, Dp), k_ref: (1, Lk, Dp); padded lanes [d_model:Dp] are zero.
    q = q_ref[0]                               # (Lq, Dp)
    k = k_ref[0]                               # (Lk, Dp)
    Lq, Dp = q.shape
    Lk = k.shape[0]
    Hp = Dp // head_dim                        # padded head count (extra heads are all-zero)

    # Lane mask selecting the real d_model lanes (padding is zero, LN must ignore it).
    lane = jax.lax.broadcasted_iota(jnp.int32, (1, Dp), 1)
    lane_mask = lane < d_model

    inv_d = 1.0 / d_model

    def layer_norm(x, w, b, eps=1e-5):
        # Padded lanes of x are zero, so the sum over Dp equals the sum over d_model.
        mu = jnp.sum(x, axis=-1, keepdims=True) * inv_d
        c = jnp.where(lane_mask, x - mu, 0.0)
        var = jnp.sum(c * c, axis=-1, keepdims=True) * inv_d
        # w, b are zero in padded lanes -> output padded lanes stay zero.
        return c * jax.lax.rsqrt(var + eps) * w + b

    ln1_w = ln1_w_ref[...]
    ln1_b = ln1_b_ref[...]

    # Shared LayerNorm on query / key (value == key in EncoderBlock).
    qn = layer_norm(q, ln1_w, ln1_b)           # (Lq, Dp)
    kn = layer_norm(k, ln1_w, ln1_b)           # (Lk, Dp)

    # In-projections. wq/bq were pre-scaled by 1/sqrt(head_dim) on the host.
    Q = jnp.dot(qn, wq_ref[...], preferred_element_type=jnp.float32) + bq_ref[...]
    K = jnp.dot(kn, wk_ref[...], preferred_element_type=jnp.float32) + bk_ref[...]
    V = jnp.dot(kn, wv_ref[...], preferred_element_type=jnp.float32) + bv_ref[...]

    # Heads to the leading (batch) dim: (Hp, L, hd). Padded heads are all-zero and
    # contribute zero context (their softmax is uniform over zero values).
    Qh = pltpu.einshape("mhd->hmd", Q.reshape(Lq, Hp, head_dim))
    Kh = pltpu.einshape("mhd->hmd", K.reshape(Lk, Hp, head_dim))
    Vh = pltpu.einshape("mhd->hmd", V.reshape(Lk, Hp, head_dim))

    # Future mask (triu(1) -> -inf). Built once per grid step.
    # Safe with -inf: triu(diagonal=1) never fully masks a row.
    rows = jax.lax.broadcasted_iota(jnp.int32, (Lq, Lk), 0)
    cols = jax.lax.broadcasted_iota(jnp.int32, (Lq, Lk), 1)
    fmask = jnp.where(cols > rows, -jnp.inf, 0.0).astype(jnp.float32)

    # Fused multi-head attention: one batched contraction per matmul, no transposes of K.
    s = jnp.einsum("hqd,hkd->hqk", Qh, Kh,
                   preferred_element_type=jnp.float32) + fmask[None, :, :]
    s = s - jnp.max(s, axis=-1, keepdims=True)
    p = jnp.exp(s)
    p = p * pl.reciprocal(jnp.sum(p, axis=-1, keepdims=True), approx=True)
    ctx_h = jnp.einsum("hqk,hkd->hqd", p, Vh, preferred_element_type=jnp.float32)
    ctx = pltpu.einshape("hmd->mhd", ctx_h).reshape(Lq, Dp)

    attn_out = jnp.dot(ctx, wo_ref[...], preferred_element_type=jnp.float32) + bo_ref[...]

    # Residual 1 (dropout = identity in eval).
    x = qn + attn_out

    # FeedForwardBlock.
    xn = layer_norm(x, ln2_w_ref[...], ln2_b_ref[...])
    h1 = jnp.maximum(
        jnp.dot(xn, w1_ref[...], preferred_element_type=jnp.float32) + b1_ref[...], 0.0)
    ff = jnp.dot(h1, w2_ref[...], preferred_element_type=jnp.float32) + b2_ref[...]
    out = xn + ff

    out_ref[0] = out.astype(out_ref.dtype)


def _round_up(x, m):
    return (x + m - 1) // m * m


def encoder_block(query, key, params, n_heads):
    B, Lq, D = query.shape
    _, Lk, _ = key.shape
    d_ff = params["w1"].shape[1]
    hd = D // n_heads
    scale = 1.0 / math.sqrt(hd)

    # Lane-dense padding of the feature dims to multiples of 128.
    Dp = _round_up(D, 128)
    Fp = _round_up(d_ff, 128)
    assert Dp % hd == 0, "padded d_model must remain divisible by head_dim"

    def pad2(a, r, c):
        return jnp.pad(a, ((0, r - a.shape[0]), (0, c - a.shape[1])))

    qp = jnp.pad(query, ((0, 0), (0, 0), (0, Dp - D)))
    kp = jnp.pad(key, ((0, 0), (0, 0), (0, Dp - D)))

    weights = [
        pad2(params["ln1_w"], 1, Dp), pad2(params["ln1_b"], 1, Dp),
        # Fold the 1/sqrt(head_dim) softmax scale into the Q projection on the host.
        pad2(params["wq"] * scale, Dp, Dp),
        pad2(params["wk"], Dp, Dp),
        pad2(params["wv"], Dp, Dp),
        pad2(params["bq"] * scale, 1, Dp),
        pad2(params["bk"], 1, Dp),
        pad2(params["bv"], 1, Dp),
        pad2(params["wo"], Dp, Dp), pad2(params["bo"], 1, Dp),
        pad2(params["ln2_w"], 1, Dp), pad2(params["ln2_b"], 1, Dp),
        pad2(params["w1"], Dp, Fp), pad2(params["b1"], 1, Fp),
        pad2(params["w2"], Fp, Dp), pad2(params["b2"], 1, Dp),
    ]

    in_specs = [
        pl.BlockSpec((1, Lq, Dp), lambda b: (b, 0, 0)),
        pl.BlockSpec((1, Lk, Dp), lambda b: (b, 0, 0)),
    ] + [pl.BlockSpec(w.shape, lambda b, _nd=w.ndim: (0,) * _nd) for w in weights]

    kernel = functools.partial(encoder_block_kernel, d_model=D, head_dim=hd)

    out_p = pl.pallas_call(
        kernel,
        out_shape=jax.ShapeDtypeStruct((B, Lq, Dp), query.dtype),
        grid_spec=pltpu.PrefetchScalarGridSpec(
            num_scalar_prefetch=0,
            grid=(B,),
            in_specs=in_specs,
            out_specs=pl.BlockSpec((1, Lq, Dp), lambda b: (b, 0, 0)),
        ),
        compiler_params=pltpu.CompilerParams(
            dimension_semantics=("parallel",)),
    )(qp, kp, *weights)

    # Strip the lane padding outside the kernel.
    return out_p[:, :, :D]


def ref_encoder_block(query, key, params, n_heads):
    """Pure-JAX reference mirroring the PyTorch forward (eval mode)."""
    def ln(x, w, b, eps=1e-5):
        mu = jnp.mean(x, axis=-1, keepdims=True)
        var = jnp.mean((x - mu) ** 2, axis=-1, keepdims=True)
        return (x - mu) / jnp.sqrt(var + eps) * w + b

    B, Lq, D = query.shape
    Lk = key.shape[1]
    hd = D // n_heads

    qn = ln(query, params["ln1_w"], params["ln1_b"])
    kn = ln(key, params["ln1_w"], params["ln1_b"])

    Q = qn @ params["wq"] + params["bq"]
    K = kn @ params["wk"] + params["bk"]
    V = kn @ params["wv"] + params["bv"]

    Qh = Q.reshape(B, Lq, n_heads, hd).transpose(0, 2, 1, 3)
    Kh = K.reshape(B, Lk, n_heads, hd).transpose(0, 2, 1, 3)
    Vh = V.reshape(B, Lk, n_heads, hd).transpose(0, 2, 1, 3)

    mask = jnp.where(
        jnp.arange(Lk)[None, :] > jnp.arange(Lq)[:, None], -jnp.inf, 0.0)
    scores = (Qh / math.sqrt(hd)) @ Kh.transpose(0, 1, 3, 2) + mask
    attn = jax.nn.softmax(scores, axis=-1)
    ctx = (attn @ Vh).transpose(0, 2, 1, 3).reshape(B, Lq, D)
    attn_out = ctx @ params["wo"] + params["bo"]

    x = qn + attn_out
    xn = ln(x, params["ln2_w"], params["ln2_b"])
    ff = jnp.maximum(xn @ params["w1"] + params["b1"], 0.0) @ params["w2"] + params["b2"]
    return xn + ff


def init_params(key, d_model, d_ff):
    ks = jax.random.split(key, 12)
    s = 0.05
    p = {
        "ln1_w": jnp.ones((1, d_model), jnp.float32),
        "ln1_b": jnp.zeros((1, d_model), jnp.float32),
        "wq": jax.random.normal(ks[0], (d_model, d_model), jnp.float32) * s,
        "wk": jax.random.normal(ks[1], (d_model, d_model), jnp.float32) * s,
        "wv": jax.random.normal(ks[2], (d_model, d_model), jnp.float32) * s,
        "bq": jax.random.normal(ks[3], (1, d_model), jnp.float32) * s,
        "bk": jax.random.normal(ks[4], (1, d_model), jnp.float32) * s,
        "bv": jax.random.normal(ks[5], (1, d_model), jnp.float32) * s,
        "wo": jax.random.normal(ks[6], (d_model, d_model), jnp.float32) * s,
        "bo": jax.random.normal(ks[7], (1, d_model), jnp.float32) * s,
        "ln2_w": jnp.ones((1, d_model), jnp.float32),
        "ln2_b": jnp.zeros((1, d_model), jnp.float32),
        "w1": jax.random.normal(ks[8], (d_model, d_ff), jnp.float32) * s,
        "b1": jax.random.normal(ks[9], (1, d_ff), jnp.float32) * s,
        "w2": jax.random.normal(ks[10], (d_ff, d_model), jnp.float32) * s,
        "b2": jax.random.normal(ks[11], (1, d_model), jnp.float32) * s,
    }
    return p


if __name__ == "__main__":
    B, Lq, Lk = 2, 8, 8
    d_model, n_heads, d_ff = 32, 4, 64

    root = jax.random.PRNGKey(0)
    kq, kk, kp = jax.random.split(root, 3)
    query = jax.random.normal(kq, (B, Lq, d_model), jnp.float32)
    key = jax.random.normal(kk, (B, Lk, d_model), jnp.float32)
    params = init_params(kp, d_model, d_ff)

    out = encoder_block(query, key, params, n_heads)
    out = jax.block_until_ready(out)

    ref = ref_encoder_block(query, key, params, n_heads)
    assert out.shape == (B, Lq, d_model)
    # Tolerance slightly looser than 1e-4 to leave headroom for the EUP
    # approximate-reciprocal softmax denominator (pl.reciprocal(approx=True)).
    err = float(jnp.max(jnp.abs(out - ref)))
    assert err < 1e-3, f"max abs err {err}"

    print("KERNEL_OK")
</pallas_src>

<mosaic_0001>
module attributes {stable_mosaic.version = 11 : i64} {
  func.func @encoder_block_kernel(%arg0: i32, %arg1: memref<1x8x128xf32, #tpu.memory_space<vmem>>, %arg2: memref<1x8x128xf32, #tpu.memory_space<vmem>>, %arg3: memref<1x128xf32, #tpu.memory_space<vmem>>, %arg4: memref<1x128xf32, #tpu.memory_space<vmem>>, %arg5: memref<128x128xf32, #tpu.memory_space<vmem>>, %arg6: memref<128x128xf32, #tpu.memory_space<vmem>>, %arg7: memref<128x128xf32, #tpu.memory_space<vmem>>, %arg8: memref<1x128xf32, #tpu.memory_space<vmem>>, %arg9: memref<1x128xf32, #tpu.memory_space<vmem>>, %arg10: memref<1x128xf32, #tpu.memory_space<vmem>>, %arg11: memref<128x128xf32, #tpu.memory_space<vmem>>, %arg12: memref<1x128xf32, #tpu.memory_space<vmem>>, %arg13: memref<1x128xf32, #tpu.memory_space<vmem>>, %arg14: memref<1x128xf32, #tpu.memory_space<vmem>>, %arg15: memref<128x128xf32, #tpu.memory_space<vmem>>, %arg16: memref<1x128xf32, #tpu.memory_space<vmem>>, %arg17: memref<128x128xf32, #tpu.memory_space<vmem>>, %arg18: memref<1x128xf32, #tpu.memory_space<vmem>>, %arg19: memref<1x8x128xf32, #tpu.memory_space<vmem>>) attributes {dimension_semantics = [#tpu.dimension_semantics<parallel>], iteration_bounds = array<i64: 2>, scalar_prefetch = 0 : i64, scratch_operands = 0 : i64, tpu.core_type = #tpu.core_type<tc>, window_params = [{transform_indices = @transform_0, window_bounds = array<i64: 1, 8, 128>}, {transform_indices = @transform_1, window_bounds = array<i64: 1, 8, 128>}, {pipeline_mode = #tpu.pipeline_mode<synchronous>, transform_indices = @transform_2, window_bounds = array<i64: 1, 128>}, {pipeline_mode = #tpu.pipeline_mode<synchronous>, transform_indices = @transform_3, window_bounds = array<i64: 1, 128>}, {pipeline_mode = #tpu.pipeline_mode<synchronous>, transform_indices = @transform_4, window_bounds = array<i64: 128, 128>}, {pipeline_mode = #tpu.pipeline_mode<synchronous>, transform_indices = @transform_5, window_bounds = array<i64: 128, 128>}, {pipeline_mode = #tpu.pipeline_mode<synchronous>, transform_indices = @transform_6, window_bounds = array<i64: 128, 128>}, {pipeline_mode = #tpu.pipeline_mode<synchronous>, transform_indices = @transform_7, window_bounds = array<i64: 1, 128>}, {pipeline_mode = #tpu.pipeline_mode<synchronous>, transform_indices = @transform_8, window_bounds = array<i64: 1, 128>}, {pipeline_mode = #tpu.pipeline_mode<synchronous>, transform_indices = @transform_9, window_bounds = array<i64: 1, 128>}, {pipeline_mode = #tpu.pipeline_mode<synchronous>, transform_indices = @transform_10, window_bounds = array<i64: 128, 128>}, {pipeline_mode = #tpu.pipeline_mode<synchronous>, transform_indices = @transform_11, window_bounds = array<i64: 1, 128>}, {pipeline_mode = #tpu.pipeline_mode<synchronous>, transform_indices = @transform_12, window_bounds = array<i64: 1, 128>}, {pipeline_mode = #tpu.pipeline_mode<synchronous>, transform_indices = @transform_13, window_bounds = array<i64: 1, 128>}, {pipeline_mode = #tpu.pipeline_mode<synchronous>, transform_indices = @transform_14, window_bounds = array<i64: 128, 128>}, {pipeline_mode = #tpu.pipeline_mode<synchronous>, transform_indices = @transform_15, window_bounds = array<i64: 1, 128>}, {pipeline_mode = #tpu.pipeline_mode<synchronous>, transform_indices = @transform_16, window_bounds = array<i64: 128, 128>}, {pipeline_mode = #tpu.pipeline_mode<synchronous>, transform_indices = @transform_17, window_bounds = array<i64: 1, 128>}, {transform_indices = @transform_18, window_bounds = array<i64: 1, 8, 128>}]} {
    %c0 = arith.constant 0 : index
    %c0_0 = arith.constant 0 : index
    %c0_1 = arith.constant 0 : index
    %0 = vector.load %arg1[%c0, %c0_0, %c0_1] : memref<1x8x128xf32, #tpu.memory_space<vmem>>, vector<1x8x128xf32>
    %1 = vector.shape_cast %0 : vector<1x8x128xf32> to vector<8x128xf32>
    %c0_2 = arith.constant 0 : index
    %c0_3 = arith.constant 0 : index
    %c0_4 = arith.constant 0 : index
    %2 = vector.load %arg2[%c0_2, %c0_3, %c0_4] : memref<1x8x128xf32, #tpu.memory_space<vmem>>, vector<1x8x128xf32>
    %3 = vector.shape_cast %2 : vector<1x8x128xf32> to vector<8x128xf32>
    %4 = tpu.iota {dimensions = array<i32: 1>} : vector<1x128xi32>
    %c32_i32 = arith.constant 32 : i32
    %5 = vector.broadcast %c32_i32 : i32 to vector<1x128xi32>
    %6 = arith.cmpi slt, %4, %5 : vector<1x128xi32>
    %c0_5 = arith.constant 0 : index
    %c0_6 = arith.constant 0 : index
    %7 = vector.load %arg3[%c0_5, %c0_6] : memref<1x128xf32, #tpu.memory_space<vmem>>, vector<1x128xf32>
    %c0_7 = arith.constant 0 : index
    %c0_8 = arith.constant 0 : index
    %8 = vector.load %arg4[%c0_7, %c0_8] : memref<1x128xf32, #tpu.memory_space<vmem>>, vector<1x128xf32>
    %cst = arith.constant dense<0.000000e+00> : vector<8xf32>
    %9 = vector.multi_reduction <add>, %1, %cst [1] : vector<8x128xf32> to vector<8xf32>
    %10 = vector.shape_cast %9 : vector<8xf32> to vector<8x1xf32>
    %cst_9 = arith.constant 3.125000e-02 : f32
    %11 = vector.broadcast %cst_9 : f32 to vector<8x1xf32>
    %12 = arith.mulf %10, %11 : vector<8x1xf32>
    %13 = vector.broadcast %12 : vector<8x1xf32> to vector<8x128xf32>
    %14 = arith.subf %1, %13 : vector<8x128xf32>
    %cst_10 = arith.constant 0.000000e+00 : f32
    %15 = vector.shape_cast %6 : vector<1x128xi1> to vector<1x128xi1>
    %16 = vector.broadcast %15 : vector<1x128xi1> to vector<8x128xi1>
    %17 = vector.broadcast %cst_10 : f32 to vector<8x128xf32>
    %18 = arith.select %16, %14, %17 : vector<8x128xi1>, vector<8x128xf32>
    %19 = arith.mulf %18, %18 : vector<8x128xf32>
    %cst_11 = arith.constant dense<0.000000e+00> : vector<8xf32>
    %20 = vector.multi_reduction <add>, %19, %cst_11 [1] : vector<8x128xf32> to vector<8xf32>
    %21 = vector.shape_cast %20 : vector<8xf32> to vector<8x1xf32>
    %cst_12 = arith.constant 3.125000e-02 : f32
    %22 = vector.broadcast %cst_12 : f32 to vector<8x1xf32>
    %23 = arith.mulf %21, %22 : vector<8x1xf32>
    %cst_13 = arith.constant 9.99999974E-6 : f32
    %24 = vector.broadcast %cst_13 : f32 to vector<8x1xf32>
    %25 = arith.addf %23, %24 : vector<8x1xf32>
    %26 = math.rsqrt %25 : vector<8x1xf32>
    %27 = vector.broadcast %26 : vector<8x1xf32> to vector<8x128xf32>
    %28 = arith.mulf %18, %27 : vector<8x128xf32>
    %29 = vector.broadcast %7 : vector<1x128xf32> to vector<8x128xf32>
    %30 = arith.mulf %28, %29 : vector<8x128xf32>
    %31 = vector.broadcast %8 : vector<1x128xf32> to vector<8x128xf32>
    %32 = arith.addf %30, %31 : vector<8x128xf32>
    %cst_14 = arith.constant dense<0.000000e+00> : vector<8xf32>
    %33 = vector.multi_reduction <add>, %3, %cst_14 [1] : vector<8x128xf32> to vector<8xf32>
    %34 = vector.shape_cast %33 : vector<8xf32> to vector<8x1xf32>
    %cst_15 = arith.constant 3.125000e-02 : f32
    %35 = vector.broadcast %cst_15 : f32 to vector<8x1xf32>
    %36 = arith.mulf %34, %35 : vector<8x1xf32>
    %37 = vector.broadcast %36 : vector<8x1xf32> to vector<8x128xf32>
    %38 = arith.subf %3, %37 : vector<8x128xf32>
    %cst_16 = arith.constant 0.000000e+00 : f32
    %39 = vector.shape_cast %6 : vector<1x128xi1> to vector<1x128xi1>
    %40 = vector.broadcast %39 : vector<1x128xi1> to vector<8x128xi1>
    %41 = vector.broadcast %cst_16 : f32 to vector<8x128xf32>
    %42 = arith.select %40, %38, %41 : vector<8x128xi1>, vector<8x128xf32>
    %43 = arith.mulf %42, %42 : vector<8x128xf32>
    %cst_17 = arith.constant dense<0.000000e+00> : vector<8xf32>
    %44 = vector.multi_reduction <add>, %43, %cst_17 [1] : vector<8x128xf32> to vector<8xf32>
    %45 = vector.shape_cast %44 : vector<8xf32> to vector<8x1xf32>
    %cst_18 = arith.constant 3.125000e-02 : f32
    %46 = vector.broadcast %cst_18 : f32 to vector<8x1xf32>
    %47 = arith.mulf %45, %46 : vector<8x1xf32>
    %cst_19 = arith.constant 9.99999974E-6 : f32
    %48 = vector.broadcast %cst_19 : f32 to vector<8x1xf32>
    %49 = arith.addf %47, %48 : vector<8x1xf32>
    %50 = math.rsqrt %49 : vector<8x1xf32>
    %51 = vector.broadcast %50 : vector<8x1xf32> to vector<8x128xf32>
    %52 = arith.mulf %42, %51 : vector<8x128xf32>
    %53 = vector.broadcast %7 : vector<1x128xf32> to vector<8x128xf32>
    %54 = arith.mulf %52, %53 : vector<8x128xf32>
    %55 = vector.broadcast %8 : vector<1x128xf32> to vector<8x128xf32>
    %56 = arith.addf %54, %55 : vector<8x128xf32>
    %c0_20 = arith.constant 0 : index
    %c0_21 = arith.constant 0 : index
    %57 = vector.load %arg5[%c0_20, %c0_21] : memref<128x128xf32, #tpu.memory_space<vmem>>, vector<128x128xf32>
    %cst_22 = arith.constant dense<0.000000e+00> : vector<8x128xf32>
    %58 = tpu.matmul %32, %57, %cst_22 {dimension_numbers = #tpu.dot_dimension_numbers<[1], [0], [0], [1], [0, 0, 1, 1], [], []>} : vector<8x128xf32>, vector<128x128xf32>, vector<8x128xf32> -> vector<8x128xf32>
    %c0_23 = arith.constant 0 : index
    %c0_24 = arith.constant 0 : index
    %59 = vector.load %arg8[%c0_23, %c0_24] : memref<1x128xf32, #tpu.memory_space<vmem>>, vector<1x128xf32>
    %60 = vector.broadcast %59 : vector<1x128xf32> to vector<8x128xf32>
    %61 = arith.addf %58, %60 : vector<8x128xf32>
    %c0_25 = arith.constant 0 : index
    %c0_26 = arith.constant 0 : index
    %62 = vector.load %arg6[%c0_25, %c0_26] : memref<128x128xf32, #tpu.memory_space<vmem>>, vector<128x128xf32>
    %cst_27 = arith.constant dense<0.000000e+00> : vector<8x128xf32>
    %63 = tpu.matmul %56, %62, %cst_27 {dimension_numbers = #tpu.dot_dimension_numbers<[1], [0], [0], [1], [0, 0, 1, 1], [], []>} : vector<8x128xf32>, vector<128x128xf32>, vector<8x128xf32> -> vector<8x128xf32>
    %c0_28 = arith.constant 0 : index
    %c0_29 = arith.constant 0 : index
    %64 = vector.load %arg9[%c0_28, %c0_29] : memref<1x128xf32, #tpu.memory_space<vmem>>, vector<1x128xf32>
    %65 = vector.broadcast %64 : vector<1x128xf32> to vector<8x128xf32>
    %66 = arith.addf %63, %65 : vector<8x128xf32>
    %c0_30 = arith.constant 0 : index
    %c0_31 = arith.constant 0 : index
    %67 = vector.load %arg7[%c0_30, %c0_31] : memref<128x128xf32, #tpu.memory_space<vmem>>, vector<128x128xf32>
    %cst_32 = arith.constant dense<0.000000e+00> : vector<8x128xf32>
    %68 = tpu.matmul %56, %67, %cst_32 {dimension_numbers = #tpu.dot_dimension_numbers<[1], [0], [0], [1], [0, 0, 1, 1], [], []>} : vector<8x128xf32>, vector<128x128xf32>, vector<8x128xf32> -> vector<8x128xf32>
    %c0_33 = arith.constant 0 : index
    %c0_34 = arith.constant 0 : index
    %69 = vector.load %arg10[%c0_33, %c0_34] : memref<1x128xf32, #tpu.memory_space<vmem>>, vector<1x128xf32>
    %70 = vector.broadcast %69 : vector<1x128xf32> to vector<8x128xf32>
    %71 = arith.addf %68, %70 : vector<8x128xf32>
    %72 = vector.shape_cast %61 : vector<8x128xf32> to vector<8x16x8xf32>
    %73 = tpu.transpose %72, [1, 0, 2] : vector<8x16x8xf32> -> vector<16x8x8xf32>
    %74 = vector.shape_cast %66 : vector<8x128xf32> to vector<8x16x8xf32>
    %75 = tpu.transpose %74, [1, 0, 2] : vector<8x16x8xf32> -> vector<16x8x8xf32>
    %76 = vector.shape_cast %71 : vector<8x128xf32> to vector<8x16x8xf32>
    %77 = tpu.transpose %76, [1, 0, 2] : vector<8x16x8xf32> -> vector<16x8x8xf32>
    %78 = tpu.iota {dimensions = array<i32: 0>} : vector<8x8xi32>
    %79 = tpu.iota {dimensions = array<i32: 1>} : vector<8x8xi32>
    %80 = arith.cmpi sgt, %79, %78 : vector<8x8xi32>
    %cst_35 = arith.constant 0xFF800000 : f32
    %cst_36 = arith.constant 0.000000e+00 : f32
    %81 = vector.broadcast %cst_35 : f32 to vector<8x8xf32>
    %82 = vector.broadcast %cst_36 : f32 to vector<8x8xf32>
    %83 = arith.select %80, %81, %82 : vector<8x8xi1>, vector<8x8xf32>
    "tpu.trace_start"() <{level = 10 : i32, message = "hqd,hkd->hqk"}> : () -> ()
    %cst_37 = arith.constant dense<0.000000e+00> : vector<16x8x8xf32>
    %84 = tpu.matmul %73, %75, %cst_37 {dimension_numbers = #tpu.dot_dimension_numbers<[2], [2], [1], [1], [0, 0, 0, 1, 1, 1], [0], [0]>} : vector<16x8x8xf32>, vector<16x8x8xf32>, vector<16x8x8xf32> -> vector<16x8x8xf32>
    "tpu.trace_stop"() : () -> ()
    %85 = vector.shape_cast %83 : vector<8x8xf32> to vector<1x8x8xf32>
    %86 = vector.broadcast %85 : vector<1x8x8xf32> to vector<16x8x8xf32>
    %87 = arith.addf %84, %86 : vector<16x8x8xf32>
    %cst_38 = arith.constant dense<0xFF800000> : vector<16x8xf32>
    %88 = vector.multi_reduction <maximumf>, %87, %cst_38 [2] : vector<16x8x8xf32> to vector<16x8xf32>
    %89 = vector.shape_cast %88 : vector<16x8xf32> to vector<16x8x1xf32>
    %90 = vector.broadcast %89 : vector<16x8x1xf32> to vector<16x8x8xf32>
    %91 = arith.subf %87, %90 : vector<16x8x8xf32>
    %92 = math.exp %91 : vector<16x8x8xf32>
    %cst_39 = arith.constant dense<0.000000e+00> : vector<16x8xf32>
    %93 = vector.multi_reduction <add>, %92, %cst_39 [2] : vector<16x8x8xf32> to vector<16x8xf32>
    %94 = vector.shape_cast %93 : vector<16x8xf32> to vector<16x8x1xf32>
    %95 = tpu.reciprocal %94 {approx = true} : vector<16x8x1xf32> -> vector<16x8x1xf32>
    %96 = vector.broadcast %95 : vector<16x8x1xf32> to vector<16x8x8xf32>
    %97 = arith.mulf %92, %96 : vector<16x8x8xf32>
    "tpu.trace_start"() <{level = 10 : i32, message = "hqk,hkd->hqd"}> : () -> ()
    %cst_40 = arith.constant dense<0.000000e+00> : vector<16x8x8xf32>
    %98 = tpu.matmul %97, %77, %cst_40 {dimension_numbers = #tpu.dot_dimension_numbers<[2], [1], [1], [2], [0, 0, 0, 1, 1, 2], [0], [0]>} : vector<16x8x8xf32>, vector<16x8x8xf32>, vector<16x8x8xf32> -> vector<16x8x8xf32>
    "tpu.trace_stop"() : () -> ()
    %99 = tpu.transpose %98, [1, 0, 2] : vector<16x8x8xf32> -> vector<8x16x8xf32>
    %100 = vector.shape_cast %99 : vector<8x16x8xf32> to vector<8x128xf32>
    %c0_41 = arith.constant 0 : index
    %c0_42 = arith.constant 0 : index
    %101 = vector.load %arg11[%c0_41, %c0_42] : memref<128x128xf32, #tpu.memory_space<vmem>>, vector<128x128xf32>
    %cst_43 = arith.constant dense<0.000000e+00> : vector<8x128xf32>
    %102 = tpu.matmul %100, %101, %cst_43 {dimension_numbers = #tpu.dot_dimension_numbers<[1], [0], [0], [1], [0, 0, 1, 1], [], []>} : vector<8x128xf32>, vector<128x128xf32>, vector<8x128xf32> -> vector<8x128xf32>
    %c0_44 = arith.constant 0 : index
    %c0_45 = arith.constant 0 : index
    %103 = vector.load %arg12[%c0_44, %c0_45] : memref<1x128xf32, #tpu.memory_space<vmem>>, vector<1x128xf32>
    %104 = vector.broadcast %103 : vector<1x128xf32> to vector<8x128xf32>
    %105 = arith.addf %102, %104 : vector<8x128xf32>
    %106 = arith.addf %32, %105 : vector<8x128xf32>
    %c0_46 = arith.constant 0 : index
    %c0_47 = arith.constant 0 : index
    %107 = vector.load %arg13[%c0_46, %c0_47] : memref<1x128xf32, #tpu.memory_space<vmem>>, vector<1x128xf32>
    %c0_48 = arith.constant 0 : index
    %c0_49 = arith.constant 0 : index
    %108 = vector.load %arg14[%c0_48, %c0_49] : memref<1x128xf32, #tpu.memory_space<vmem>>, vector<1x128xf32>
    %cst_50 = arith.constant dense<0.000000e+00> : vector<8xf32>
    %109 = vector.multi_reduction <add>, %106, %cst_50 [1] : vector<8x128xf32> to vector<8xf32>
    %110 = vector.shape_cast %109 : vector<8xf32> to vector<8x1xf32>
    %cst_51 = arith.constant 3.125000e-02 : f32
    %111 = vector.broadcast %cst_51 : f32 to vector<8x1xf32>
    %112 = arith.mulf %110, %111 : vector<8x1xf32>
    %113 = vector.broadcast %112 : vector<8x1xf32> to vector<8x128xf32>
    %114 = arith.subf %106, %113 : vector<8x128xf32>
    %cst_52 = arith.constant 0.000000e+00 : f32
    %115 = vector.shape_cast %6 : vector<1x128xi1> to vector<1x128xi1>
    %116 = vector.broadcast %115 : vector<1x128xi1> to vector<8x128xi1>
    %117 = vector.broadcast %cst_52 : f32 to vector<8x128xf32>
    %118 = arith.select %116, %114, %117 : vector<8x128xi1>, vector<8x128xf32>
    %119 = arith.mulf %118, %118 : vector<8x128xf32>
    %cst_53 = arith.constant dense<0.000000e+00> : vector<8xf32>
    %120 = vector.multi_reduction <add>, %119, %cst_53 [1] : vector<8x128xf32> to vector<8xf32>
    %121 = vector.shape_cast %120 : vector<8xf32> to vector<8x1xf32>
    %cst_54 = arith.constant 3.125000e-02 : f32
    %122 = vector.broadcast %cst_54 : f32 to vector<8x1xf32>
    %123 = arith.mulf %121, %122 : vector<8x1xf32>
    %cst_55 = arith.constant 9.99999974E-6 : f32
    %124 = vector.broadcast %cst_55 : f32 to vector<8x1xf32>
    %125 = arith.addf %123, %124 : vector<8x1xf32>
    %126 = math.rsqrt %125 : vector<8x1xf32>
    %127 = vector.broadcast %126 : vector<8x1xf32> to vector<8x128xf32>
    %128 = arith.mulf %118, %127 : vector<8x128xf32>
    %129 = vector.broadcast %107 : vector<1x128xf32> to vector<8x128xf32>
    %130 = arith.mulf %128, %129 : vector<8x128xf32>
    %131 = vector.broadcast %108 : vector<1x128xf32> to vector<8x128xf32>
    %132 = arith.addf %130, %131 : vector<8x128xf32>
    %c0_56 = arith.constant 0 : index
    %c0_57 = arith.constant 0 : index
    %133 = vector.load %arg15[%c0_56, %c0_57] : memref<128x128xf32, #tpu.memory_space<vmem>>, vector<128x128xf32>
    %cst_58 = arith.constant dense<0.000000e+00> : vector<8x128xf32>
    %134 = tpu.matmul %132, %133, %cst_58 {dimension_numbers = #tpu.dot_dimension_numbers<[1], [0], [0], [1], [0, 0, 1, 1], [], []>} : vector<8x128xf32>, vector<128x128xf32>, vector<8x128xf32> -> vector<8x128xf32>
    %c0_59 = arith.constant 0 : index
    %c0_60 = arith.constant 0 : index
    %135 = vector.load %arg16[%c0_59, %c0_60] : memref<1x128xf32, #tpu.memory_space<vmem>>, vector<1x128xf32>
    %136 = vector.broadcast %135 : vector<1x128xf32> to vector<8x128xf32>
    %137 = arith.addf %134, %136 : vector<8x128xf32>
    %cst_61 = arith.constant 0.000000e+00 : f32
    %138 = vector.broadcast %cst_61 : f32 to vector<8x128xf32>
    %139 = arith.maximumf %137, %138 : vector<8x128xf32>
    %c0_62 = arith.constant 0 : index
    %c0_63 = arith.constant 0 : index
    %140 = vector.load %arg17[%c0_62, %c0_63] : memref<128x128xf32, #tpu.memory_space<vmem>>, vector<128x128xf32>
    %cst_64 = arith.constant dense<0.000000e+00> : vector<8x128xf32>
    %141 = tpu.matmul %139, %140, %cst_64 {dimension_numbers = #tpu.dot_dimension_numbers<[1], [0], [0], [1], [0, 0, 1, 1], [], []>} : vector<8x128xf32>, vector<128x128xf32>, vector<8x128xf32> -> vector<8x128xf32>
    %c0_65 = arith.constant 0 : index
    %c0_66 = arith.constant 0 : index
    %142 = vector.load %arg18[%c0_65, %c0_66] : memref<1x128xf32, #tpu.memory_space<vmem>>, vector<1x128xf32>
    %143 = vector.broadcast %142 : vector<1x128xf32> to vector<8x128xf32>
    %144 = arith.addf %141, %143 : vector<8x128xf32>
    %145 = arith.addf %132, %144 : vector<8x128xf32>
    %c0_67 = arith.constant 0 : index
    %c0_68 = arith.constant 0 : index
    %c0_69 = arith.constant 0 : index
    %146 = vector.load %arg19[%c0_67, %c0_68, %c0_69] : memref<1x8x128xf32, #tpu.memory_space<vmem>>, vector<1x8x128xf32>
    %147 = vector.shape_cast %146 : vector<1x8x128xf32> to vector<8x128xf32>
    %148 = vector.shape_cast %145 : vector<8x128xf32> to vector<1x8x128xf32>
    tpu.vector_store %arg19[%c0_67, %c0_68, %c0_69], %148 {strides = array<i32>} : memref<1x8x128xf32, #tpu.memory_space<vmem>>, vector<1x8x128xf32>,
    return
  }
  func.func @transform_0(%arg0: i32) -> (i32, i32, i32) {
    %c0_i32 = arith.constant 0 : i32
    %c0_i32_0 = arith.constant 0 : i32
    %c0_i32_1 = arith.constant 0 : i32
    return %arg0, %c0_i32, %c0_i32_0 : i32, i32, i32
  }
  func.func @transform_1(%arg0: i32) -> (i32, i32, i32) {
    %c0_i32 = arith.constant 0 : i32
    %c0_i32_0 = arith.constant 0 : i32
    %c0_i32_1 = arith.constant 0 : i32
    return %arg0, %c0_i32, %c0_i32_0 : i32, i32, i32
  }
  func.func @transform_2(%arg0: i32) -> (i32, i32) {
    %c0_i32 = arith.constant 0 : i32
    %c0_i32_0 = arith.constant 0 : i32
    %c0_i32_1 = arith.constant 0 : i32
    return %c0_i32, %c0_i32_0 : i32, i32
  }
  func.func @transform_3(%arg0: i32) -> (i32, i32) {
    %c0_i32 = arith.constant 0 : i32
    %c0_i32_0 = arith.constant 0 : i32
    %c0_i32_1 = arith.constant 0 : i32
    return %c0_i32, %c0_i32_0 : i32, i32
  }
  func.func @transform_4(%arg0: i32) -> (i32, i32) {
    %c0_i32 = arith.constant 0 : i32
    %c0_i32_0 = arith.constant 0 : i32
    %c0_i32_1 = arith.constant 0 : i32
    return %c0_i32, %c0_i32_0 : i32, i32
  }
  func.func @transform_5(%arg0: i32) -> (i32, i32) {
    %c0_i32 = arith.constant 0 : i32
    %c0_i32_0 = arith.constant 0 : i32
    %c0_i32_1 = arith.constant 0 : i32
    return %c0_i32, %c0_i32_0 : i32, i32
  }
  func.func @transform_6(%arg0: i32) -> (i32, i32) {
    %c0_i32 = arith.constant 0 : i32
    %c0_i32_0 = arith.constant 0 : i32
    %c0_i32_1 = arith.constant 0 : i32
    return %c0_i32, %c0_i32_0 : i32, i32
  }
  func.func @transform_7(%arg0: i32) -> (i32, i32) {
    %c0_i32 = arith.constant 0 : i32
    %c0_i32_0 = arith.constant 0 : i32
    %c0_i32_1 = arith.constant 0 : i32
    return %c0_i32, %c0_i32_0 : i32, i32
  }
  func.func @transform_8(%arg0: i32) -> (i32, i32) {
    %c0_i32 = arith.constant 0 : i32
    %c0_i32_0 = arith.constant 0 : i32
    %c0_i32_1 = arith.constant 0 : i32
    return %c0_i32, %c0_i32_0 : i32, i32
  }
  func.func @transform_9(%arg0: i32) -> (i32, i32) {
    %c0_i32 = arith.constant 0 : i32
    %c0_i32_0 = arith.constant 0 : i32
    %c0_i32_1 = arith.constant 0 : i32
    return %c0_i32, %c0_i32_0 : i32, i32
  }
  func.func @transform_10(%arg0: i32) -> (i32, i32) {
    %c0_i32 = arith.constant 0 : i32
    %c0_i32_0 = arith.constant 0 : i32
    %c0_i32_1 = arith.constant 0 : i32
    return %c0_i32, %c0_i32_0 : i32, i32
  }
  func.func @transform_11(%arg0: i32) -> (i32, i32) {
    %c0_i32 = arith.constant 0 : i32
    %c0_i32_0 = arith.constant 0 : i32
    %c0_i32_1 = arith.constant 0 : i32
    return %c0_i32, %c0_i32_0 : i32, i32
  }
  func.func @transform_12(%arg0: i32) -> (i32, i32) {
    %c0_i32 = arith.constant 0 : i32
    %c0_i32_0 = arith.constant 0 : i32
    %c0_i32_1 = arith.constant 0 : i32
    return %c0_i32, %c0_i32_0 : i32, i32
  }
  func.func @transform_13(%arg0: i32) -> (i32, i32) {
    %c0_i32 = arith.constant 0 : i32
    %c0_i32_0 = arith.constant 0 : i32
    %c0_i32_1 = arith.constant 0 : i32
    return %c0_i32, %c0_i32_0 : i32, i32
  }
  func.func @transform_14(%arg0: i32) -> (i32, i32) {
    %c0_i32 = arith.constant 0 : i32
    %c0_i32_0 = arith.constant 0 : i32
    %c0_i32_1 = arith.constant 0 : i32
    return %c0_i32, %c0_i32_0 : i32, i32
  }
  func.func @transform_15(%arg0: i32) -> (i32, i32) {
    %c0_i32 = arith.constant 0 : i32
    %c0_i32_0 = arith.constant 0 : i32
    %c0_i32_1 = arith.constant 0 : i32
    return %c0_i32, %c0_i32_0 : i32, i32
  }
  func.func @transform_16(%arg0: i32) -> (i32, i32) {
    %c0_i32 = arith.constant 0 : i32
    %c0_i32_0 = arith.constant 0 : i32
    %c0_i32_1 = arith.constant 0 : i32
    return %c0_i32, %c0_i32_0 : i32, i32
  }
  func.func @transform_17(%arg0: i32) -> (i32, i32) {
    %c0_i32 = arith.constant 0 : i32
    %c0_i32_0 = arith.constant 0 : i32
    %c0_i32_1 = arith.constant 0 : i32
    return %c0_i32, %c0_i32_0 : i32, i32
  }
  func.func @transform_18(%arg0: i32) -> (i32, i32, i32) {
    %c0_i32 = arith.constant 0 : i32
    %c0_i32_0 = arith.constant 0 : i32
    %c0_i32_1 = arith.constant 0 : i32
    return %arg0, %c0_i32, %c0_i32_0 : i32, i32, i32
  }
}

</mosaic_0001>

<bundles_post_ra>
// kernel: tpu_custom_call.1
= control target key start
LH: loop header
LB: loop body
LE: loop exit
PB: predicated region body
PF: predicated region fallthrough
CT: control target
= control target key end

     0   :  { %s9436_s0 = inlined_call_operand.hbm [shape: f32[2,8,128], index: 0, kind: input, shape index: {}]   ;;  %s9437_s1 = inlined_call_operand.hbm [shape: f32[2,8,128], index: 1, kind: input, shape index: {}]   ;;  %s9438_s2 = inlined_call_operand.vmem [shape: f32[1,128], index: 2, kind: input, shape index: {}]   ;;  %s9439_s3 = inlined_call_operand.vmem [shape: f32[1,128], index: 3, kind: input, shape index: {}]   ;;  %s9440_s4 = inlined_call_operand.hbm [shape: f32[128,128], index: 4, kind: input, shape index: {}]   ;;  %s9441_s5 = inlined_call_operand.hbm [shape: f32[128,128], index: 5, kind: input, shape index: {}]   ;;  %s9442_s6 = inlined_call_operand.hbm [shape: f32[128,128], index: 6, kind: input, shape index: {}]   ;;  %s9443_s7 = inlined_call_operand.vmem [shape: f32[1,128], index: 7, kind: input, shape index: {}]   ;;  %s9444_s8 = inlined_call_operand.vmem [shape: f32[1,128], index: 8, kind: input, shape index: {}]   ;;  %s9445_s9 = inlined_call_operand.vmem [shape: f32[1,128], index: 9, kind: input, shape index: {}]   ;;  %s9446_s10 = inlined_call_operand.hbm [shape: f32[128,128], index: 10, kind: input, shape index: {}]   ;;  %s9447_s11 = inlined_call_operand.vmem [shape: f32[1,128], index: 11, kind: input, shape index: {}]   ;;  %s9448_s12 = inlined_call_operand.vmem [shape: f32[1,128], index: 12, kind: input, shape index: {}]   ;;  %s9449_s13 = inlined_call_operand.vmem [shape: f32[1,128], index: 13, kind: input, shape index: {}]   ;;  %s9450_s14 = inlined_call_operand.hbm [shape: f32[128,128], index: 14, kind: input, shape index: {}]   ;;  %s9451_s15 = inlined_call_operand.vmem [shape: f32[1,128], index: 15, kind: input, shape index: {}]   ;;  %s9452_s16 = inlined_call_operand.hbm [shape: f32[128,128], index: 16, kind: input, shape index: {}]   ;;  %s9453_s17 = inlined_call_operand.vmem [shape: f32[1,128], index: 17, kind: input, shape index: {}]   ;;  %s9454_s18 = inlined_call_operand.hbm [shape: f32[2,8,128], index: 18, kind: output, shape index: {}]  }
   0x1   :  { %9466 = sst [smem:[#allocation25_spill]] %s9436_s0 }
   0x2   :  { %9467 = sst [smem:[#allocation26_spill]] %s9437_s1 }
   0x3   :  { %9468 = sst [smem:[#allocation27_spill]] %s9438_s2 }
   0x4   :  { %9469 = sst [smem:[#allocation28_spill]] %s9440_s4 }
   0x5   :  { %9470 = sst [smem:[#allocation29_spill]] %s9441_s5 }
   0x6   :  { %9471 = sst [smem:[#allocation30_spill]] %s9442_s6 }
   0x7   :  { %9472 = sst [smem:[#allocation31_spill]] %s9445_s9 }
   0x8   :  { %9473 = sst [smem:[#allocation32_spill]] %s9446_s10 }
   0x9   :  { %9474 = sst [smem:[#allocation33_spill]] %s9447_s11 }
   0xa   :  { %9475 = sst [smem:[#allocation34_spill]] %s9448_s12 }
   0xb   :  { %9476 = sst [smem:[#allocation35_spill]] %s9449_s13 }
   0xc   :  { %9477 = sst [smem:[#allocation36_spill]] %s9450_s14 }
   0xd   :  { %9478 = sst [smem:[#allocation37_spill]] %s9451_s15 }
   0xe   :  { %9479 = sst [smem:[#allocation38_spill]] %s9452_s16 }
   0xf   :  { %9480 = sst [smem:[#allocation39_spill]] %s9453_s17 }
  0x10   :  { %9481 = sst [smem:[#allocation40_spill]] %s9454_s18 }
  0x11   :  { %23 = vsyncpa [#allocation3], 0 }
  0x12   :  { %25 = vsyncpa [#allocation3 + $0x1], 0 }
  0x13   :  { %26 = vsyncpa [#allocation6], 0 }
  0x14   :  { %28 = vsyncpa [#allocation6 + $0x1], 0 }
  0x15   :  { %29 = vsyncpa [#allocation9], 0 }
  0x16   :  { %30 = vsyncpa [#allocation12], 0 }
  0x17   :  { %31 = vsyncpa [#allocation15], 0 }
  0x18   :  { %32 = vsyncpa [#allocation4], 0 }
  0x19   :  { %34 = vsyncpa [#allocation4 + $0x1], 0  ;;  %s7961_s27 = smov 0   ;;  %s7963_s28 = smov 0  }
  0x1a   :  { %s7965_s29 = smov 0   ;;  %s7967_s30 = smov 0  }
  0x1b LB: > { %s7835_s0 = smov [#allocation7]   ;;  %s7982_s1 = sadd.s32 4294967295, %s7833_s30   ;;  %s7833_s30 = sphi %s7967_s30, %s9527_s30   ;;  %s7829_s29 = sphi %s7965_s29, %s9526_s29   ;;  %s7825_s28 = sphi %s7963_s28, %s9525_s28   ;;  %s7821_s27 = sphi %s7961_s27, %s9524_s27  }
  0x1c   : > { %s477_s19 = sshll.u32 %s7835_s0, 4  ;;  %p6487_p0 = scmp.ge.s32.totalorder %s7833_s30, 1  ;;  %s7987_s19 = int_to_ptr.vmem [resolvable:$true] %s477_s19 }
  0x1d   : > { %p9458_p1 = scmp.eq.s32.totalorder %s7982_s1, 0  ;;  %p459_p2 = scmp.lt.s32.totalorder %s7833_s30, 3 }
  0x1e   : > { %s7836_s21 = smov [#allocation8]   ;;  %s7837_s23 = smov [#allocation11]  }
  0x1f   : > { %p7989_p3 = pnand %p6487_p0, %p459_p2  ;;  %s490_s22 = sshll.u32 %s7836_s21, 4  ;;  %s8002_s22 = int_to_ptr.vmem [resolvable:$true] %s490_s22 }
  0x20   : > { %s525_s24 = sshll.u32 %s7837_s23, 4  ;;  %s9484_s4 = sld [smem:[#allocation28_spill]]  ;;  %s8004_s24 = int_to_ptr.vmem [resolvable:$true] %s525_s24 }
  0x21   : > { %s9482_s20 = scalar_select %p7989_p3, 1, 0 }
  0x22   : > { %p7345_p5 = pneg %p7989_p3 }
  0x24   : > { %p7998_p6 = pnand %p7345_p5, %p9458_p1 }
  0x26   : > { %s7519_s0 = scalar_lea.hbm %s9484_s4, 2048  ;;  %p8014_p8 = pneg %p7998_p6 }
  0x27   : > { %p7520_p7 = scmp.ne.s32.totalorder %s9484_s4, %s7519_s0  ;;  %p7526_p11 = scmp.lt.u32.totalorder %s7519_s0, %s9484_s4 }
  0x29   : > { %p7522_p9 = pnand %p8014_p8, %p7520_p7 }
  0x2b   : > { %p7523_p10 = pneg %p7522_p9 }
  0x2d   : > { %p7528_p12 = pnand %p7526_p11, %p7523_p10 }
  0x2f   : > { %7531 = shalt.err (!%p7528_p12)
}
  0x30   : > { %s7532_s17 = scalar_lea.vmem %s7987_s19, 2048  ;;  %p7540_p5 = scmp.lt.s32.totalorder %s7987_s19, %s7987_s19 }
  0x31   : > { %p7533_p13 = scmp.ne.s32.totalorder %s7987_s19, %s7532_s17  ;;  %p7541_p4 = scmp.lt.s32.totalorder %s7532_s17, %s7532_s17 }
  0x33   : > { %p7535_p0 = pnand %p7533_p13, %p8014_p8  ;;  %p7542_p7 = por %p7541_p4, %p7540_p5 }
  0x35   : > { %p7536_p2 = pneg %p7535_p0 }
  0x37   : > { %p7543_p9 = pnand %p7542_p7, %p7536_p2 }
  0x39   : > { %7546 = shalt.err (!%p7543_p9)
}
  0x3a   : > { %s7838_s18 = smov 128   ;;  %s7839_s15 = smov 8  }
  0x3b   : > { %7348 = dma.hbm_to_vmem [thread:$0]  (!%p7998_p6), %s9484_s4, 2048, %s7987_s19, [#allocation6], %s7838_s18, %s7838_s18, %s7839_s15  }
  0x3c   : > { %s9486_s5 = sld [smem:[#allocation29_spill]] }
  0x42   : > { %s7547_s17 = scalar_lea.hbm %s9486_s5, 2048 }
  0x43   : > { %p7548_p4 = scmp.ne.s32.totalorder %s9486_s5, %s7547_s17  ;;  %p7554_p12 = scmp.lt.u32.totalorder %s7547_s17, %s9486_s5 }
  0x45   : > { %p7550_p10 = pnand %p7548_p4, %p8014_p8 }
  0x47   : > { %p7551_p11 = pneg %p7550_p10 }
  0x49   : > { %p7556_p13 = pnand %p7554_p12, %p7551_p11 }
  0x4b   : > { %7559 = shalt.err (!%p7556_p13)
}
  0x4c   : > { %s7560_s19 = scalar_lea.vmem %s8002_s22, 2048  ;;  %p7568_p7 = scmp.lt.s32.totalorder %s8002_s22, %s8002_s22 }
  0x4d   : > { %p7561_p0 = scmp.ne.s32.totalorder %s8002_s22, %s7560_s19  ;;  %p7569_p9 = scmp.lt.s32.totalorder %s7560_s19, %s7560_s19 }
  0x4f   : > { %p7563_p2 = pnand %p7561_p0, %p8014_p8  ;;  %p7570_p4 = por %p7569_p9, %p7568_p7 }
  0x51   : > { %p7564_p5 = pneg %p7563_p2 }
  0x53   : > { %p7571_p10 = pnand %p7570_p4, %p7564_p5 }
  0x55   : > { %7574 = shalt.err (!%p7571_p10)
}
  0x56   : > { %7351 = dma.hbm_to_vmem [thread:$0]  (!%p7998_p6), %s9486_s5, 2048, %s8002_s22, [#allocation9], %s7838_s18, %s7838_s18, %s7839_s15  }
  0x57   : > { %s9487_s10 = sld [smem:[#allocation32_spill]] }
  0x5d   : > { %s7575_s25 = scalar_lea.hbm %s9487_s10, 2048 }
  0x5e   : > { %p7576_p11 = scmp.ne.s32.totalorder %s9487_s10, %s7575_s25  ;;  %p7582_p0 = scmp.lt.u32.totalorder %s7575_s25, %s9487_s10 }
  0x60   : > { %p7578_p12 = pnand %p7576_p11, %p8014_p8 }
  0x62   : > { %p7579_p13 = pneg %p7578_p12 }
  0x64   : > { %p7584_p2 = pnand %p7582_p0, %p7579_p13 }
  0x66   : > { %7587 = shalt.err (!%p7584_p2)
}
  0x67   : > { %s7588_s22 = scalar_lea.vmem %s8004_s24, 2048  ;;  %p7596_p4 = scmp.lt.s32.totalorder %s8004_s24, %s8004_s24 }
  0x68   : > { %p7589_p5 = scmp.ne.s32.totalorder %s8004_s24, %s7588_s22  ;;  %p7597_p10 = scmp.lt.s32.totalorder %s7588_s22, %s7588_s22 }
  0x6a   : > { %p7591_p7 = pnand %p7589_p5, %p8014_p8  ;;  %p7598_p11 = por %p7597_p10, %p7596_p4 }
  0x6c   : > { %p7592_p9 = pneg %p7591_p7 }
  0x6e   : > { %p7599_p12 = pnand %p7598_p11, %p7592_p9 }
  0x70   : > { %7602 = shalt.err (!%p7599_p12)
}
  0x71   : > { %7357 = dma.hbm_to_vmem [thread:$0]  (!%p7998_p6), %s9487_s10, 2048, %s8004_s24, [#allocation12], %s7838_s18, %s7838_s18, %s7839_s15  }
  0x72   : > { %s7840_s11 = smov [#allocation10]   ;;  %s7841_s13 = smov [#allocation13]  }
  0x73   : > { %s503_s12 = sshll.u32 %s7840_s11, 4  ;;  %s547_s25 = sshll.u32 %s7841_s13, 4  ;;  %s504_s12 = int_to_ptr.vmem [resolvable:$true] %s503_s12  ;;  %s548_s25 = int_to_ptr.vmem [resolvable:$true] %s547_s25 }
  0x74   : > { %s9488_s6 = sld [smem:[#allocation30_spill]] }
  0x7a   : > { %s7603_s23 = scalar_lea.hbm %s9488_s6, 2048 }
  0x7b   : > { %p7604_p13 = scmp.ne.s32.totalorder %s9488_s6, %s7603_s23  ;;  %p7610_p5 = scmp.lt.u32.totalorder %s7603_s23, %s9488_s6 }
  0x7d   : > { %p7606_p0 = pnand %p7604_p13, %p8014_p8 }
  0x7f   : > { %p7607_p2 = pneg %p7606_p0 }
  0x81   : > { %p7612_p7 = pnand %p7610_p5, %p7607_p2 }
  0x83   : > { %7615 = shalt.err (!%p7612_p7)
}
  0x84   : > { %s7616_s24 = scalar_lea.vmem %s504_s12, 2048  ;;  %p7624_p11 = scmp.lt.s32.totalorder %s504_s12, %s504_s12 }
  0x85   : > { %p7617_p9 = scmp.ne.s32.totalorder %s504_s12, %s7616_s24  ;;  %p7625_p12 = scmp.lt.s32.totalorder %s7616_s24, %s7616_s24 }
  0x87   : > { %p7619_p4 = pnand %p7617_p9, %p8014_p8  ;;  %p7626_p1 = por %p7625_p12, %p7624_p11 }
  0x89   : > { %p7620_p10 = pneg %p7619_p4 }
  0x8b   : > { %p7627_p3 = pnand %p7626_p1, %p7620_p10 }
  0x8d   : > { %7630 = shalt.err (!%p7627_p3)
}
  0x8e   : > { %7354 = dma.hbm_to_vmem [thread:$0]  (!%p7998_p6), %s9488_s6, 2048, %s504_s12, [#allocation9], %s7838_s18, %s7838_s18, %s7839_s15  }
  0x8f   : > { %s9489_s14 = sld [smem:[#allocation36_spill]] }
  0x95   : > { %s7631_s26 = scalar_lea.hbm %s9489_s14, 2048 }
  0x96   : > { %p7632_p1 = scmp.ne.s32.totalorder %s9489_s14, %s7631_s26  ;;  %p7638_p0 = scmp.lt.u32.totalorder %s7631_s26, %s9489_s14 }
  0x98   : > { %p7634_p3 = pnand %p7632_p1, %p8014_p8 }
  0x9a   : > { %p7635_p13 = pneg %p7634_p3 }
  0x9c   : > { %p7640_p2 = pnand %p7638_p0, %p7635_p13 }
  0x9e   : > { %7643 = shalt.err (!%p7640_p2)
}
  0x9f   : > { %s7644_s19 = scalar_lea.vmem %s548_s25, 2048  ;;  %p7652_p4 = scmp.lt.s32.totalorder %s548_s25, %s548_s25 }
  0xa0   : > { %p7645_p5 = scmp.ne.s32.totalorder %s548_s25, %s7644_s19  ;;  %p7653_p10 = scmp.lt.s32.totalorder %s7644_s19, %s7644_s19 }
  0xa2   : > { %p7647_p7 = pnand %p7645_p5, %p8014_p8  ;;  %p7654_p11 = por %p7653_p10, %p7652_p4 }
  0xa4   : > { %p7648_p9 = pneg %p7647_p7 }
  0xa6   : > { %p7655_p12 = pnand %p7654_p11, %p7648_p9 }
  0xa8   : > { %7658 = shalt.err (!%p7655_p12)
}
  0xa9   : > { %7360 = dma.hbm_to_vmem [thread:$0]  (!%p7998_p6), %s9489_s14, 2048, %s548_s25, [#allocation12], %s7838_s18, %s7838_s18, %s7839_s15  }
  0xaa   : > { %s7842_s4 = smov [#allocation14]   ;;  %s9490_s16 = sld [smem:[#allocation38_spill]] }
  0xab   : > { %s563_s9 = sshll.u32 %s7842_s4, 4  ;;  %s564_s9 = int_to_ptr.vmem [resolvable:$true] %s563_s9 }
  0xb0   : > { %s7659_s26 = scalar_lea.hbm %s9490_s16, 2048 }
  0xb1   : > { %p7660_p1 = scmp.ne.s32.totalorder %s9490_s16, %s7659_s26  ;;  %p7666_p0 = scmp.lt.u32.totalorder %s7659_s26, %s9490_s16 }
  0xb3   : > { %p7662_p3 = pnand %p7660_p1, %p8014_p8 }
  0xb5   : > { %p7663_p13 = pneg %p7662_p3 }
  0xb7   : > { %p7668_p2 = pnand %p7666_p0, %p7663_p13 }
  0xb9   : > { %7671 = shalt.err (!%p7668_p2)
}
  0xba   : > { %s7672_s25 = scalar_lea.vmem %s564_s9, 2048  ;;  %p7680_p4 = scmp.lt.s32.totalorder %s564_s9, %s564_s9 }
  0xbb   : > { %p7673_p5 = scmp.ne.s32.totalorder %s564_s9, %s7672_s25  ;;  %p7681_p10 = scmp.lt.s32.totalorder %s7672_s25, %s7672_s25 }
  0xbd   : > { %p7675_p7 = pnand %p7673_p5, %p8014_p8  ;;  %p7682_p11 = por %p7681_p10, %p7680_p4 }
  0xbf   : > { %p7676_p9 = pneg %p7675_p7 }
  0xc1   : > { %p7683_p12 = pnand %p7682_p11, %p7676_p9 }
  0xc3   : > { %7686 = shalt.err (!%p7683_p12)
}
  0xc4   : > { %7363 = dma.hbm_to_vmem [thread:$0]  (!%p7998_p6), %s9490_s16, 2048, %s564_s9, [#allocation15], %s7838_s18, %s7838_s18, %s7839_s15  }
  0xc5   : > { %s6486_s2 = sadd.s32 4294967294, %s7833_s30   ;;  %s8155_s21 = sadd.s32 1, %s7833_s30  }
  0xc6   : > { %s44_s24 = ssub.s32 %s7833_s30, %s8155_s21  ;;  %s47_s4 = sadd.s32 1, %s7829_s29 }
  0xc7   : > { %p45_p8 = scmp.eq.s32.totalorder %s44_s24, 0  ;;  %p54_p1 = scmp.ne.s32.totalorder %s7829_s29, %s7825_s28 }
  0xc8   : > { %p55_p3 = scmp.eq.s32.totalorder %s7833_s30, 0  ;;  %p60_p13 = scmp.ne.s32.totalorder %s7825_s28, %s7821_s27 }
  0xc9   : > { %s8166_s11 = scalar_select %p45_p8, %s7829_s29, %s47_s4  }
  0xca   : > { %p8168_p0 = por %p55_p3, %p54_p1  ;;  %p9493_p2 = scmp.eq.s32.totalorder %s7982_s1, 0 }
  0xcb   : > { %9491 = sst [smem:[#allocation24_spill]] %s8166_s11  ;;  %p446_p5 = scmp.eq.s32.totalorder %s7982_s1, 1 }
  0xcc   : > { %p8174_p6 = por %p9493_p2, %p60_p13  ;;  %p452_p7 = scmp.eq.s32.totalorder %s6486_s2, 1 }
  0xcd   : > { %p7381_p9 = scmp.lt.s32.totalorder %s7833_s30, 2  ;;  %s580_s15 = sand.u32 1, %s7829_s29  }
  0xce   : > { %s9494_s18 = scalar_select %p8174_p6, 1, 0 }
  0xcf   : > { %p8181_p4 = por %p446_p5, %p54_p1  ;;  %p8185_p10 = por %p452_p7, %p60_p13 }
  0xd0   : > { %s8189_s0 = sshll.u32 %s580_s15, 3  ;;  %s6496_s23 = sshll.u32 %s7833_s30, 7 }
  0xd1   : > { %s9495_s9 = scalar_select %p8181_p4, 1, 0 }
  0xd2   : > { %s9496_s26 = scalar_select %p8185_p10, 1, 0 }
  0xd3   : > { %s9497_s25 = sld [smem:[#allocation25_spill]]  ;;  %s584_s12 = scalar_lea.vmem [#allocation2], %s8189_s0 }
  0xd4   : > { %s591_s2 = sshll.u32 %s584_s12, 4  ;;  %p8202_p11 = pnand %p7381_p9, %p8168_p0  ;;  %s8198_s2 = int_to_ptr.vmem [resolvable:$true] %s591_s2 }
  0xd5   : > { %s9499_s6 = sld [smem:[#allocation26_spill]]  ;;  %s598_s22 = sand.u32 1, %s7833_s30  }
  0xd6   : > { %s581_s10 = scalar_lea.sflag [#allocation3], %s580_s15  ;;  %p7689_p8 = pneg %p8202_p11 }
  0xd9   : > { %s8195_s19 = scalar_lea.hbm %s9497_s25, %s6496_s23  ;;  %s7692_s16 = scalar_lea.hbm %s9497_s25, 256 }
  0xda   : > { %s7687_s14 = scalar_lea.hbm %s8195_s19, 128  ;;  %p7693_p13 = scmp.lt.u32.totalorder %s8195_s19, %s9497_s25 }
  0xdb   : > { %s8209_s17 = scalar_lea.hbm %s9499_s6, %s6496_s23  ;;  %p7688_p12 = scmp.ne.s32.totalorder %s8195_s19, %s7687_s14 }
  0xdc   : > { %p7694_p0 = scmp.lt.u32.totalorder %s7692_s16, %s7687_s14  ;;  %p7696_p5 = scmp.lt.u32.totalorder %s7687_s14, %s8195_s19 }
  0xdd   : > { %p7690_p1 = pnand %p7689_p8, %p7688_p12 }
  0xde   : > { %p7695_p2 = por %p7694_p0, %p7693_p13 }
  0xdf   : > { %p7691_p3 = pneg %p7690_p1 }
  0xe0   : > { %p7697_p7 = por %p7696_p5, %p7695_p2 }
  0xe2   : > { %p7698_p9 = pnand %p7697_p7, %p7691_p3 }
  0xe4   : > { %7701 = shalt.err (!%p7698_p9)
}
  0xe5   : > { %s7702_s15 = scalar_lea.vmem %s8198_s2, 128  ;;  %s7843_s23 = smov [#allocation2]  }
  0xe6   : > { %p7703_p12 = scmp.ne.s32.totalorder %s8198_s2, %s7702_s15  ;;  %s7707_s4 = sshll.u32 %s7843_s23, 4  ;;  %s7708_s4 = int_to_ptr.vmem [resolvable:$false] %s7707_s4 }
  0xe7   : > { %s7709_s11 = scalar_lea.vmem %s7708_s4, 256  ;;  %p7710_p4 = scmp.lt.s32.totalorder %s8198_s2, %s7708_s4 }
  0xe8   : > { %p7705_p1 = pnand %p7703_p12, %p7689_p8  ;;  %p7711_p13 = scmp.lt.s32.totalorder %s7709_s11, %s7702_s15 }
  0xea   : > { %p7706_p10 = pneg %p7705_p1  ;;  %p7712_p0 = por %p7711_p13, %p7710_p4 }
  0xec   : > { %p7713_p2 = pnand %p7712_p0, %p7706_p10 }
  0xee   : > { %7716 = shalt.err (!%p7713_p2)
}
  0xef   : > { %7367 = dma.hbm_to_vmem [thread:$0]  (!%p8202_p11), %s8195_s19, 128, %s8198_s2, %s581_s10  }
  0xf0   : > { %s602_s14 = scalar_lea.vmem [#allocation5], %s8189_s0  ;;  %s599_s13 = scalar_lea.sflag [#allocation6], %s598_s22 }
  0xf1   : > { %s609_s16 = sshll.u32 %s602_s14, 4  ;;  %s7717_s12 = scalar_lea.hbm %s8209_s17, 128  ;;  %s610_s16 = int_to_ptr.vmem [resolvable:$true] %s609_s16 }
  0xf2   : > { %p7718_p4 = scmp.ne.s32.totalorder %s8209_s17, %s7717_s12  ;;  %s7722_s23 = scalar_lea.hbm %s9499_s6, 256 }
  0xf3   : > { %p7723_p5 = scmp.lt.u32.totalorder %s8209_s17, %s9499_s6  ;;  %p7724_p7 = scmp.lt.u32.totalorder %s7722_s23, %s7717_s12 }
  0xf4   : > { %p7720_p10 = pnand %p7718_p4, %p7689_p8  ;;  %p7726_p12 = scmp.lt.u32.totalorder %s7717_s12, %s8209_s17 }
  0xf5   : > { %p7725_p9 = por %p7724_p7, %p7723_p5 }
  0xf6   : > { %p7721_p3 = pneg %p7720_p10 }
  0xf7   : > { %p7727_p1 = por %p7726_p12, %p7725_p9 }
  0xf9   : > { %p7728_p13 = pnand %p7727_p1, %p7721_p3 }
  0xfb   : > { %7731 = shalt.err (!%p7728_p13)
}
  0xfc   : > { %s7732_s10 = scalar_lea.vmem %s610_s16, 128  ;;  %s7844_s0 = smov [#allocation5]  }
  0xfd   : > { %p7733_p0 = scmp.ne.s32.totalorder %s610_s16, %s7732_s10  ;;  %s7737_s19 = sshll.u32 %s7844_s0, 4  ;;  %s7738_s19 = int_to_ptr.vmem [resolvable:$false] %s7737_s19 }
  0xfe   : > { %s7739_s2 = scalar_lea.vmem %s7738_s19, 256  ;;  %p7740_p10 = scmp.lt.s32.totalorder %s610_s16, %s7738_s19 }
  0xff   : > { %p7735_p2 = pnand %p7733_p0, %p7689_p8  ;;  %p7741_p6 = scmp.lt.s32.totalorder %s7739_s2, %s7732_s10 }
 0x101   : > { %p7736_p4 = pneg %p7735_p2  ;;  %p7742_p5 = por %p7741_p6, %p7740_p10 }
 0x103   : > { %p7743_p7 = pnand %p7742_p5, %p7736_p4 }
 0x105   : > { %7746 = shalt.err (!%p7743_p7)
}
 0x106   : > { %7370 = dma.hbm_to_vmem [thread:$0]  (!%p8202_p11), %s8209_s17, 128, %s610_s16, %s599_s13  }
 0x107   : > { %p9500_p3 = scmp.ne.s32.totalorder %s9482_s20, 0 }
 0x108   : > { %s8262_s22 = sand.u32 (!%p9500_p3), 1, %s7825_s28   ;;  %p9501_p6 = scmp.ne.s32.totalorder (!%p9500_p3), %s9494_s18, 0 }
 0x109   : > { %618 = sbr.rel (%p9500_p3) target bundleno = 2949 (0xb85), region = 92  ;;  %s8265_s14 = sshll.u32 (!%p9500_p3), %s8262_s22, 3 }
 0x10a   : > { %s621_s12 = scalar_lea.sflag (!%p9500_p3), [#allocation3], %s8262_s22  ;;  %s624_s5 = scalar_lea.vmem (!%p9500_p3), [#allocation2], %s8265_s14 }
 0x110   : > { %7792 = dma.done.wait (%p9501_p6), %s621_s12, 128  }
 0x111   : > { %7794 = vsyncadd (%p9501_p6), %s621_s12, 4294967168  ;;  %s629_s20 = sand.u32 1, %s7982_s1   ;;  %s633_s17 = scalar_lea.vmem [#allocation5], %s8265_s14 }
 0x112   : > { %s630_s24 = scalar_lea.sflag [#allocation6], %s629_s20 }
 0x113   : > { %7796 = dma.done.wait (%p9501_p6), %s630_s24, 128  }
 0x114   : > { %7798 = vsyncadd (%p9501_p6), %s630_s24, 4294967168  ;;  %p9502_p11 = scmp.eq.s32.totalorder %s7982_s1, 0 }
 0x116   : > { %7800 = dma.done.wait (%p9502_p11), [#allocation6], 2048   ;;  %p9503_p8 = pmov %p9502_p11 }
 0x118   : > { %7802 = vsyncadd (%p9503_p8), [#allocation6], 4294965248  ;;  %p9504_p9 = pmov %p9503_p8 }
 0x119   : > { %p9505_p12 = pmov %p9503_p8 }
 0x11a   : > { %7804 = dma.done.wait (%p9504_p9), [#allocation9], 4096  }
 0x11b   : > { %7806 = vsyncadd (%p9505_p12), [#allocation9], 4294963200  ;;  %p9506_p1 = pmov %p9503_p8 }
 0x11d   : > { %7808 = dma.done.wait (%p9506_p1), [#allocation12], 4096   ;;  %p9507_p13 = pmov %p9506_p1 }
 0x11e   : > { %p9508_p0 = pmov %p9506_p1 }
 0x11f   : > { %7810 = vsyncadd (%p9507_p13), [#allocation12], 4294963200 }
 0x120   : > { %7812 = dma.done.wait (%p9508_p0), [#allocation15], 2048   ;;  %p9509_p2 = pmov %p9508_p0 }
 0x121   : > { %v716_v0 = vld [vmem:[%s633_s17] sm:$0xff]  ;;  %v715_v1 = vld [vmem:[%s624_s5] sm:$0xff]  ;;  %v717_v2 = vlaneseq  ;;  %v7845_v8 = vmov 0.0|0.0   ;;  %vm7846_vm2 = vmmov 0   ;;  %v7847_v54 = vmov 0.0   ;;  %s9510_s13 = sld [smem:[#allocation27_spill]] }
 0x122   : > { %7814 = vsyncadd (%p9509_p2), [#allocation15], 4294965248  ;;  %750 = vadd.xlane.f32.xlu0 %v716_v0  ;;  %v857_v5 = vld [vmem:[#allocation8] sm:$0xff]  ;;  %v858_v6 = vld [vmem:[#allocation8 + $0x8] sm:$0xff]  ;;  %7195 = vmatprep.subr.bf16.mxu1 %v7845_v8  ;;  %s7848_s19 = smov 120   ;;  %s7849_s2 = smov 112  }
 0x123   : > { %v8295_v3 = vand.u32 127, %v717_v2  ;;  %v8297_v4 = vshrl.u32 %v717_v2, 7  ;;  %v764_v7 = vld [vmem:[#allocation7] sm:$0xff]  ;;  %v7196_v9 = vpack.c.bf16 %v858_v6, %v857_v5  ;;  %7171 = vmatprep.subr.bf16.mxu0 %v7845_v8  ;;  %v765_v10 = vld [vmem:[#allocation7 + $0x8] sm:$0xff]  ;;  %v859_v11 = vld [vmem:[#allocation8 + $0x10] sm:$0xff]  ;;  %6868 = vmatprep.mubr.msk.f32.mxu1 %vm7846_vm2, %v7847_v54  ;;  %s7850_s12 = smov 104  }
 0x124   : > { %v860_v12 = vld [vmem:[#allocation8 + $0x18] sm:$0xff]  ;;  %v7172_v13 = vpack.c.bf16 %v765_v10, %v764_v7  ;;  %v766_v14 = vld [vmem:[#allocation7 + $0x10] sm:$0xff]  ;;  %v861_v18 = vld [vmem:[#allocation8 + $0x20] sm:$0xff]  ;;  %6833 = vmatprep.mubr.msk.f32.mxu0 %vm7846_vm2, %v7847_v54  ;;  %s7851_s5 = smov 96   ;;  %s7852_s20 = smov 80   ;;  %vm2817_vm3 = vcmask 64512  }
 0x125   : > { %vm2815_vm0 = vcmp.gt.s32.totalorder %v8295_v3, %v8297_v4  ;;  %v767_v15 = vld [vmem:[#allocation7 + $0x18] sm:$0xff]  ;;  %7197 = vmatpush3.bf16.msra.mxu1 %v7196_v9  ;;  %v7199_v16 = vpack.c.bf16 %v860_v12, %v859_v11  ;;  %v862_v19 = vld [vmem:[#allocation8 + $0x28] sm:$0xff]  ;;  %vm719_vm1 = vcmp.lt.s32.totalorder %v8295_v3, 32  ;;  %v768_v31 = vld [vmem:[#allocation7 + $0x20] sm:$0xff]  ;;  %s7853_s24 = smov 88   ;;  %s7854_s17 = smov 72  }
 0x126   : > { %722 = vadd.xlane.f32.xlu0 %v715_v1  ;;  %7173 = vmatpush3.bf16.msra.mxu0 %v7172_v13  ;;  %v7175_v17 = vpack.c.bf16 %v767_v15, %v766_v14  ;;  %v7202_v20 = vpack.c.bf16 %v862_v19, %v861_v18  ;;  %v769_v32 = vld [vmem:[#allocation7 + $0x28] sm:$0xff]  ;;  %v863_v34 = vld [vmem:[#allocation8 + $0x30] sm:$0xff]  ;;  %v864_v35 = vld [vmem:[#allocation8 + $0x38] sm:$0xff]  ;;  %s7855_s18 = smov 64   ;;  %s9462_s16 = smov 48   ;;  %vm5983_vm4 = vcmask 130048  }
 0x127   : > { %7198 = vmatprep.subr.bf16.mxu1 %v7845_v8  ;;  %7174 = vmatprep.subr.bf16.mxu0 %v7845_v8  ;;  %v7178_v33 = vpack.c.bf16 %v769_v32, %v768_v31  ;;  %v7205_v36 = vpack.c.bf16 %v864_v35, %v863_v34  ;;  %v770_v37 = vld [vmem:[#allocation7 + $0x30] sm:$0xff]  ;;  %v771_v38 = vld [vmem:[#allocation7 + $0x38] sm:$0xff]  ;;  %v865_v40 = vld [vmem:[#allocation8 + $0x40] sm:$0xff]  ;;  %s7858_s15 = smov 40   ;;  %s7859_s23 = smov 32   ;;  %vm5985_vm5 = vcmask 195584  }
 0x128   : > { %v7181_v39 = vpack.c.bf16 %v771_v38, %v770_v37  ;;  %v866_v41 = vld [vmem:[#allocation8 + $0x48] sm:$0xff]  ;;  %v772_v43 = vld [vmem:[#allocation7 + $0x40] sm:$0xff]  ;;  %v867_v46 = vld [vmem:[#allocation8 + $0x50] sm:$0xff]  ;;  %s7860_s4 = smov 16   ;;  %s7861_s11 = smov 24   ;;  %vm5987_vm6 = vcmask 261120  }
 0x129   : > { %7200 = vmatpush3.bf16.msra.mxu1 %v7199_v16  ;;  %v7208_v42 = vpack.c.bf16 %v866_v41, %v865_v40  ;;  %v773_v44 = vld [vmem:[#allocation7 + $0x48] sm:$0xff]  ;;  %v868_v47 = vld [vmem:[#allocation8 + $0x58] sm:$0xff]  ;;  %v774_v49 = vld [vmem:[#allocation7 + $0x50] sm:$0xff]  ;;  %s9513_s10 = smov 56   ;;  %vm5989_vm7 = vcmask 326656   ;;  %vm5991_vm8 = vcmask 392192  }
 0x12a   : > { %7176 = vmatpush3.bf16.msra.mxu0 %v7175_v17  ;;  %7201 = vmatprep.subr.bf16.mxu1 %v7845_v8  ;;  %v7184_v45 = vpack.c.bf16 %v773_v44, %v772_v43  ;;  %v7211_v48 = vpack.c.bf16 %v868_v47, %v867_v46  ;;  %v775_v50 = vld [vmem:[#allocation7 + $0x58] sm:$0xff]  ;;  %v869_v51 = vld [vmem:[#allocation8 + $0x60] sm:$0xff]  ;;  %v870_v53 = vld [vmem:[#allocation8 + $0x68] sm:$0xff]  ;;  %vm5993_vm9 = vcmask 457728   ;;  %vm5995_vm10 = vcmask 523264   ;;  %p9520_p10 = scmp.ne.s32.totalorder %s9495_s9, 0 }
 0x12b   : > { %7177 = vmatprep.subr.bf16.mxu0 %v7845_v8  ;;  %v7187_v52 = vpack.c.bf16 %v775_v50, %v774_v49  ;;  %v7214_v55 = vpack.c.bf16 %v870_v53, %v869_v51  ;;  %v776_v56 = vld [vmem:[#allocation7 + $0x60] sm:$0xff]  ;;  %v777_v57 = vld [vmem:[#allocation7 + $0x68] sm:$0xff]  ;;  %v871_v58 = vld [vmem:[#allocation8 + $0x70] sm:$0xff]  ;;  %vm5997_vm11 = vcmask 588800   ;;  %vm5999_vm12 = vcmask 654336  }
 0x12c   : > { %v872_v59 = vld [vmem:[#allocation8 + $0x78] sm:$0xff]  ;;  %v7190_v60 = vpack.c.bf16 %v777_v57, %v776_v56  ;;  %v778_v62 = vld [vmem:[#allocation7 + $0x70] sm:$0xff]  ;;  %v6509_v11 = vld [vmem:[%s9510_s13] ss:$0 sm:$0xff]  ;;  %s9464_s13 = smov 56   ;;  %vm6001_vm13 = vcmask 719872  }
 0x12d   : > { %7203 = vmatpush3.bf16.msra.mxu1 %v7202_v20  ;;  %v7217_v61 = vpack.c.bf16 %v872_v59, %v871_v58  ;;  %v779_v63 = vld [vmem:[#allocation7 + $0x78] sm:$0xff]  ;;  %v6510_v13 = vld [vmem:[%s9439_s3] ss:$0 sm:$0xff]  ;;  %v951_v19 = vld [vmem:[#allocation10 + $0x8] sm:$0xff]  ;;  %v7863_v57 = vmov 1983009808  }
 0x12e   : > { %7204 = vmatprep.subr.bf16.mxu1 %v7845_v8  ;;  %7179 = vmatpush3.bf16.msra.mxu0 %v7178_v33  ;;  %v950_v18 = vld [vmem:[#allocation10] sm:$0xff]  ;;  %v959_v33 = vld [vmem:[#allocation10 + $0x48] sm:$0xff]  ;;  %v960_v35 = vld [vmem:[#allocation10 + $0x50] sm:$0xff]  ;;  %v1092_v58 = vunpack.c.l.s4 %v7863_v57  ;;  %v7864_v59 = vmov 1934713408   ;;  %vm6003_vm14 = vcmask 785408  }
 0x12f   : > { %7180 = vmatprep.subr.bf16.mxu0 %v7845_v8  ;;  %v958_v32 = vld [vmem:[#allocation10 + $0x40] sm:$0xff]  ;;  %v964_v41 = vld [vmem:[#allocation10 + $0x70] sm:$0xff]  ;;  %vm6005_vm15 = vcmask 850944  }
 0x130   : > { %v7232_v34 = vpack.c.bf16 %v959_v33, %v958_v32  ;;  %v962_v38 = vld [vmem:[#allocation10 + $0x60] sm:$0xff] }
 0x131   : > { %7206 = vmatpush3.bf16.msra.mxu1 %v7205_v36  ;;  %v961_v36 = vld [vmem:[#allocation10 + $0x58] sm:$0xff]  ;;  %v6512_v44 = vld [vmem:[%s9444_s8] ss:$0 sm:$0xff] }
 0x132   : > { %7207 = vmatprep.subr.bf16.mxu1 %v7845_v8  ;;  %7182 = vmatpush3.bf16.msra.mxu0 %v7181_v39  ;;  %v7235_v37 = vpack.c.bf16 %v961_v36, %v960_v35  ;;  %v963_v39 = vld [vmem:[#allocation10 + $0x68] sm:$0xff]  ;;  %v6145_v3 = vld [vmem:[#allocation13 + $0x60] sm:$0xff] }
 0x133   : > { %7183 = vmatprep.subr.bf16.mxu0 %v7845_v8  ;;  %v7238_v40 = vpack.c.bf16 %v963_v39, %v962_v38 }
 0x135   : > { %7209 = vmatpush3.bf16.msra.mxu1 %v7208_v42  ;;  %v965_v42 = vld [vmem:[#allocation10 + $0x78] sm:$0xff] }
 0x136   : > { %7210 = vmatprep.subr.bf16.mxu1 %v7845_v8  ;;  %7185 = vmatpush3.bf16.msra.mxu0 %v7184_v45  ;;  %v7241_v43 = vpack.c.bf16 %v965_v42, %v964_v41 }
 0x137   : > { %7186 = vmatprep.subr.bf16.mxu0 %v7845_v8 }
 0x139   : > { %7212 = vmatpush3.bf16.msra.mxu1 %v7211_v48  ;;  %v6511_v48 = vld [vmem:[%s9443_s7] ss:$0 sm:$0xff] }
 0x13a   : > { %7213 = vmatprep.subr.bf16.mxu1 %v7845_v8  ;;  %7188 = vmatpush3.bf16.msra.mxu0 %v7187_v52 }
 0x13b   : > { %7189 = vmatprep.subr.bf16.mxu0 %v7845_v8 }
 0x13d   : > { %7215 = vmatpush3.bf16.msra.mxu1 %v7214_v55 }
 0x13e   : > { %7216 = vmatprep.subr.bf16.mxu1 %v7845_v8  ;;  %7191 = vmatpush3.bf16.msra.mxu0 %v7190_v60  ;;  %v1156_v60 = vunpack.c.l.s4 %v7864_v59 }
 0x13f   : > { %7192 = vmatprep.subr.bf16.mxu0 %v7845_v8 }
 0x141   : > { %7218 = vmatpush3.bf16.msra.mxu1 %v7217_v61  ;;  %v1093_v61 = vunpack.c.0.s8 %v1092_v58 }
 0x142   : > { %6906 = vmatprep.subr.mxu1 %v7847_v54 }
 0x1af   : > { %v751_v21 = vpop.xlane.xlu0 %750 }
 0x1b0   : > { %v752_v22 = vmul.f32 0.03125, %v751_v21  ;;  %v7220_v21 = vpack.c.bf16 %v951_v19, %v950_v18 }
 0x1b2   : > { %v753_v23 = vsub.f32 %v716_v0, %v752_v22  ;;  %v7193_v0 = vpack.c.bf16 %v779_v63, %v778_v62 }
 0x1b3   : > { %v723_v24 = vpop.xlane.xlu0 %722 }
 0x1b4   : > { %v724_v25 = vmul.f32 0.03125, %v723_v24  ;;  %v8311_v26 = vsel %vm719_vm1, %v753_v23, 0.0  ;;  %7194 = vmatpush3.bf16.msra.mxu0 %v7193_v0  ;;  %v952_v23 = vld [vmem:[#allocation10 + $0x10] sm:$0xff]  ;;  %v953_v24 = vld [vmem:[#allocation10 + $0x18] sm:$0xff]  ;;  %v1157_v0 = vunpack.c.0.s8 %v1156_v60 }
 0x1b5   : > { %v755_v27 = vmul.f32 %v8311_v26, %v8311_v26  ;;  %7219 = vmatprep.subr.bf16.mxu0 %v7845_v8 }
 0x1b6   : > { %v725_v28 = vsub.f32 %v715_v1, %v724_v25  ;;  %v7223_v25 = vpack.c.bf16 %v953_v24, %v952_v23 }
 0x1b7   : > { %756 = vadd.xlane.f32.xlu1 %v755_v27  ;;  %v955_v27 = vld [vmem:[#allocation10 + $0x28] sm:$0xff] }
 0x1b8   : > { %v8317_v29 = vsel %vm719_vm1, %v725_v28, 0.0 }
 0x1b9   : > { %v729_v30 = vmul.f32 %v8317_v29, %v8317_v29 }
 0x1bb   : > { %730 = vadd.xlane.f32.xlu1 %v729_v30  ;;  %v957_v30 = vld [vmem:[#allocation10 + $0x38] sm:$0xff] }
 0x244   : > { %v757_v1 = vpop.xlane.xlu1 %756 }
 0x245   : > { %v758_v2 = vmul.f32 0.03125, %v757_v1  ;;  %v8453_v1 = vsub.s32 %v1093_v61, %v8297_v4 }
 0x247   : > { %v759_v5 = vadd.f32 1e-05, %v758_v2 }
 0x248   : > { %v731_v6 = vpop.xlane.xlu1 %730 }
 0x249   : > { %7449 = vrsqrt.f32 %v759_v5  ;;  %v732_v7 = vmul.f32 0.03125, %v731_v6 }
 0x24b   : > { %v733_v9 = vadd.f32 1e-05, %v732_v7 }
 0x24d   : > { %7451 = vrsqrt.f32 %v733_v9 }
 0x253   : > { %v7450_v10 = vpop.eup %7449 }
 0x254   : > { %v761_v12 = vmul.f32 %v7450_v10, %v8311_v26  ;;  %v954_v26 = vld [vmem:[#allocation10 + $0x20] sm:$0xff] }
 0x255   : > { %v7226_v28 = vpack.c.bf16 %v955_v27, %v954_v26 }
 0x256   : > { %v762_v14 = vmul.f32 %v6509_v11, %v761_v12 }
 0x257   : > { %v7452_v15 = vpop.eup %7451 }
 0x258   : > { %v763_v16 = vadd.f32 %v6510_v13, %v762_v14  ;;  %v735_v17 = vmul.f32 %v7452_v15, %v8317_v29  ;;  %v956_v29 = vld [vmem:[#allocation10 + $0x30] sm:$0xff] }
 0x259   : > { %v7229_v31 = vpack.c.bf16 %v957_v30, %v956_v29 }
 0x25a   : > { %6869 = vmatmul.mubr.f32.vlgmr.msra.gmra.mrb[0].mxu1 %v763_v16  ;;  %v742_v20 = vmul.f32 %v6509_v11, %v735_v17  ;;  %v8458_v11 = vsub.s32 %v1157_v0, %v8297_v4 }
 0x25b   : > { %6908 = vmatprep.mubr.msk.f32.mxu1 %vm7846_vm2, %v7847_v54 }
 0x25c   : > { %v8346_v22 = vadd.f32 %v6510_v13, %v742_v20 }
 0x25e   : > { %6834 = vmatmul.mubr.f32.vlgmr.msra.gmra.mrb[0].mxu0 %v8346_v22 }
 0x25f   : > { %7221 = vmatpush3.bf16.msra.mxu0 %v7220_v21  ;;  %6903 = vmatprep.mubr.msk.f32.mxu0 %vm7846_vm2, %v7847_v54 }
 0x260   : > { %7222 = vmatprep.subr.bf16.mxu0 %v7845_v8 }
 0x263   : > { %7224 = vmatpush3.bf16.msra.mxu0 %v7223_v25 }
 0x264   : > { %7225 = vmatprep.subr.bf16.mxu0 %v7845_v8 }
 0x267   : > { %7227 = vmatpush3.bf16.msra.mxu0 %v7226_v28 }
 0x268   : > { %7228 = vmatprep.subr.bf16.mxu0 %v7845_v8 }
 0x26b   : > { %7230 = vmatpush3.bf16.msra.mxu0 %v7229_v31 }
 0x26c   : > { %7231 = vmatprep.subr.bf16.mxu0 %v7845_v8 }
 0x26f   : > { %7233 = vmatpush3.bf16.msra.mxu0 %v7232_v34 }
 0x270   : > { %7234 = vmatprep.subr.bf16.mxu0 %v7845_v8 }
 0x273   : > { %7236 = vmatpush3.bf16.msra.mxu0 %v7235_v37 }
 0x274   : > { %7237 = vmatprep.subr.bf16.mxu0 %v7845_v8 }
 0x277   : > { %7239 = vmatpush3.bf16.msra.mxu0 %v7238_v40 }
 0x278   : > { %7240 = vmatprep.subr.bf16.mxu0 %v7845_v8 }
 0x27b   : > { %7242 = vmatpush3.bf16.msra.mxu0 %v7241_v43 }
 0x27c   : > { %6986 = vmatprep.subr.mxu0 %v7847_v54 }
 0x27e   : > { %6904 = vmatmul.mubr.f32.vlgmr.msra.gmra.mrb[2].mxu0 %v763_v16 }
 0x27f   : > { %6988 = vmatprep.mubr.msk.f32.mxu0 %vm7846_vm2, %v7847_v54 }
 0x32d   : > { %v946_v45 = vpop.f32.mrb[0].mxu1 }
 0x32e   : > { %v8364_v46 = vadd.f32 %v6512_v44, %v946_v45  ;;  %v6870_v47 = vpop.f32.mrb[1].mxu1 }
 0x330   : > { %1634 = vrot.lane.b32.xlu0 %v8364_v46, %s7848_s19  ;;  %1637 = vrot.lane.b32.xlu1 %v8364_v46, %s7849_s2 }
 0x331   : > { %v853_v49 = vpop.f32.mrb[0].mxu0 }
 0x332   : > { %v8373_v50 = vadd.f32 %v6511_v48, %v853_v49  ;;  %v6835_v51 = vpop.f32.mrb[1].mxu0 }
 0x334   : > { %1640 = vrot.lane.b32.xlu1 %v8364_v46, %s7850_s12  ;;  %1047 = vrot.lane.b32.xlu0 %v8373_v50, %s7849_s2 }
 0x338   : > { %1643 = vrot.lane.b32.xlu0 %v8364_v46, %s7851_s5  ;;  %1044 = vrot.lane.b32.xlu1 %v8373_v50, %s7848_s19 }
 0x33c   : > { %1649 = vrot.lane.b32.xlu0 %v8364_v46, %s7852_s20  ;;  %1050 = vrot.lane.b32.xlu1 %v8373_v50, %s7850_s12 }
 0x340   : > { %1053 = vrot.lane.b32.xlu0 %v8373_v50, %s7851_s5  ;;  %1646 = vrot.lane.b32.xlu1 %v8364_v46, %s7853_s24 }
 0x344   : > { %1059 = vrot.lane.b32.xlu0 %v8373_v50, %s7852_s20  ;;  %1652 = vrot.lane.b32.xlu1 %v8364_v46, %s7854_s17 }
 0x348   : > { %1655 = vrot.lane.b32.xlu0 %v8364_v46, %s7855_s18  ;;  %1056 = vrot.lane.b32.xlu1 %v8373_v50, %s7853_s24 }
 0x34c   : > { %1661 = vrot.lane.b32.xlu0 %v8364_v46, %s9462_s16  ;;  %1062 = vrot.lane.b32.xlu1 %v8373_v50, %s7854_s17 }
 0x350   : > { %1065 = vrot.lane.b32.xlu0 %v8373_v50, %s7855_s18  ;;  %1658 = vrot.lane.b32.xlu1 %v8364_v46, %s9464_s13 }
 0x351   : > { %v1039_v52 = vpop.f32.mrb[2].mxu0 }
 0x352   : > { %v6905_v53 = vpop.f32.mrb[3].mxu0 }
 0x354   : > { %1071 = vrot.lane.b32.xlu0 %v8373_v50, %s9462_s16  ;;  %1664 = vrot.lane.b32.xlu1 %v8364_v46, %s7858_s15  ;;  %s9511_s16 = sld [smem:[#allocation31_spill]] }
 0x358   : > { %1667 = vrot.lane.b32.xlu0 %v8364_v46, %s7859_s23  ;;  %1068 = vrot.lane.b32.xlu1 %v8373_v50, %s9464_s13  ;;  %s7862_s13 = smov 8  }
 0x35a   : > { %v6513_v55 = vld [vmem:[%s9511_s16] ss:$0 sm:$0xff]  ;;  %s9512_s16 = smov 48  }
 0x35b   : > { %v8430_v56 = vadd.f32 %v6513_v55, %v1039_v52 }
 0x35c   : > { %1673 = vrot.lane.b32.xlu0 %v8364_v46, %s7860_s4  ;;  %1074 = vrot.lane.b32.xlu1 %v8373_v50, %s7858_s15 }
 0x360   : > { %1077 = vrot.lane.b32.xlu0 %v8373_v50, %s7859_s23  ;;  %1670 = vrot.lane.b32.xlu1 %v8364_v46, %s7861_s11 }
 0x364   : > { %1083 = vrot.lane.b32.xlu0 %v8373_v50, %s7860_s4  ;;  %1676 = vrot.lane.b32.xlu1 %v8364_v46, %s7862_s13 }
 0x368   : > { %1080 = vrot.lane.b32.xlu1 %v8373_v50, %s7861_s11  ;;  %2224 = vrot.lane.b32.xlu0 %v8430_v56, %s7848_s19 }
 0x36c   : > { %1086 = vrot.lane.b32.xlu1 %v8373_v50, %s7862_s13  ;;  %2236 = vrot.lane.b32.xlu0 %v8430_v56, %s7853_s24 }
 0x370   : > { %2227 = vrot.lane.b32.xlu1 %v8430_v56, %s7849_s2 }
 0x374   : > { %2230 = vrot.lane.b32.xlu1 %v8430_v56, %s7850_s12 }
 0x378   : > { %2233 = vrot.lane.b32.xlu1 %v8430_v56, %s7851_s5 }
 0x37c   : > { %2239 = vrot.lane.b32.xlu1 %v8430_v56, %s7852_s20 }
 0x380   : > { %2242 = vrot.lane.b32.xlu1 %v8430_v56, %s7854_s17 }
 0x384   : > { %2245 = vrot.lane.b32.xlu1 %v8430_v56, %s7855_s18 }
 0x3a2   : > { %v1638_v62 = vpop.permute.xlu1 %1637  ;;  %v1635_v63 = vpop.permute.xlu0 %1634 }
 0x3a3   : > { %v1679_v2 = vcombine.low %v8364_v46, %v1638_v62  ;;  %v1680_v5 = vcombine.high %v8364_v46, %v1638_v62 }
 0x3a5   : > { %v1687_v12 = vrot.slane %v1679_v2, %v8453_v1  ;;  %v1694_v13 = vrot.slane %v1680_v5, %v8453_v1 }
 0x3a6   : > { %v1641_v6 = vpop.permute.xlu1 %1640  ;;  %v1048_v7 = vpop.permute.xlu0 %1047 }
 0x3a7   : > { %v1695_v9 = vcombine.low %v1635_v63, %v1641_v6  ;;  %v1696_v10 = vcombine.high %v1635_v63, %v1641_v6  ;;  %v1089_v27 = vcombine.low %v8373_v50, %v1048_v7  ;;  %v1090_v28 = vcombine.high %v8373_v50, %v1048_v7 }
 0x3a9   : > { %v1703_v14 = vrot.slane %v1695_v9, %v8453_v1  ;;  %v1710_v15 = vrot.slane %v1696_v10, %v8453_v1  ;;  %v1097_v43 = vrot.slane %v1089_v27, %v8453_v1  ;;  %v1104_v44 = vrot.slane %v1090_v28, %v8453_v1 }
 0x3aa   : > { %v1045_v16 = vpop.permute.xlu1 %1044  ;;  %v1644_v17 = vpop.permute.xlu0 %1643 }
 0x3ab   : > { %v1743_v18 = vcombine.low %v1687_v12, %v1703_v14  ;;  %v1744_v19 = vcombine.high %v1687_v12, %v1703_v14  ;;  %v1759_v20 = vcombine.low %v1694_v13, %v1710_v15  ;;  %v1760_v21 = vcombine.high %v1694_v13, %v1710_v15 }
 0x3ad   : > { %v1751_v23 = vrot.slane %v1743_v18, %v8458_v11  ;;  %v1758_v24 = vrot.slane %v1744_v19, %v8458_v11  ;;  %v1767_v25 = vrot.slane %v1759_v20, %v8458_v11  ;;  %v1774_v26 = vrot.slane %v1760_v21, %v8458_v11 }
 0x3ae   : > { %v1051_v29 = vpop.permute.xlu1 %1050  ;;  %v1650_v30 = vpop.permute.xlu0 %1649 }
 0x3af   : > { %v6530_v31 = vcombine.low %v1751_v23, %v1758_v24  ;;  %v6532_v32 = vcombine.high %v1751_v23, %v1758_v24  ;;  %v6534_v33 = vcombine.low %v1767_v25, %v1774_v26  ;;  %v6536_v34 = vcombine.high %v1767_v25, %v1774_v26 }
 0x3b0   : > { %v1105_v35 = vcombine.low %v1045_v16, %v1051_v29  ;;  %v1106_v36 = vcombine.high %v1045_v16, %v1051_v29  ;;  %v1711_v37 = vcombine.low %v1644_v17, %v1650_v30  ;;  %v1712_v38 = vcombine.high %v1644_v17, %v1650_v30 }
 0x3b1   : > { %v1959_v39 = vrot.slane %v6530_v31, %v8453_v1  ;;  %v1975_v40 = vrot.slane %v6532_v32, %v8453_v1  ;;  %v1991_v41 = vrot.slane %v6534_v33, %v8453_v1  ;;  %v2007_v42 = vrot.slane %v6536_v34, %v8453_v1 }
 0x3b2   : > { %v1113_v45 = vrot.slane %v1105_v35, %v8453_v1  ;;  %v1120_v46 = vrot.slane %v1106_v36, %v8453_v1  ;;  %v1647_v47 = vpop.permute.xlu1 %1646  ;;  %v1054_v48 = vpop.permute.xlu0 %1053  ;;  %v1719_v59 = vrot.slane %v1711_v37, %v8453_v1  ;;  %v1726_v60 = vrot.slane %v1712_v38, %v8453_v1 }
 0x3b3   : > { %v2015_v49 = vcombine.low %v1959_v39, %v1975_v40  ;;  %v2047_v50 = vcombine.low %v1991_v41, %v2007_v42  ;;  %v2016_v57 = vcombine.high %v1959_v39, %v1975_v40  ;;  %v2048_v58 = vcombine.high %v1991_v41, %v2007_v42 }
 0x3b4   : > { %v1153_v51 = vcombine.low %v1097_v43, %v1113_v45  ;;  %v1154_v52 = vcombine.high %v1097_v43, %v1113_v45  ;;  %v1169_v53 = vcombine.low %v1104_v44, %v1120_v46  ;;  %v1170_v55 = vcombine.high %v1104_v44, %v1120_v46 }
 0x3b5   : > { %v8485_v9 = vrot.slane %v2015_v49, %v8458_v11  ;;  %v8488_v10 = vrot.slane %v2047_v50, %v8458_v11  ;;  %v8509_v33 = vrot.slane %v2016_v57, %v8458_v11  ;;  %v8520_v43 = vrot.slane %v2048_v58, %v8458_v11 }
 0x3b6   : > { %v1161_v61 = vrot.slane %v1153_v51, %v8458_v11  ;;  %v1168_v62 = vrot.slane %v1154_v52, %v8458_v11  ;;  %v1177_v63 = vrot.slane %v1169_v53, %v8458_v11  ;;  %v1184_v0 = vrot.slane %v1170_v55, %v8458_v11  ;;  %v1653_v2 = vpop.permute.xlu1 %1652  ;;  %v1060_v5 = vpop.permute.xlu0 %1059 }
 0x3b7   : > { %v1727_v6 = vcombine.low %v1647_v47, %v1653_v2  ;;  %v1728_v7 = vcombine.high %v1647_v47, %v1653_v2  ;;  %v1121_v18 = vcombine.low %v1054_v48, %v1060_v5  ;;  %v1122_v19 = vcombine.high %v1054_v48, %v1060_v5 }
 0x3b8   : > { %v6514_v12 = vcombine.low %v1161_v61, %v1168_v62  ;;  %v6516_v13 = vcombine.high %v1161_v61, %v1168_v62  ;;  %v6518_v14 = vcombine.low %v1177_v63, %v1184_v0  ;;  %v6520_v15 = vcombine.high %v1177_v63, %v1184_v0 }
 0x3b9   : > { %v1735_v16 = vrot.slane %v1727_v6, %v8453_v1  ;;  %v1742_v17 = vrot.slane %v1728_v7, %v8453_v1  ;;  %v1129_v38 = vrot.slane %v1121_v18, %v8453_v1  ;;  %v1136_v39 = vrot.slane %v1122_v19, %v8453_v1 }
 0x3ba   : > { %v8493_v20 = vrot.slane %v6514_v12, %v8453_v1  ;;  %v8496_v21 = vrot.slane %v6516_v13, %v8453_v1  ;;  %v8499_v23 = vrot.slane %v6518_v14, %v8453_v1  ;;  %v8502_v24 = vrot.slane %v6520_v15, %v8453_v1  ;;  %v1057_v25 = vpop.permute.xlu1 %1056  ;;  %v1656_v26 = vpop.permute.xlu0 %1655 }
 0x3bb   : > { %v1775_v27 = vcombine.low %v1719_v59, %v1735_v16  ;;  %v1776_v28 = vcombine.high %v1719_v59, %v1735_v16  ;;  %v1791_v29 = vcombine.low %v1726_v60, %v1742_v17  ;;  %v1792_v30 = vcombine.high %v1726_v60, %v1742_v17 }
 0x3bc   : > { %v1425_v31 = vcombine.low %v8493_v20, %v8496_v21  ;;  %v1457_v32 = vcombine.low %v8499_v23, %v8502_v24  ;;  %v2079_v40 = vcombine.low %v8485_v9, %v8488_v10  ;;  %v1426_v58 = vcombine.high %v8493_v20, %v8496_v21 }
 0x3bd   : > { %v1783_v34 = vrot.slane %v1775_v27, %v8458_v11  ;;  %v1790_v35 = vrot.slane %v1776_v28, %v8458_v11  ;;  %v1799_v36 = vrot.slane %v1791_v29, %v8458_v11  ;;  %v1806_v37 = vrot.slane %v1792_v30, %v8458_v11 }
 0x3be   : > { %v1063_v41 = vpop.permute.xlu1 %1062  ;;  %v1662_v42 = vpop.permute.xlu0 %1661  ;;  %6907 = vmatpush3.xpose.msk.msra.mxu1 %vm2817_vm3, %v2079_v40  ;;  %v1433_v51 = vrot.slane %v1425_v31, %v8458_v11  ;;  %v1465_v57 = vrot.slane %v1457_v32, %v8458_v11  ;;  %v1458_v59 = vcombine.high %v8499_v23, %v8502_v24  ;;  %v2080_v6 = vcombine.high %v8485_v9, %v8488_v10 }
 0x3bf   : > { %v6531_v44 = vcombine.low %v1783_v34, %v1790_v35  ;;  %v6533_v45 = vcombine.high %v1783_v34, %v1790_v35  ;;  %v6535_v46 = vcombine.low %v1799_v36, %v1806_v37  ;;  %v6537_v47 = vcombine.high %v1799_v36, %v1806_v37  ;;  %6911 = vmatprep.subr.mxu1 %v7847_v54 }
 0x3c0   : > { %v1137_v48 = vcombine.low %v1057_v25, %v1063_v41  ;;  %v1138_v49 = vcombine.high %v1057_v25, %v1063_v41  ;;  %v1815_v50 = vcombine.low %v1656_v26, %v1662_v42  ;;  %v1816_v55 = vcombine.high %v1656_v26, %v1662_v42 }
 0x3c1   : > { %v8525_v52 = vrot.slane %v6531_v44, %v8453_v1  ;;  %v8528_v53 = vrot.slane %v6533_v45, %v8453_v1  ;;  %v8541_v0 = vrot.slane %v6535_v46, %v8453_v1  ;;  %v8544_v2 = vrot.slane %v6537_v47, %v8453_v1 }
 0x3c2   : > { %v1145_v60 = vrot.slane %v1137_v48, %v8453_v1  ;;  %v1152_v61 = vrot.slane %v1138_v49, %v8453_v1  ;;  %v1659_v62 = vpop.permute.xlu1 %1658  ;;  %v8538_v63 = vpop.permute.xlu0 %1065  ;;  %v1823_v5 = vrot.slane %v1815_v50, %v8453_v1  ;;  %v1830_v17 = vrot.slane %v1816_v55, %v8453_v1 }
 0x3c3   : > { %v2031_v15 = vcombine.low %v8525_v52, %v8528_v53  ;;  %v2032_v16 = vcombine.high %v8525_v52, %v8528_v53  ;;  %v1489_v18 = vcombine.low %v1433_v51, %v1465_v57  ;;  %v2063_v24 = vcombine.low %v8541_v0, %v8544_v2 }
 0x3c4   : > { %v1185_v7 = vcombine.low %v1129_v38, %v1145_v60  ;;  %v1186_v12 = vcombine.high %v1129_v38, %v1145_v60  ;;  %v1201_v13 = vcombine.low %v1136_v39, %v1152_v61  ;;  %v1202_v14 = vcombine.high %v1136_v39, %v1152_v61 }
 0x3c5   : > { %v2064_v25 = vcombine.high %v8541_v0, %v8544_v2  ;;  %6909 = vmatmul.mubr.msk.f32.vlgmr.msra.gmra.mrb[2].mxu1 %vm2817_vm3, %v1489_v18  ;;  %v1490_v32 = vcombine.high %v1433_v51, %v1465_v57  ;;  %v2081_v38 = vcombine.low %v8509_v33, %v8520_v43  ;;  %v1440_v50 = vrot.slane %v1426_v58, %v8458_v11 }
 0x3c6   : > { %v1193_v19 = vrot.slane %v1185_v7, %v8458_v11  ;;  %v1200_v20 = vrot.slane %v1186_v12, %v8458_v11  ;;  %v1209_v21 = vrot.slane %v1201_v13, %v8458_v11  ;;  %v1216_v9 = vrot.slane %v1202_v14, %v8458_v11  ;;  %v1665_v10 = vpop.permute.xlu1 %1664  ;;  %v1072_v23 = vpop.permute.xlu0 %1071  ;;  %6912 = vmatpush3.xpose.msk.msra.mxu1 %vm2817_vm3, %v2080_v6 }
 0x3c7   : > { %v1831_v26 = vcombine.low %v1659_v62, %v1665_v10  ;;  %v1832_v27 = vcombine.high %v1659_v62, %v1665_v10  ;;  %6913 = vmatprep.mubr.msk.f32.mxu1 %vm7846_vm2, %v7847_v54  ;;  %6916 = vmatprep.subr.mxu1 %v7847_v54  ;;  %v1225_v39 = vcombine.low %v8538_v63, %v1072_v23 }
 0x3c8   : > { %v6515_v28 = vcombine.low %v1193_v19, %v1200_v20  ;;  %v6517_v29 = vcombine.high %v1193_v19, %v1200_v20  ;;  %v6519_v30 = vcombine.low %v1209_v21, %v1216_v9  ;;  %v6521_v31 = vcombine.high %v1209_v21, %v1216_v9 }
 0x3c9   : > { %v1839_v34 = vrot.slane %v1831_v26, %v8453_v1  ;;  %v1846_v35 = vrot.slane %v1832_v27, %v8453_v1  ;;  %6914 = vmatmul.mubr.msk.f32.vlgmr.msra.gmra.mrb[4].mxu1 %vm2817_vm3, %v1490_v32  ;;  %v1226_v49 = vcombine.high %v8538_v63, %v1072_v23  ;;  %v1233_v62 = vrot.slane %v1225_v39, %v8453_v1 }
 0x3ca   : > { %v8570_v36 = vrot.slane %v6515_v28, %v8453_v1  ;;  %v8573_v37 = vrot.slane %v6517_v29, %v8453_v1  ;;  %v1069_v40 = vpop.permute.xlu1 %1068  ;;  %v8579_v46 = vpop.permute.xlu0 %1667  ;;  %v8582_v47 = vrot.slane %v6519_v30, %v8453_v1  ;;  %v8585_v48 = vrot.slane %v6521_v31, %v8453_v1  ;;  %6917 = vmatpush3.xpose.msk.msra.mxu1 %vm2817_vm3, %v2081_v38 }
 0x3cb   : > { %v1879_v41 = vcombine.low %v1823_v5, %v1839_v34  ;;  %v1880_v42 = vcombine.high %v1823_v5, %v1839_v34  ;;  %v1895_v44 = vcombine.low %v1830_v17, %v1846_v35  ;;  %v1896_v45 = vcombine.high %v1830_v17, %v1846_v35  ;;  %6918 = vmatprep.mubr.msk.f32.mxu1 %vm7846_vm2, %v7847_v54 }
 0x3cc   : > { %v1441_v61 = vcombine.low %v8570_v36, %v8573_v37  ;;  %6921 = vmatprep.subr.mxu1 %v7847_v54  ;;  %v1472_v58 = vrot.slane %v1458_v59, %v8458_v11  ;;  %v8602_v63 = vrot.slane %v2031_v15, %v8458_v11  ;;  %v1442_v14 = vcombine.high %v8570_v36, %v8573_v37 }
 0x3cd   : > { %v1887_v51 = vrot.slane %v1879_v41, %v8458_v11  ;;  %v1894_v55 = vrot.slane %v1880_v42, %v8458_v11  ;;  %v1903_v57 = vrot.slane %v1895_v44, %v8458_v11  ;;  %v1910_v60 = vrot.slane %v1896_v45, %v8458_v11 }
 0x3ce   : > { %v1075_v5 = vpop.permute.xlu1 %1074  ;;  %v1491_v17 = vcombine.low %v1440_v50, %v1472_v58  ;;  %v2071_v18 = vrot.slane %v2063_v24, %v8458_v11  ;;  %v1473_v20 = vcombine.low %v8582_v47, %v8585_v48  ;;  %v2082_v21 = vcombine.high %v8509_v33, %v8520_v43  ;;  %v1674_v9 = vpop.permute.xlu0 %1673 }
 0x3cf   : > { %v6538_v6 = vcombine.low %v1887_v51, %v1894_v55  ;;  %v6540_v7 = vcombine.high %v1887_v51, %v1894_v55  ;;  %v6542_v12 = vcombine.low %v1903_v57, %v1910_v60  ;;  %v6544_v13 = vcombine.high %v1903_v57, %v1910_v60 }
 0x3d0   : > { %v1241_v19 = vcombine.low %v1069_v40, %v1075_v5  ;;  %v1474_v10 = vcombine.high %v8582_v47, %v8585_v48  ;;  %v1240_v23 = vrot.slane %v1226_v49, %v8453_v1  ;;  %6919 = vmatmul.mubr.msk.f32.vlgmr.msra.gmra.mrb[6].mxu1 %vm2817_vm3, %v1491_v17  ;;  %v1242_v24 = vcombine.high %v1069_v40, %v1075_v5 }
 0x3d1   : > { %v8610_v59 = vrot.slane %v6538_v6, %v8453_v1  ;;  %v8613_v15 = vrot.slane %v6540_v7, %v8453_v1  ;;  %v8623_v28 = vrot.slane %v6542_v12, %v8453_v1  ;;  %v8626_v29 = vrot.slane %v6544_v13, %v8453_v1  ;;  %6922 = vmatpush3.xpose.msk.msra.mxu1 %vm2817_vm3, %v2082_v21 }
 0x3d2   : > { %v1249_v26 = vrot.slane %v1241_v19, %v8453_v1  ;;  %v1671_v27 = vpop.permute.xlu1 %1670  ;;  %v1492_v33 = vcombine.high %v1440_v50, %v1472_v58  ;;  %v2083_v43 = vcombine.low %v8602_v63, %v2071_v18  ;;  %6923 = vmatprep.mubr.msk.f32.mxu1 %vm7846_vm2, %v7847_v54  ;;  %6926 = vmatprep.subr.mxu1 %v7847_v54  ;;  %v8648_v55 = vpop.permute.xlu0 %1077 }
 0x3d3   : > { %v1256_v30 = vrot.slane %v1242_v24, %v8453_v1  ;;  %v2151_v34 = vcombine.low %v8610_v59, %v8613_v15  ;;  %v1847_v35 = vcombine.low %v8579_v46, %v1674_v9  ;;  %v1449_v38 = vrot.slane %v1441_v61, %v8458_v11 }
 0x3d4   : > { %v1289_v31 = vcombine.low %v1233_v62, %v1249_v26  ;;  %v1290_v32 = vcombine.high %v1233_v62, %v1249_v26  ;;  %v1481_v39 = vrot.slane %v1473_v20, %v8458_v11  ;;  %6924 = vmatmul.mubr.msk.f32.vlgmr.msra.gmra.mrb[8].mxu1 %vm2817_vm3, %v1492_v33  ;;  %v2152_v49 = vcombine.high %v8610_v59, %v8613_v15 }
 0x3d5   : > { %v1305_v42 = vcombine.low %v1240_v23, %v1256_v30  ;;  %v1306_v44 = vcombine.high %v1240_v23, %v1256_v30  ;;  %6927 = vmatpush3.xpose.msk.msra.mxu1 %vm2817_vm3, %v2083_v43  ;;  %v1848_v50 = vcombine.high %v8579_v46, %v1674_v9  ;;  %6928 = vmatprep.mubr.msk.f32.mxu1 %vm7846_vm2, %v7847_v54 }
 0x3d6   : > { %v1297_v40 = vrot.slane %v1289_v31, %v8458_v11  ;;  %v1304_v41 = vrot.slane %v1290_v32, %v8458_v11  ;;  %v1677_v45 = vpop.permute.xlu1 %1676  ;;  %v1493_v51 = vcombine.low %v1449_v38, %v1481_v39  ;;  %6931 = vmatprep.subr.mxu1 %v7847_v54  ;;  %v2084_v58 = vcombine.high %v8602_v63, %v2071_v18  ;;  %v1084_v23 = vpop.permute.xlu0 %1083 }
 0x3d7   : > { %v1313_v57 = vrot.slane %v1305_v42, %v8458_v11  ;;  %v1320_v60 = vrot.slane %v1306_v44, %v8458_v11  ;;  %v2046_v46 = vrot.slane %v2032_v16, %v8458_v11  ;;  %v2078_v5 = vrot.slane %v2064_v25, %v8458_v11 }
 0x3d8   : > { %v6522_v61 = vcombine.low %v1297_v40, %v1304_v41  ;;  %v6524_v62 = vcombine.high %v1297_v40, %v1304_v41  ;;  %v1863_v6 = vcombine.low %v1671_v27, %v1677_v45  ;;  %6929 = vmatmul.mubr.msk.f32.vlgmr.msra.gmra.mrb[10].mxu1 %vm2817_vm3, %v1493_v51  ;;  %v1855_v52 = vrot.slane %v1847_v35, %v8453_v1 }
 0x3d9   : > { %v6526_v13 = vcombine.low %v1313_v57, %v1320_v60  ;;  %v6528_v17 = vcombine.high %v1313_v57, %v1320_v60  ;;  %6932 = vmatpush3.xpose.msk.msra.mxu1 %vm2817_vm3, %v2084_v58  ;;  %6933 = vmatprep.mubr.msk.f32.mxu1 %vm7846_vm2, %v7847_v54  ;;  %v1864_v53 = vcombine.high %v1671_v27, %v1677_v45 }
 0x3da   : > { %v8663_v7 = vrot.slane %v6522_v61, %v8453_v1  ;;  %v8666_v12 = vrot.slane %v6524_v62, %v8453_v1  ;;  %v1081_v63 = vpop.permute.xlu1 %1080  ;;  %v1871_v0 = vrot.slane %v1863_v6, %v8453_v1  ;;  %v2183_v2 = vcombine.low %v8623_v28, %v8626_v29  ;;  %6936 = vmatprep.subr.mxu1 %v7847_v54 }
 0x3db   : > { %v2184_v16 = vcombine.high %v8623_v28, %v8626_v29  ;;  %v1862_v25 = vrot.slane %v1848_v50, %v8453_v1  ;;  %v1494_v18 = vcombine.high %v1449_v38, %v1481_v39  ;;  %v2085_v19 = vcombine.low %v2046_v46, %v2078_v5 }
 0x3dc   : > { %v1878_v20 = vrot.slane %v1864_v53, %v8453_v1  ;;  %v1911_v21 = vcombine.low %v1855_v52, %v1871_v0  ;;  %v1912_v9 = vcombine.high %v1855_v52, %v1871_v0  ;;  %v8682_v24 = vrot.slane %v6526_v13, %v8453_v1 }
 0x3dd   : > { %v8685_v26 = vrot.slane %v6528_v17, %v8453_v1  ;;  %v1561_v27 = vcombine.low %v8663_v7, %v8666_v12  ;;  %6934 = vmatmul.mubr.msk.f32.vlgmr.msra.gmra.mrb[12].mxu1 %vm2817_vm3, %v1494_v18  ;;  %v1456_v33 = vrot.slane %v1442_v14, %v8458_v11  ;;  %v1562_v38 = vcombine.high %v8663_v7, %v8666_v12 }
 0x3de   : > { %v1087_v43 = vpop.permute.xlu1 %1086  ;;  %6937 = vmatpush3.xpose.msk.msra.mxu1 %vm2817_vm3, %v2085_v19  ;;  %v1919_v30 = vrot.slane %v1911_v21, %v8458_v11  ;;  %v1926_v31 = vrot.slane %v1912_v9, %v8458_v11  ;;  %v1927_v32 = vcombine.low %v1862_v25, %v1878_v20  ;;  %v1928_v35 = vcombine.high %v1862_v25, %v1878_v20 }
 0x3df   : > { %v1257_v39 = vcombine.low %v8648_v55, %v1084_v23  ;;  %6938 = vmatprep.mubr.msk.f32.mxu1 %vm7846_vm2, %v7847_v54  ;;  %6941 = vmatprep.subr.mxu1 %v7847_v54  ;;  %v1488_v36 = vrot.slane %v1474_v10, %v8458_v11  ;;  %v1258_v41 = vcombine.high %v8648_v55, %v1084_v23 }
 0x3e0   : > { %v1935_v37 = vrot.slane %v1927_v32, %v8458_v11  ;;  %v1942_v14 = vrot.slane %v1928_v35, %v8458_v11  ;;  %v6539_v40 = vcombine.low %v1919_v30, %v1926_v31  ;;  %v1593_v42 = vcombine.low %v8682_v24, %v8685_v26 }
 0x3e1   : > { %v1594_v44 = vcombine.high %v8682_v24, %v8685_v26  ;;  %v6541_v45 = vcombine.high %v1919_v30, %v1926_v31  ;;  %v1495_v50 = vcombine.low %v1456_v33, %v1488_v36  ;;  %v2086_v47 = vcombine.high %v2046_v46, %v2078_v5 }
 0x3e2   : > { %v2228_v51 = vpop.permute.xlu1 %2227  ;;  %v6543_v57 = vcombine.low %v1935_v37, %v1942_v14  ;;  %v6545_v60 = vcombine.high %v1935_v37, %v1942_v14  ;;  %v2159_v48 = vrot.slane %v2151_v34, %v8458_v11  ;;  %v1265_v10 = vrot.slane %v1257_v39, %v8453_v1  ;;  %v2225_v37 = vpop.permute.xlu0 %2224 }
 0x3e3   : > { %6939 = vmatmul.mubr.msk.f32.vlgmr.msra.gmra.mrb[14].mxu1 %vm2817_vm3, %v1495_v50  ;;  %v2191_v55 = vrot.slane %v2183_v2, %v8458_v11  ;;  %v1273_v61 = vcombine.low %v1081_v63, %v1087_v43  ;;  %v1274_v62 = vcombine.high %v1081_v63, %v1087_v43  ;;  %v8722_v58 = vrot.slane %v6539_v40, %v8453_v1 }
 0x3e4   : > { %v1272_v6 = vrot.slane %v1258_v41, %v8453_v1  ;;  %6942 = vmatpush3.xpose.msk.msra.mxu1 %vm2817_vm3, %v2086_v47  ;;  %v1496_v46 = vcombine.high %v1456_v33, %v1488_v36  ;;  %v1569_v5 = vrot.slane %v1561_v27, %v8458_v11  ;;  %v8728_v34 = vrot.slane %v6541_v45, %v8453_v1 }
 0x3e5   : > { %6943 = vmatprep.mubr.msk.f32.mxu1 %vm7846_vm2, %v7847_v54  ;;  %6946 = vmatprep.subr.mxu1 %v7847_v54  ;;  %v1281_v13 = vrot.slane %v1273_v61, %v8453_v1  ;;  %v1288_v17 = vrot.slane %v1274_v62, %v8453_v1  ;;  %v8736_v52 = vrot.slane %v6543_v57, %v8453_v1 }
 0x3e6   : > { %v2231_v63 = vpop.permute.xlu1 %2230  ;;  %v8739_v53 = vrot.slane %v6545_v60, %v8453_v1  ;;  %v2215_v0 = vcombine.low %v2159_v48, %v2191_v55  ;;  %v1601_v2 = vrot.slane %v1593_v42, %v8458_v11  ;;  %v2216_v9 = vcombine.high %v2159_v48, %v2191_v55 }
 0x3e7   : > { %6944 = vmatmul.mubr.msk.f32.vlgmr.msra.gmra.mrb[16].mxu1 %vm2817_vm3, %v1496_v46  ;;  %v1321_v25 = vcombine.low %v1265_v10, %v1281_v13  ;;  %v1322_v18 = vcombine.high %v1265_v10, %v1281_v13  ;;  %v1337_v19 = vcombine.low %v1272_v6, %v1288_v17  ;;  %v1338_v20 = vcombine.high %v1272_v6, %v1288_v17 }
 0x3e8   : > { %6947 = vmatpush3.xpose.msk.msra.mxu1 %vm2817_vm3, %v2215_v0  ;;  %6948 = vmatprep.mubr.msk.f32.mxu1 %vm7846_vm2, %v7847_v54  ;;  %v1625_v21 = vcombine.low %v1569_v5, %v1601_v2  ;;  %v2269_v23 = vcombine.low %v8430_v56, %v2228_v51  ;;  %v2270_v32 = vcombine.high %v8430_v56, %v2228_v51 }
 0x3e9   : > { %v1329_v27 = vrot.slane %v1321_v25, %v8458_v11  ;;  %v1336_v33 = vrot.slane %v1322_v18, %v8458_v11  ;;  %v1345_v43 = vrot.slane %v1337_v19, %v8458_v11  ;;  %v1352_v30 = vrot.slane %v1338_v20, %v8458_v11  ;;  %6951 = vmatprep.subr.mxu1 %v7847_v54 }
 0x3ea   : > { %v8752_v31 = vpop.permute.xlu1 %2233  ;;  %v2277_v35 = vrot.slane %v2269_v23, %v8453_v1  ;;  %v1626_v39 = vcombine.high %v1569_v5, %v1601_v2  ;;  %v2166_v36 = vrot.slane %v2152_v49, %v8458_v11  ;;  %v2198_v45 = vrot.slane %v2184_v16, %v8458_v11 }
 0x3eb   : > { %v6523_v14 = vcombine.low %v1329_v27, %v1336_v33  ;;  %v6525_v40 = vcombine.high %v1329_v27, %v1336_v33  ;;  %v6527_v41 = vcombine.low %v1345_v43, %v1352_v30  ;;  %v6529_v42 = vcombine.high %v1345_v43, %v1352_v30  ;;  %6949 = vmatmul.mubr.msk.f32.vlgmr.msra.gmra.mrb[18].mxu1 %vm2817_vm3, %v1625_v21 }
 0x3ec   : > { %6952 = vmatpush3.xpose.msk.msra.mxu1 %vm2817_vm3, %v2216_v9  ;;  %6953 = vmatprep.mubr.msk.f32.mxu1 %vm7846_vm2, %v7847_v54  ;;  %v2285_v50 = vcombine.low %v2225_v37, %v2231_v63  ;;  %v2286_v59 = vcombine.high %v2225_v37, %v2231_v63  ;;  %v2284_v60 = vrot.slane %v2270_v32, %v8453_v1 }
 0x3ed   : > { %v8769_v15 = vrot.slane %v6523_v14, %v8453_v1  ;;  %v8772_v49 = vrot.slane %v6525_v40, %v8453_v1  ;;  %v8775_v51 = vrot.slane %v6527_v41, %v8453_v1  ;;  %v8778_v57 = vrot.slane %v6529_v42, %v8453_v1  ;;  %6956 = vmatprep.subr.mxu1 %v7847_v54 }
 0x3ee   : > { %v2217_v28 = vcombine.low %v2166_v36, %v2198_v45  ;;  %v2293_v29 = vrot.slane %v2285_v50, %v8453_v1  ;;  %v2300_v16 = vrot.slane %v2286_v59, %v8453_v1  ;;  %v2167_v47 = vcombine.low %v8722_v58, %v8728_v34  ;;  %v2240_v61 = vpop.permute.xlu1 %2239 }
 0x3ef   : > { %v2199_v48 = vcombine.low %v8736_v52, %v8739_v53  ;;  %v1577_v10 = vcombine.low %v8769_v15, %v8772_v49  ;;  %6954 = vmatmul.mubr.msk.f32.vlgmr.msra.gmra.mrb[20].mxu1 %vm2817_vm3, %v1626_v39  ;;  %v1576_v55 = vrot.slane %v1562_v38, %v8458_v11  ;;  %v1609_v13 = vcombine.low %v8775_v51, %v8778_v57 }
 0x3f0   : > { %6957 = vmatpush3.xpose.msk.msra.mxu1 %vm2817_vm3, %v2217_v28  ;;  %v2333_v62 = vcombine.low %v2277_v35, %v2293_v29  ;;  %v2334_v6 = vcombine.high %v2277_v35, %v2293_v29  ;;  %v2349_v46 = vcombine.low %v2284_v60, %v2300_v16  ;;  %v2350_v5 = vcombine.high %v2284_v60, %v2300_v16 }
 0x3f1   : > { %6958 = vmatprep.mubr.msk.f32.mxu1 %vm7846_vm2, %v7847_v54  ;;  %6961 = vmatprep.subr.mxu1 %v7847_v54  ;;  %v1608_v7 = vrot.slane %v1594_v44, %v8458_v11  ;;  %v2218_v12 = vcombine.high %v2166_v36, %v2198_v45  ;;  %v2175_v25 = vrot.slane %v2167_v47, %v8458_v11 }
 0x3f2   : > { %v2341_v38 = vrot.slane %v2333_v62, %v8458_v11  ;;  %v2348_v17 = vrot.slane %v2334_v6, %v8458_v11  ;;  %v2357_v63 = vrot.slane %v2349_v46, %v8458_v11  ;;  %v2364_v0 = vrot.slane %v2350_v5, %v8458_v11  ;;  %v2243_v33 = vpop.permute.xlu1 %2242 }
 0x3f3   : > { %v1627_v2 = vcombine.low %v1576_v55, %v1608_v7  ;;  %v2207_v18 = vrot.slane %v2199_v48, %v8458_v11  ;;  %v2301_v19 = vcombine.low %v8752_v31, %v2240_v61  ;;  %v2168_v44 = vcombine.high %v8722_v58, %v8728_v34  ;;  %v2237_v34 = vpop.permute.xlu0 %2236 }
 0x3f4   : > { %v6546_v20 = vcombine.low %v2341_v38, %v2348_v17  ;;  %v6548_v21 = vcombine.high %v2341_v38, %v2348_v17  ;;  %v6550_v24 = vcombine.low %v2357_v63, %v2364_v0  ;;  %v6552_v26 = vcombine.high %v2357_v63, %v2364_v0 }
 0x3f5   : > { %v2200_v9 = vcombine.high %v8736_v52, %v8739_v53  ;;  %6959 = vmatmul.mubr.msk.f32.vlgmr.msra.gmra.mrb[22].mxu1 %vm2817_vm3, %v1627_v2  ;;  %v2302_v23 = vcombine.high %v8752_v31, %v2240_v61  ;;  %v1585_v27 = vrot.slane %v1577_v10, %v8458_v11  ;;  %v1578_v43 = vcombine.high %v8769_v15, %v8772_v49 }
 0x3f6   : > { %v2549_v30 = vrot.slane %v6546_v20, %v8453_v1  ;;  %v2565_v32 = vrot.slane %v6548_v21, %v8453_v1  ;;  %6962 = vmatpush3.xpose.msk.msra.mxu1 %vm2817_vm3, %v2218_v12  ;;  %v1628_v58 = vcombine.high %v1576_v55, %v1608_v7  ;;  %v2581_v52 = vrot.slane %v6550_v24, %v8453_v1 }
 0x3f7   : > { %v2597_v53 = vrot.slane %v6552_v26, %v8453_v1  ;;  %6963 = vmatprep.mubr.msk.f32.mxu1 %vm7846_vm2, %v7847_v54  ;;  %6966 = vmatprep.subr.mxu1 %v7847_v54  ;;  %v1617_v31 = vrot.slane %v1609_v13, %v8458_v11  ;;  %v1610_v35 = vcombine.high %v8775_v51, %v8778_v57 }
 0x3f8   : > { %v2219_v39 = vcombine.low %v2175_v25, %v2207_v18  ;;  %v2317_v36 = vcombine.low %v2237_v34, %v2243_v33  ;;  %v2318_v37 = vcombine.high %v2237_v34, %v2243_v33  ;;  %v2309_v14 = vrot.slane %v2301_v19, %v8453_v1 }
 0x3f9   : > { %6964 = vmatmul.mubr.msk.f32.vlgmr.msra.gmra.mrb[24].mxu1 %vm2817_vm3, %v1628_v58  ;;  %v2316_v40 = vrot.slane %v2302_v23, %v8453_v1  ;;  %v1629_v41 = vcombine.low %v1585_v27, %v1617_v31  ;;  %v2220_v42 = vcombine.high %v2175_v25, %v2207_v18  ;;  %v2182_v59 = vrot.slane %v2168_v44, %v8458_v11 }
 0x3fa   : > { %6967 = vmatpush3.xpose.msk.msra.mxu1 %vm2817_vm3, %v2219_v39  ;;  %6968 = vmatprep.mubr.msk.f32.mxu1 %vm7846_vm2, %v7847_v54  ;;  %v2325_v45 = vrot.slane %v2317_v36, %v8453_v1  ;;  %v2332_v50 = vrot.slane %v2318_v37, %v8453_v1  ;;  %v1630_v15 = vcombine.high %v1585_v27, %v1617_v31  ;;  %v8909_v37 = vsel %vm2815_vm0, -inf, %v7847_v54 }
 0x3fb   : > { %6971 = vmatprep.subr.mxu1 %v7847_v54  ;;  %v2214_v49 = vrot.slane %v2200_v9, %v8458_v11  ;;  %v2605_v51 = vcombine.low %v2549_v30, %v2565_v32  ;;  %v2637_v57 = vcombine.low %v2581_v52, %v2597_v53  ;;  %v1592_v47 = vrot.slane %v1578_v43, %v8458_v11 }
 0x3fc   : > { %v2365_v60 = vcombine.low %v2309_v14, %v2325_v45  ;;  %v2366_v28 = vcombine.high %v2309_v14, %v2325_v45  ;;  %v2381_v29 = vcombine.low %v2316_v40, %v2332_v50  ;;  %v2382_v16 = vcombine.high %v2316_v40, %v2332_v50 }
 0x3fd   : > { %6969 = vmatmul.mubr.msk.f32.vlgmr.msra.gmra.mrb[26].mxu1 %vm2817_vm3, %v1629_v41  ;;  %v2613_v48 = vrot.slane %v2605_v51, %v8458_v11  ;;  %v2645_v10 = vrot.slane %v2637_v57, %v8458_v11  ;;  %v2606_v55 = vcombine.high %v2549_v30, %v2565_v32  ;;  %v2221_v5 = vcombine.low %v2182_v59, %v2214_v49 }
 0x3fe   : > { %6972 = vmatpush3.xpose.msk.msra.mxu1 %vm2817_vm3, %v2220_v42  ;;  %v2373_v61 = vrot.slane %v2365_v60, %v8458_v11  ;;  %v2380_v62 = vrot.slane %v2366_v28, %v8458_v11  ;;  %v2389_v6 = vrot.slane %v2381_v29, %v8458_v11  ;;  %v2396_v46 = vrot.slane %v2382_v16, %v8458_v11 }
 0x3ff   : > { %6973 = vmatprep.mubr.msk.f32.mxu1 %vm7846_vm2, %v7847_v54  ;;  %6976 = vmatprep.subr.mxu1 %v7847_v54  ;;  %v1624_v13 = vrot.slane %v1610_v35, %v8458_v11  ;;  %v2669_v7 = vcombine.low %v2613_v48, %v2645_v10  ;;  %v8858_v0 = vrot.slane %v2606_v55, %v8458_v11  ;;  %vm6007_vm0 = vcmask 916480  }
 0x400   : > { %v6547_v12 = vcombine.low %v2373_v61, %v2380_v62  ;;  %v6549_v38 = vcombine.high %v2373_v61, %v2380_v62  ;;  %v6551_v17 = vcombine.low %v2389_v6, %v2396_v46  ;;  %v6553_v63 = vcombine.high %v2389_v6, %v2396_v46 }
 0x401   : > { %6974 = vmatmul.mubr.msk.f32.vlgmr.msra.gmra.mrb[28].mxu1 %vm2817_vm3, %v1630_v15  ;;  %6987 = vmatpush3.msra.mxu0 %v2669_v7  ;;  %v2638_v2 = vcombine.high %v2581_v52, %v2597_v53  ;;  %v1631_v21 = vcombine.low %v1592_v47, %v1624_v13  ;;  %v2222_v24 = vcombine.high %v2182_v59, %v2214_v49 }
 0x402   : > { %v2556_v25 = vrot.slane %v6547_v12, %v8453_v1  ;;  %v2572_v18 = vrot.slane %v6549_v38, %v8453_v1  ;;  %v2588_v19 = vrot.slane %v6551_v17, %v8453_v1  ;;  %v2604_v20 = vrot.slane %v6553_v63, %v8453_v1  ;;  %6977 = vmatpush3.xpose.msk.msra.mxu1 %vm2817_vm3, %v2221_v5 }
 0x403   : > { %6978 = vmatprep.mubr.msk.f32.mxu1 %vm7846_vm2, %v7847_v54  ;;  %6981 = vmatprep.subr.mxu1 %v7847_v54  ;;  %v8869_v26 = vrot.slane %v2638_v2, %v8458_v11  ;;  %v1632_v34 = vcombine.high %v1592_v47, %v1624_v13  ;;  %v2670_v53 = vcombine.high %v2613_v48, %v2645_v10 }
 0x404   : > { %6996 = vmatprep.subr.mxu0 %v7847_v54  ;;  %v2621_v44 = vcombine.low %v2556_v25, %v2572_v18  ;;  %v2653_v9 = vcombine.low %v2588_v19, %v2604_v20  ;;  %v2622_v23 = vcombine.high %v2556_v25, %v2572_v18  ;;  %v2654_v27 = vcombine.high %v2588_v19, %v2604_v20 }
 0x405   : > { %6979 = vmatmul.mubr.msk.f32.vlgmr.msra.gmra.mrb[30].mxu1 %vm2817_vm3, %v1631_v21  ;;  %v2671_v33 = vcombine.low %v8858_v0, %v8869_v26  ;;  %v2672_v43 = vcombine.high %v8858_v0, %v8869_v26 }
 0x406   : > { %6982 = vmatpush3.xpose.msk.msra.mxu1 %vm2817_vm3, %v2222_v24  ;;  %6983 = vmatprep.mubr.msk.f32.mxu1 %vm7846_vm2, %v7847_v54  ;;  %v8881_v30 = vrot.slane %v2621_v44, %v8458_v11  ;;  %v8884_v32 = vrot.slane %v2653_v9, %v8458_v11  ;;  %v8887_v58 = vrot.slane %v2622_v23, %v8458_v11 }
 0x407   : > { %6991 = vmatprep.subr.mxu1 %v7847_v54  ;;  %v8891_v52 = vrot.slane %v2654_v27, %v8458_v11 }
 0x408   : > { %v2673_v31 = vcombine.low %v8881_v30, %v8884_v32  ;;  %v2674_v35 = vcombine.high %v8881_v30, %v8884_v32 }
 0x409   : > { %6984 = vmatmul.mubr.msk.f32.vlgmr.msra.gmra.mrb[32].mxu1 %vm2817_vm3, %v1632_v34  ;;  %v2675_v39 = vcombine.low %v8887_v58, %v8891_v52  ;;  %v2676_v36 = vcombine.high %v8887_v58, %v8891_v52 }
 0x40a   : > { %6992 = vmatpush3.msra.mxu1 %v2670_v53  ;;  %6993 = vmatprep.mubr.msk.f32.mxu1 %vm7846_vm2, %v7847_v54 }
 0x40b   : > { %7001 = vmatprep.subr.mxu1 %v7847_v54 }
 0x498   : > { %v2890_v14 = vpop.f32.mrb[2].mxu1 }
 0x499   : > { %v8912_v40 = vadd.f32 %v2890_v14, %v8909_v37  ;;  %v6910_v41 = vpop.f32.mrb[3].mxu1 }
 0x49b   : > { %v4034_v42 = vsel %vm2817_vm3, %v8912_v40, -inf }
 0x49c   : > { %4035 = vmax.xlane.f32.xlu0 %v4034_v42  ;;  %v2966_v45 = vpop.f32.mrb[4].mxu1 }
 0x49d   : > { %v8917_v50 = vadd.f32 %v2966_v45, %v8909_v37  ;;  %v6915_v59 = vpop.f32.mrb[5].mxu1 }
 0x49f   : > { %v4037_v15 = vsel %vm2817_vm3, %v8917_v50, -inf }
 0x4a0   : > { %4038 = vmax.xlane.f32.xlu1 %v4037_v15 }
 0x4a3   : > { %v3042_v4 = vpop.f32.mrb[6].mxu1 }
 0x4a4   : > { %v8922_v49 = vadd.f32 %v3042_v4, %v8909_v37  ;;  %v6920_v51 = vpop.f32.mrb[7].mxu1 }
 0x4a6   : > { %v4040_v57 = vsel %vm2817_vm3, %v8922_v49, -inf }
 0x4a7   : > { %4041 = vmax.xlane.f32.xlu0 %v4040_v57  ;;  %v3118_v60 = vpop.f32.mrb[8].mxu1 }
 0x4a8   : > { %v8927_v28 = vadd.f32 %v3118_v60, %v8909_v37  ;;  %v6925_v29 = vpop.f32.mrb[9].mxu1 }
 0x4aa   : > { %v4043_v16 = vsel %vm2817_vm3, %v8927_v28, -inf }
 0x4ab   : > { %4044 = vmax.xlane.f32.xlu0 %v4043_v16  ;;  %v3194_v47 = vpop.f32.mrb[10].mxu1 }
 0x4ac   : > { %v8932_v48 = vadd.f32 %v3194_v47, %v8909_v37  ;;  %v6930_v10 = vpop.f32.mrb[11].mxu1 }
 0x4ae   : > { %v4046_v55 = vsel %vm2817_vm3, %v8932_v48, -inf }
 0x4af   : > { %4047 = vmax.xlane.f32.xlu0 %v4046_v55 }
 0x4b0   : > { %v3270_v61 = vpop.f32.mrb[12].mxu1 }
 0x4b1   : > { %v8937_v62 = vadd.f32 %v3270_v61, %v8909_v37  ;;  %v6935_v6 = vpop.f32.mrb[13].mxu1 }
 0x4b3   : > { %v4049_v46 = vsel %vm2817_vm3, %v8937_v62, -inf }
 0x4b4   : > { %4050 = vmax.xlane.f32.xlu1 %v4049_v46 }
 0x4b6   : > { %v3346_v5 = vpop.f32.mrb[14].mxu1 }
 0x4b7   : > { %v8942_v13 = vadd.f32 %v3346_v5, %v8909_v37  ;;  %v6940_v7 = vpop.f32.mrb[15].mxu1 }
 0x4b9   : > { %v4052_v12 = vsel %vm2817_vm3, %v8942_v13, -inf }
 0x4ba   : > { %4053 = vmax.xlane.f32.xlu0 %v4052_v12  ;;  %v3422_v38 = vpop.f32.mrb[16].mxu1  ;;  %v8999_v12 = vpop.permute.xlu1 %2245 }
 0x4bb   : > { %v8947_v17 = vadd.f32 %v3422_v38, %v8909_v37  ;;  %v6945_v63 = vpop.f32.mrb[17].mxu1 }
 0x4bd   : > { %v4055_v2 = vsel %vm2817_vm3, %v8947_v17, -inf }
 0x4be   : > { %4056 = vmax.xlane.f32.xlu1 %v4055_v2  ;;  %v3498_v25 = vpop.f32.mrb[18].mxu1 }
 0x4bf   : > { %v8952_v18 = vadd.f32 %v3498_v25, %v8909_v37  ;;  %v6950_v19 = vpop.f32.mrb[19].mxu1 }
 0x4c1   : > { %v4058_v20 = vsel %vm2817_vm3, %v8952_v18, -inf }
 0x4c2   : > { %4059 = vmax.xlane.f32.xlu0 %v4058_v20  ;;  %v3574_v21 = vpop.f32.mrb[20].mxu1 }
 0x4c3   : > { %v8957_v24 = vadd.f32 %v3574_v21, %v8909_v37  ;;  %v6955_v44 = vpop.f32.mrb[21].mxu1 }
 0x4c5   : > { %v4061_v9 = vsel %vm2817_vm3, %v8957_v24, -inf }
 0x4c6   : > { %4062 = vmax.xlane.f32.xlu1 %v4061_v9 }
 0x4c8   : > { %v3650_v23 = vpop.f32.mrb[22].mxu1 }
 0x4c9   : > { %v8962_v27 = vadd.f32 %v3650_v23, %v8909_v37  ;;  %v6960_v34 = vpop.f32.mrb[23].mxu1 }
 0x4cb   : > { %v4064_v53 = vsel %vm2817_vm3, %v8962_v27, -inf }
 0x4cc   : > { %4065 = vmax.xlane.f32.xlu0 %v4064_v53  ;;  %v3726_v14 = vpop.f32.mrb[24].mxu1 }
 0x4cd   : > { %v8967_v41 = vadd.f32 %v3726_v14, %v8909_v37  ;;  %v6965_v42 = vpop.f32.mrb[25].mxu1 }
 0x4cf   : > { %v4067_v45 = vsel %vm2817_vm3, %v8967_v41, -inf }
 0x4d0   : > { %4068 = vmax.xlane.f32.xlu1 %v4067_v45  ;;  %v3802_v59 = vpop.f32.mrb[26].mxu1 }
 0x4d1   : > { %v8972_v15 = vadd.f32 %v3802_v59, %v8909_v37  ;;  %v6970_v4 = vpop.f32.mrb[27].mxu1 }
 0x4d3   : > { %v4070_v51 = vsel %vm2817_vm3, %v8972_v15, -inf }
 0x4d4   : > { %4071 = vmax.xlane.f32.xlu0 %v4070_v51  ;;  %v3878_v57 = vpop.f32.mrb[28].mxu1 }
 0x4d5   : > { %v8977_v60 = vadd.f32 %v3878_v57, %v8909_v37  ;;  %v6975_v29 = vpop.f32.mrb[29].mxu1 }
 0x4d7   : > { %v4073_v16 = vsel %vm2817_vm3, %v8977_v60, -inf }
 0x4d8   : > { %4074 = vmax.xlane.f32.xlu1 %v4073_v16  ;;  %v3954_v47 = vpop.f32.mrb[30].mxu1 }
 0x4d9   : > { %v8982_v10 = vadd.f32 %v3954_v47, %v8909_v37  ;;  %v6980_v55 = vpop.f32.mrb[31].mxu1 }
 0x4db   : > { %v4076_v61 = vsel %vm2817_vm3, %v8982_v10, -inf }
 0x4dc   : > { %4077 = vmax.xlane.f32.xlu0 %v4076_v61  ;;  %v4030_v6 = vpop.f32.mrb[32].mxu1 }
 0x4dd   : > { %v6985_v46 = vpop.f32.mrb[33].mxu1  ;;  %v8993_v5 = vadd.f32 %v4030_v6, %v8909_v37 }
 0x4df   : > { %v4079_v7 = vsel %vm2817_vm3, %v8993_v5, -inf }
 0x4e9   : > { %2251 = vrot.lane.b32.xlu1 %v8430_v56, %s9512_s16 }
 0x4ed   : > { %2254 = vrot.lane.b32.xlu1 %v8430_v56, %s7858_s15 }
 0x4f2   : > { %2248 = vrot.lane.b32.xlu0 %v8430_v56, %s9513_s10 }
 0x511   : > { %4080 = vmax.xlane.f32.xlu1 %v4079_v7 }
 0x522   : > { %2257 = vrot.lane.b32.xlu1 %v8430_v56, %s7859_s23 }
 0x529   : > { %v4036_v38 = vpop.xlane.xlu0 %4035 }
 0x52a   : > { %v4082_v63 = vsub.f32 %v8912_v40, %v4036_v38 }
 0x52c   : > { %v4098_v2 = vmul.f32 1.442695, %v4082_v63 }
 0x52d   : > { %v4039_v25 = vpop.xlane.xlu1 %4038 }
 0x52e   : > { %7453 = vpow2.f32 %v4098_v2  ;;  %v4083_v19 = vsub.f32 %v8917_v50, %v4039_v25 }
 0x530   : > { %v4100_v20 = vmul.f32 1.442695, %v4083_v19 }
 0x532   : > { %7455 = vpow2.f32 %v4100_v20 }
 0x534   : > { %v4042_v37 = vpop.xlane.xlu0 %4041 }
 0x535   : > { %v4084_v21 = vsub.f32 %v8922_v49, %v4042_v37 }
 0x537   : > { %v4102_v44 = vmul.f32 1.442695, %v4084_v21 }
 0x538   : > { %v9004_v9 = vpop.eup %7453  ;;  %v4045_v23 = vpop.xlane.xlu0 %4044 }
 0x539   : > { %7457 = vpow2.f32 %v4102_v44  ;;  %v4085_v34 = vsub.f32 %v8927_v28, %v4045_v23  ;;  %v4130_v40 = vsel %vm2817_vm3, %v9004_v9, 0.0 }
 0x53a   : > { %4131 = vadd.xlane.f32.xlu0 %v4130_v40 }
 0x53b   : > { %v4104_v53 = vmul.f32 1.442695, %v4085_v34 }
 0x53c   : > { %v4048_v14 = vpop.xlane.xlu0 %4047  ;;  %v9010_v42 = vpop.eup %7455 }
 0x53d   : > { %7459 = vpow2.f32 %v4104_v53  ;;  %v4086_v50 = vsub.f32 %v8932_v48, %v4048_v14  ;;  %v4133_v4 = vsel %vm2817_vm3, %v9010_v42, 0.0 }
 0x53f   : > { %v4106_v45 = vmul.f32 1.442695, %v4086_v50 }
 0x541   : > { %v4051_v49 = vpop.xlane.xlu1 %4050  ;;  %7461 = vpow2.f32 %v4106_v45 }
 0x542   : > { %v4087_v59 = vsub.f32 %v8937_v62, %v4051_v49 }
 0x543   : > { %v9015_v28 = vpop.eup %7457 }
 0x544   : > { %v4108_v51 = vmul.f32 1.442695, %v4087_v59  ;;  %v4136_v57 = vsel %vm2817_vm3, %v9015_v28, 0.0 }
 0x545   : > { %4137 = vadd.xlane.f32.xlu0 %v4136_v57 }
 0x546   : > { %7463 = vpow2.f32 %v4108_v51  ;;  %4134 = vadd.xlane.f32.xlu1 %v4133_v4 }
 0x547   : > { %v4054_v48 = vpop.xlane.xlu0 %4053  ;;  %v9019_v29 = vpop.eup %7459 }
 0x548   : > { %v4088_v16 = vsub.f32 %v8942_v13, %v4054_v48  ;;  %v4139_v62 = vsel %vm2817_vm3, %v9019_v29, 0.0 }
 0x54a   : > { %v4110_v47 = vmul.f32 1.442695, %v4088_v16  ;;  %4140 = vadd.xlane.f32.xlu1 %v4139_v62 }
 0x54b   : > { %v4057_v55 = vpop.xlane.xlu1 %4056  ;;  %v9024_v61 = vpop.eup %7461 }
 0x54c   : > { %7465 = vpow2.f32 %v4110_v47  ;;  %v4089_v6 = vsub.f32 %v8947_v17, %v4057_v55  ;;  %v4142_v46 = vsel %vm2817_vm3, %v9024_v61, 0.0 }
 0x54e   : > { %v4112_v7 = vmul.f32 1.442695, %v4089_v6  ;;  %4143 = vadd.xlane.f32.xlu1 %v4142_v46 }
 0x54f   : > { %v4060_v38 = vpop.xlane.xlu0 %4059 }
 0x550   : > { %v9029_v63 = vpop.eup %7463  ;;  %7467 = vpow2.f32 %v4112_v7  ;;  %v4090_v13 = vsub.f32 %v8952_v18, %v4060_v38 }
 0x551   : > { %v4145_v2 = vsel %vm2817_vm3, %v9029_v63, 0.0 }
 0x552   : > { %v4114_v25 = vmul.f32 1.442695, %v4090_v13  ;;  %4146 = vadd.xlane.f32.xlu0 %v4145_v2 }
 0x553   : > { %v4063_v19 = vpop.xlane.xlu1 %4062 }
 0x554   : > { %7469 = vpow2.f32 %v4114_v25  ;;  %v4091_v17 = vsub.f32 %v8957_v24, %v4063_v19 }
 0x556   : > { %v9035_v20 = vpop.eup %7465  ;;  %v4116_v37 = vmul.f32 1.442695, %v4091_v17 }
 0x557   : > { %v4148_v21 = vsel %vm2817_vm3, %v9035_v20, 0.0 }
 0x558   : > { %7471 = vpow2.f32 %v4116_v37  ;;  %4149 = vadd.xlane.f32.xlu0 %v4148_v21 }
 0x559   : > { %v4066_v44 = vpop.xlane.xlu0 %4065 }
 0x55a   : > { %v9039_v23 = vpop.eup %7467  ;;  %v4092_v18 = vsub.f32 %v8962_v27, %v4066_v44 }
 0x55b   : > { %v4151_v34 = vsel %vm2817_vm3, %v9039_v23, 0.0 }
 0x55c   : > { %v4118_v40 = vmul.f32 1.442695, %v4092_v18  ;;  %4152 = vadd.xlane.f32.xlu0 %v4151_v34 }
 0x55d   : > { %v4069_v53 = vpop.xlane.xlu1 %4068 }
 0x55e   : > { %v9044_v24 = vpop.eup %7469  ;;  %7473 = vpow2.f32 %v4118_v40  ;;  %v4093_v14 = vsub.f32 %v8967_v41, %v4069_v53 }
 0x55f   : > { %v4154_v50 = vsel %vm2817_vm3, %v9044_v24, 0.0 }
 0x560   : > { %v4120_v45 = vmul.f32 1.442695, %v4093_v14  ;;  %4155 = vadd.xlane.f32.xlu1 %v4154_v50 }
 0x561   : > { %v4072_v49 = vpop.xlane.xlu0 %4071 }
 0x562   : > { %v9049_v59 = vpop.eup %7471  ;;  %7475 = vpow2.f32 %v4120_v45  ;;  %v4094_v27 = vsub.f32 %v8972_v15, %v4072_v49 }
 0x563   : > { %v4157_v4 = vsel %vm2817_vm3, %v9049_v59, 0.0 }
 0x564   : > { %v4122_v51 = vmul.f32 1.442695, %v4094_v27  ;;  %4158 = vadd.xlane.f32.xlu0 %v4157_v4 }
 0x565   : > { %v4075_v57 = vpop.xlane.xlu1 %4074 }
 0x566   : > { %7477 = vpow2.f32 %v4122_v51  ;;  %v4095_v41 = vsub.f32 %v8977_v60, %v4075_v57 }
 0x568   : > { %v9055_v48 = vpop.eup %7473  ;;  %v4124_v16 = vmul.f32 1.442695, %v4095_v41 }
 0x569   : > { %v2252_v62 = vpop.permute.xlu1 %2251  ;;  %v4078_v47 = vpop.xlane.xlu0 %4077  ;;  %v4160_v55 = vsel %vm2817_vm3, %v9055_v48, 0.0 }
 0x56a   : > { %7479 = vpow2.f32 %v4124_v16  ;;  %v2405_v15 = vcombine.low %v8999_v12, %v2252_v62  ;;  %v2406_v6 = vcombine.high %v8999_v12, %v2252_v62  ;;  %v4096_v46 = vsub.f32 %v8982_v10, %v4078_v47  ;;  %4161 = vadd.xlane.f32.xlu0 %v4160_v55 }
 0x56c   : > { %v9062_v7 = vpop.eup %7475  ;;  %v4126_v38 = vmul.f32 1.442695, %v4096_v46  ;;  %v2413_v37 = vrot.slane %v2405_v15, %v8453_v1  ;;  %v2420_v12 = vrot.slane %v2406_v6, %v8453_v1 }
 0x56d   : > { %v2255_v60 = vpop.permute.xlu1 %2254  ;;  %v2249_v13 = vpop.permute.xlu0 %2248  ;;  %v4163_v2 = vsel %vm2817_vm3, %v9062_v7, 0.0 }
 0x56e   : > { %7481 = vpow2.f32 %v4126_v38  ;;  %v2421_v25 = vcombine.low %v2249_v13, %v2255_v60  ;;  %v2422_v19 = vcombine.high %v2249_v13, %v2255_v60  ;;  %4164 = vadd.xlane.f32.xlu0 %v4163_v2 }
 0x570   : > { %v9066_v17 = vpop.eup %7477  ;;  %v2429_v10 = vrot.slane %v2421_v25, %v8453_v1  ;;  %v2436_v21 = vrot.slane %v2422_v19, %v8453_v1 }
 0x571   : > { %v4166_v44 = vsel %vm2817_vm3, %v9066_v17, 0.0 }
 0x572   : > { %v2469_v18 = vcombine.low %v2413_v37, %v2429_v10  ;;  %v2470_v34 = vcombine.high %v2413_v37, %v2429_v10  ;;  %v2485_v40 = vcombine.low %v2420_v12, %v2436_v21  ;;  %v2486_v53 = vcombine.high %v2420_v12, %v2436_v21  ;;  %4167 = vadd.xlane.f32.xlu1 %v4166_v44 }
 0x574   : > { %v9074_v14 = vpop.eup %7479  ;;  %v2477_v50 = vrot.slane %v2469_v18, %v8458_v11  ;;  %v2484_v45 = vrot.slane %v2470_v34, %v8458_v11  ;;  %v2493_v49 = vrot.slane %v2485_v40, %v8458_v11  ;;  %v2500_v27 = vrot.slane %v2486_v53, %v8458_v11 }
 0x575   : > { %v4169_v4 = vsel %vm2817_vm3, %v9074_v14, 0.0 }
 0x576   : > { %v6554_v51 = vcombine.low %v2477_v50, %v2484_v45  ;;  %v6556_v57 = vcombine.high %v2477_v50, %v2484_v45  ;;  %v6558_v41 = vcombine.low %v2493_v49, %v2500_v27  ;;  %v6560_v16 = vcombine.high %v2493_v49, %v2500_v27  ;;  %4170 = vadd.xlane.f32.xlu0 %v4169_v4 }
 0x578   : > { %v9082_v62 = vpop.eup %7481  ;;  %v2685_v47 = vrot.slane %v6554_v51, %v8453_v1  ;;  %v2701_v55 = vrot.slane %v6556_v57, %v8453_v1  ;;  %v2717_v15 = vrot.slane %v6558_v41, %v8453_v1  ;;  %v2733_v6 = vrot.slane %v6560_v16, %v8453_v1 }
 0x579   : > { %v4172_v46 = vsel %vm2817_vm3, %v9082_v62, 0.0 }
 0x57a   : > { %4173 = vadd.xlane.f32.xlu0 %v4172_v46  ;;  %v2741_v38 = vcombine.low %v2685_v47, %v2701_v55  ;;  %v2773_v60 = vcombine.low %v2717_v15, %v2733_v6  ;;  %v2742_v13 = vcombine.high %v2685_v47, %v2701_v55  ;;  %v2774_v2 = vcombine.high %v2717_v15, %v2733_v6 }
 0x57c   : > { %v9091_v25 = vrot.slane %v2741_v38, %v8458_v11  ;;  %v9094_v19 = vrot.slane %v2773_v60, %v8458_v11  ;;  %v9097_v37 = vrot.slane %v2742_v13, %v8458_v11  ;;  %v9100_v12 = vrot.slane %v2774_v2, %v8458_v11 }
 0x57e   : > { %v2805_v10 = vcombine.low %v9091_v25, %v9094_v19  ;;  %v2806_v21 = vcombine.high %v9091_v25, %v9094_v19  ;;  %v2807_v44 = vcombine.low %v9097_v37, %v9100_v12  ;;  %v2808_v18 = vcombine.high %v9097_v37, %v9100_v12 }
 0x583   : > { %2263 = vrot.lane.b32.xlu1 %v8430_v56, %s7860_s4 }
 0x587   : > { %2266 = vrot.lane.b32.xlu1 %v8430_v56, %s7862_s13 }
 0x59e   : > { %v4081_v34 = vpop.xlane.xlu1 %4080 }
 0x59f   : > { %v4097_v40 = vsub.f32 %v8993_v5, %v4081_v34 }
 0x5a1   : > { %v4128_v53 = vmul.f32 1.442695, %v4097_v40 }
 0x5a2   : > { %v9121_v27 = vpop.permute.xlu1 %2257 }
 0x5a3   : > { %7483 = vpow2.f32 %v4128_v53 }
 0x5ad   : > { %v9115_v50 = vpop.eup %7483 }
 0x5ae   : > { %v4175_v45 = vsel %vm2817_vm3, %v9115_v50, 0.0 }
 0x5af   : > { %4176 = vadd.xlane.f32.xlu0 %v4175_v45 }
 0x5c5   : > { %2260 = vrot.lane.b32.xlu0 %v8430_v56, %s7861_s11 }
 0x5c7   : > { %v4132_v49 = vpop.xlane.xlu0 %4131 }
 0x5c8   : > { %7485 = vrcp.f32 %v4132_v49 }
 0x5d2   : > { %v7486_v4 = vpop.eup %7485  ;;  %v4138_v57 = vpop.xlane.xlu0 %4137 }
 0x5d3   : > { %v4135_v51 = vpop.xlane.xlu1 %4134  ;;  %v4194_v5 = vmul.f32 %v7486_v4, %v9004_v9 }
 0x5d4   : > { %7487 = vrcp.f32 %v4135_v51 }
 0x5d5   : > { %7489 = vrcp.f32 %v4138_v57  ;;  %6989 = vmatmul.mubr.msk.f32.vlgmr.msra.gmra.mrb[4].mxu0 %vm2817_vm3, %v4194_v5 }
 0x5d6   : > { %6997 = vmatpush3.msra.mxu0 %v2671_v33  ;;  %6998 = vmatprep.mubr.msk.f32.mxu0 %vm7846_vm2, %v7847_v54 }
 0x5d7   : > { %v4141_v41 = vpop.xlane.xlu1 %4140  ;;  %7006 = vmatprep.subr.mxu0 %v7847_v54 }
 0x5d8   : > { %7491 = vrcp.f32 %v4141_v41 }
 0x5db   : > { %v4144_v56 = vpop.xlane.xlu1 %4143 }
 0x5dc   : > { %7493 = vrcp.f32 %v4144_v56 }
 0x5de   : > { %v7488_v16 = vpop.eup %7487 }
 0x5df   : > { %v7490_v47 = vpop.eup %7489  ;;  %v4195_v9 = vmul.f32 %v7488_v16, %v9010_v42  ;;  %v4147_v55 = vpop.xlane.xlu0 %4146 }
 0x5e0   : > { %v4196_v15 = vmul.f32 %v7490_v47, %v9015_v28  ;;  %7495 = vrcp.f32 %v4147_v55 }
 0x5e1   : > { %6994 = vmatmul.mubr.msk.f32.vlgmr.msra.gmra.mrb[34].mxu1 %vm2817_vm3, %v4195_v9 }
 0x5e2   : > { %v7492_v6 = vpop.eup %7491  ;;  %7002 = vmatpush3.msra.mxu1 %v2672_v43  ;;  %6999 = vmatmul.mubr.msk.f32.vlgmr.msra.gmra.mrb[6].mxu0 %vm2817_vm3, %v4196_v15 }
 0x5e3   : > { %v4197_v33 = vmul.f32 %v7492_v6, %v9019_v29  ;;  %7007 = vmatpush3.msra.mxu0 %v2673_v31  ;;  %7003 = vmatprep.mubr.msk.f32.mxu1 %vm7846_vm2, %v7847_v54 }
 0x5e4   : > { %7011 = vmatprep.subr.mxu1 %v7847_v54  ;;  %7008 = vmatprep.mubr.msk.f32.mxu0 %vm7846_vm2, %v7847_v54 }
 0x5e5   : > { %v4150_v42 = vpop.xlane.xlu0 %4149  ;;  %7004 = vmatmul.mubr.msk.f32.vlgmr.msra.gmra.mrb[36].mxu1 %vm2817_vm3, %v4197_v33  ;;  %7016 = vmatprep.subr.mxu0 %v7847_v54 }
 0x5e6   : > { %v7494_v0 = vpop.eup %7493  ;;  %7497 = vrcp.f32 %v4150_v42  ;;  %7012 = vmatpush3.msra.mxu1 %v2674_v35  ;;  %7013 = vmatprep.mubr.msk.f32.mxu1 %vm7846_vm2, %v7847_v54 }
 0x5e7   : > { %v4198_v26 = vmul.f32 %v7494_v0, %v9024_v61  ;;  %7021 = vmatprep.subr.mxu1 %v7847_v54 }
 0x5e9   : > { %v4153_v43 = vpop.xlane.xlu0 %4152  ;;  %7009 = vmatmul.mubr.msk.f32.vlgmr.msra.gmra.mrb[8].mxu0 %vm2817_vm3, %v4198_v26 }
 0x5ea   : > { %v7496_v31 = vpop.eup %7495  ;;  %7499 = vrcp.f32 %v4153_v43  ;;  %7017 = vmatpush3.msra.mxu0 %v2675_v39  ;;  %7018 = vmatprep.mubr.msk.f32.mxu0 %vm7846_vm2, %v7847_v54 }
 0x5eb   : > { %v4199_v30 = vmul.f32 %v7496_v31, %v9029_v63  ;;  %7026 = vmatprep.subr.mxu0 %v7847_v54 }
 0x5ed   : > { %v4156_v32 = vpop.xlane.xlu1 %4155  ;;  %7014 = vmatmul.mubr.msk.f32.vlgmr.msra.gmra.mrb[38].mxu1 %vm2817_vm3, %v4199_v30 }
 0x5ee   : > { %7501 = vrcp.f32 %v4156_v32  ;;  %7022 = vmatpush3.msra.mxu1 %v2676_v36  ;;  %7023 = vmatprep.mubr.msk.f32.mxu1 %vm7846_vm2, %v7847_v54 }
 0x5ef   : > { %7031 = vmatprep.subr.mxu1 %v7847_v54 }
 0x5f0   : > { %v7498_v35 = vpop.eup %7497 }
 0x5f1   : > { %v4200_v39 = vmul.f32 %v7498_v35, %v9035_v20  ;;  %v4159_v28 = vpop.xlane.xlu0 %4158 }
 0x5f2   : > { %7503 = vrcp.f32 %v4159_v28 }
 0x5f3   : > { %7019 = vmatmul.mubr.msk.f32.vlgmr.msra.gmra.mrb[10].mxu0 %vm2817_vm3, %v4200_v39 }
 0x5f4   : > { %v7500_v29 = vpop.eup %7499  ;;  %7027 = vmatpush3.msra.mxu0 %v2805_v10  ;;  %7028 = vmatprep.mubr.msk.f32.mxu0 %vm7846_vm2, %v7847_v54 }
 0x5f5   : > { %v4201_v58 = vmul.f32 %v7500_v29, %v9039_v23  ;;  %7036 = vmatprep.subr.mxu0 %v7847_v54 }
 0x5f7   : > { %v4162_v52 = vpop.xlane.xlu0 %4161  ;;  %7024 = vmatmul.mubr.msk.f32.vlgmr.msra.gmra.mrb[40].mxu1 %vm2817_vm3, %v4201_v58 }
 0x5f8   : > { %v7502_v36 = vpop.eup %7501  ;;  %7505 = vrcp.f32 %v4162_v52  ;;  %7032 = vmatpush3.msra.mxu1 %v2806_v21  ;;  %7033 = vmatprep.mubr.msk.f32.mxu1 %vm7846_vm2, %v7847_v54 }
 0x5f9   : > { %v4202_v61 = vmul.f32 %v7502_v36, %v9044_v24  ;;  %7041 = vmatprep.subr.mxu1 %v7847_v54 }
 0x5fb   : > { %v4165_v63 = vpop.xlane.xlu0 %4164  ;;  %7029 = vmatmul.mubr.msk.f32.vlgmr.msra.gmra.mrb[12].mxu0 %vm2817_vm3, %v4202_v61 }
 0x5fc   : > { %v7504_v20 = vpop.eup %7503  ;;  %7507 = vrcp.f32 %v4165_v63  ;;  %7037 = vmatpush3.msra.mxu0 %v2807_v44  ;;  %7038 = vmatprep.mubr.msk.f32.mxu0 %vm7846_vm2, %v7847_v54 }
 0x5fd   : > { %v4203_v23 = vmul.f32 %v7504_v20, %v9049_v59  ;;  %7046 = vmatprep.subr.mxu0 %v7847_v54 }
 0x5ff   : > { %7034 = vmatmul.mubr.msk.f32.vlgmr.msra.gmra.mrb[42].mxu1 %vm2817_vm3, %v4203_v23  ;;  %v4168_v13 = vpop.xlane.xlu1 %4167 }
 0x600   : > { %7042 = vmatpush3.msra.mxu1 %v2808_v18  ;;  %7043 = vmatprep.mubr.msk.f32.mxu1 %vm7846_vm2, %v7847_v54  ;;  %7509 = vrcp.f32 %v4168_v13 }
 0x601   : > { %7051 = vmatprep.subr.mxu1 %v7847_v54 }
 0x602   : > { %v7506_v24 = vpop.eup %7505 }
 0x603   : > { %v4204_v46 = vmul.f32 %v7506_v24, %v9055_v48  ;;  %v4171_v60 = vpop.xlane.xlu0 %4170  ;;  %v2264_v25 = vpop.permute.xlu1 %2263 }
 0x604   : > { %v2437_v48 = vcombine.low %v9121_v27, %v2264_v25  ;;  %v2438_v37 = vcombine.high %v9121_v27, %v2264_v25  ;;  %7511 = vrcp.f32 %v4171_v60 }
 0x605   : > { %7039 = vmatmul.mubr.msk.f32.vlgmr.msra.gmra.mrb[14].mxu0 %vm2817_vm3, %v4204_v46 }
 0x606   : > { %v7508_v38 = vpop.eup %7507  ;;  %7048 = vmatprep.mubr.msk.f32.mxu0 %vm7846_vm2, %v7847_v54  ;;  %v2452_v18 = vrot.slane %v2438_v37, %v8453_v1 }
 0x607   : > { %v4205_v59 = vmul.f32 %v7508_v38, %v9062_v7  ;;  %v4174_v2 = vpop.xlane.xlu0 %4173  ;;  %v2267_v12 = vpop.permute.xlu1 %2266  ;;  %v2445_v7 = vrot.slane %v2437_v48, %v8453_v1 }
 0x608   : > { %7513 = vrcp.f32 %v4174_v2 }
 0x609   : > { %7044 = vmatmul.mubr.msk.f32.vlgmr.msra.gmra.mrb[44].mxu1 %vm2817_vm3, %v4205_v59 }
 0x60a   : > { %7053 = vmatprep.mubr.msk.f32.mxu1 %vm7846_vm2, %v7847_v54  ;;  %v7510_v33 = vpop.eup %7509 }
 0x60b   : > { %v4206_v36 = vmul.f32 %v7510_v33, %v9066_v17 }
 0x60e   : > { %v7512_v31 = vpop.eup %7511 }
 0x60f   : > { %v4207_v61 = vmul.f32 %v7512_v31, %v9074_v14 }
 0x612   : > { %v7514_v35 = vpop.eup %7513 }
 0x613   : > { %v4208_v23 = vmul.f32 %v7514_v35, %v9082_v62 }
 0x63c   : > { %v4177_v19 = vpop.xlane.xlu0 %4176 }
 0x63d   : > { %7515 = vrcp.f32 %v4177_v19 }
 0x640   : > { %v2261_v10 = vpop.permute.xlu0 %2260 }
 0x641   : > { %v2453_v21 = vcombine.low %v2261_v10, %v2267_v12  ;;  %v2454_v44 = vcombine.high %v2261_v10, %v2267_v12 }
 0x643   : > { %v2461_v34 = vrot.slane %v2453_v21, %v8453_v1  ;;  %v2468_v40 = vrot.slane %v2454_v44, %v8453_v1 }
 0x645   : > { %v2501_v53 = vcombine.low %v2445_v7, %v2461_v34  ;;  %v2502_v45 = vcombine.high %v2445_v7, %v2461_v34  ;;  %v2517_v49 = vcombine.low %v2452_v18, %v2468_v40  ;;  %v2518_v4 = vcombine.high %v2452_v18, %v2468_v40 }
 0x647   : > { %v2509_v27 = vrot.slane %v2501_v53, %v8458_v11  ;;  %v2516_v51 = vrot.slane %v2502_v45, %v8458_v11  ;;  %v2525_v57 = vrot.slane %v2517_v49, %v8458_v11  ;;  %v2532_v5 = vrot.slane %v2518_v4, %v8458_v11  ;;  %v7516_v52 = vpop.eup %7515 }
 0x648   : > { %v4209_v24 = vmul.f32 %v7516_v52, %v9115_v50 }
 0x649   : > { %v6555_v41 = vcombine.low %v2509_v27, %v2516_v51  ;;  %v6557_v56 = vcombine.high %v2509_v27, %v2516_v51  ;;  %v6559_v16 = vcombine.low %v2525_v57, %v2532_v5  ;;  %v6561_v47 = vcombine.high %v2525_v57, %v2532_v5 }
 0x64b   : > { %v2692_v9 = vrot.slane %v6555_v41, %v8453_v1  ;;  %v2708_v55 = vrot.slane %v6557_v56, %v8453_v1  ;;  %v2724_v15 = vrot.slane %v6559_v16, %v8453_v1  ;;  %v2740_v6 = vrot.slane %v6561_v47, %v8453_v1 }
 0x64d   : > { %v2757_v42 = vcombine.low %v2692_v9, %v2708_v55  ;;  %v2789_v0 = vcombine.low %v2724_v15, %v2740_v6  ;;  %v2758_v26 = vcombine.high %v2692_v9, %v2708_v55  ;;  %v2790_v43 = vcombine.high %v2724_v15, %v2740_v6 }
 0x64f   : > { %v2765_v30 = vrot.slane %v2757_v42, %v8458_v11  ;;  %v2797_v32 = vrot.slane %v2789_v0, %v8458_v11  ;;  %v2772_v39 = vrot.slane %v2758_v26, %v8458_v11  ;;  %v2804_v28 = vrot.slane %v2790_v43, %v8458_v11 }
 0x651   : > { %v2809_v29 = vcombine.low %v2765_v30, %v2797_v32  ;;  %v2810_v58 = vcombine.high %v2765_v30, %v2797_v32  ;;  %v2811_v63 = vcombine.low %v2772_v39, %v2804_v28  ;;  %v2812_v20 = vcombine.high %v2772_v39, %v2804_v28 }
 0x653   : > { %7047 = vmatpush3.msra.mxu0 %v2809_v29  ;;  %7052 = vmatpush3.msra.mxu1 %v2810_v58 }
 0x654   : > { %7049 = vmatmul.mubr.msk.f32.vlgmr.msra.gmra.mrb[16].mxu0 %vm2817_vm3, %v4206_v36  ;;  %7054 = vmatmul.mubr.msk.f32.vlgmr.msra.gmra.mrb[46].mxu1 %vm2817_vm3, %v4207_v61 }
 0x655   : > { %7056 = vmatprep.subr.mxu0 %v7847_v54  ;;  %7061 = vmatprep.subr.mxu1 %v7847_v54 }
 0x656   : > { %7057 = vmatpush3.msra.mxu0 %v2811_v63  ;;  %7062 = vmatpush3.msra.mxu1 %v2812_v20 }
 0x657   : > { %7058 = vmatprep.mubr.msk.f32.mxu0 %vm7846_vm2, %v7847_v54  ;;  %7063 = vmatprep.mubr.msk.f32.mxu1 %vm7846_vm2, %v7847_v54 }
 0x658   : > { %7059 = vmatmul.mubr.msk.f32.vlgmr.msra.gmra.mrb[18].mxu0 %vm2817_vm3, %v4208_v23  ;;  %7064 = vmatmul.mubr.msk.f32.vlgmr.msra.gmra.mrb[48].mxu1 %vm2817_vm3, %v4209_v24 }
 0x659   : > { %7243 = vmatprep.subr.bf16.mxu0 %v7845_v8  ;;  %7098 = vmatprep.mubr.msk.f32.mxu0 %vm7846_vm2, %v7847_v54 }
 0x65a   : > { %7267 = vmatprep.subr.bf16.mxu1 %v7845_v8  ;;  %7133 = vmatprep.mubr.msk.f32.mxu1 %vm7846_vm2, %v7847_v54 }
 0x6a8   : > { %v4279_v17 = vpop.f32.mrb[4].mxu0 }
 0x6a9   : > { %v6990_v14 = vpop.f32.mrb[5].mxu0 }
 0x6b4   : > { %v4352_v62 = vpop.f32.mrb[34].mxu1 }
 0x6b5   : > { %v6995_v50 = vpop.f32.mrb[35].mxu1  ;;  %v4425_v46 = vpop.f32.mrb[6].mxu0 }
 0x6b6   : > { %v5378_v38 = vcombine.low %v4279_v17, %v4425_v46  ;;  %v5379_v59 = vcombine.high %v4279_v17, %v4425_v46  ;;  %v7000_v60 = vpop.f32.mrb[7].mxu0 }
 0x6b8   : > { %v4498_v13 = vpop.f32.mrb[36].mxu1  ;;  %v5386_v48 = vrot.slane %v5378_v38, %v8453_v1  ;;  %v5393_v37 = vrot.slane %v5379_v59, %v8453_v1 }
 0x6b9   : > { %v5394_v2 = vcombine.low %v4352_v62, %v4498_v13  ;;  %v5395_v25 = vcombine.high %v4352_v62, %v4498_v13  ;;  %v7005_v19 = vpop.f32.mrb[37].mxu1 }
 0x6bb   : > { %v5402_v12 = vrot.slane %v5394_v2, %v8453_v1  ;;  %v5409_v10 = vrot.slane %v5395_v25, %v8453_v1 }
 0x6bc   : > { %v4571_v21 = vpop.f32.mrb[8].mxu0 }
 0x6bd   : > { %v5442_v44 = vcombine.low %v5386_v48, %v5402_v12  ;;  %v5443_v7 = vcombine.high %v5386_v48, %v5402_v12  ;;  %v5458_v18 = vcombine.low %v5393_v37, %v5409_v10  ;;  %v5459_v34 = vcombine.high %v5393_v37, %v5409_v10  ;;  %v7010_v40 = vpop.f32.mrb[9].mxu0 }
 0x6bf   : > { %v5450_v53 = vrot.slane %v5442_v44, %v8458_v11  ;;  %v5457_v45 = vrot.slane %v5443_v7, %v8458_v11  ;;  %v5466_v49 = vrot.slane %v5458_v18, %v8458_v11  ;;  %v5473_v4 = vrot.slane %v5459_v34, %v8458_v11 }
 0x6c0   : > { %v4644_v27 = vpop.f32.mrb[38].mxu1 }
 0x6c1   : > { %v6610_v51 = vcombine.low %v5450_v53, %v5457_v45  ;;  %v6612_v57 = vcombine.high %v5450_v53, %v5457_v45  ;;  %v6614_v5 = vcombine.low %v5466_v49, %v5473_v4  ;;  %v6616_v41 = vcombine.high %v5466_v49, %v5473_v4  ;;  %v7015_v56 = vpop.f32.mrb[39].mxu1 }
 0x6c3   : > { %v5658_v16 = vrot.slane %v6610_v51, %v8453_v1  ;;  %v5674_v47 = vrot.slane %v6612_v57, %v8453_v1  ;;  %v5690_v9 = vrot.slane %v6614_v5, %v8453_v1  ;;  %v5706_v55 = vrot.slane %v6616_v41, %v8453_v1 }
 0x6c5   : > { %v5715_v15 = vcombine.high %v5658_v16, %v5674_v47  ;;  %v5747_v6 = vcombine.high %v5690_v9, %v5706_v55  ;;  %v5714_v33 = vcombine.low %v5658_v16, %v5674_v47  ;;  %v5746_v42 = vcombine.low %v5690_v9, %v5706_v55 }
 0x6c6   : > { %v4717_v0 = vpop.f32.mrb[10].mxu0 }
 0x6c7   : > { %v5410_v26 = vcombine.low %v4571_v21, %v4717_v0  ;;  %v5411_v43 = vcombine.high %v4571_v21, %v4717_v0  ;;  %v7020_v31 = vpop.f32.mrb[11].mxu0  ;;  %v5729_v30 = vrot.slane %v5715_v15, %v8458_v11  ;;  %v5761_v32 = vrot.slane %v5747_v6, %v8458_v11 }
 0x6c8   : > { %v9264_v35 = vrot.slane %v5714_v33, %v8458_v11  ;;  %v9267_v39 = vrot.slane %v5746_v42, %v8458_v11 }
 0x6c9   : > { %v5780_v28 = vcombine.low %v5729_v30, %v5761_v32  ;;  %v5781_v29 = vcombine.high %v5729_v30, %v5761_v32  ;;  %v5418_v23 = vrot.slane %v5410_v26, %v8453_v1  ;;  %v5425_v24 = vrot.slane %v5411_v43, %v8453_v1 }
 0x6ca   : > { %v4790_v58 = vpop.f32.mrb[40].mxu1  ;;  %v5779_v52 = vcombine.high %v9264_v35, %v9267_v39  ;;  %v5778_v36 = vcombine.low %v9264_v35, %v9267_v39 }
 0x6cb   : > { %v5426_v61 = vcombine.low %v4644_v27, %v4790_v58  ;;  %v5427_v63 = vcombine.high %v4644_v27, %v4790_v58  ;;  %v7025_v20 = vpop.f32.mrb[41].mxu1  ;;  %5927 = vrot.lane.b32.xlu0 %v5780_v28, %s7860_s4  ;;  %s9517_s4 = sld [smem:[#allocation37_spill]] }
 0x6cc   : > { %5923 = vrot.lane.b32.xlu1 %v5779_v52, %s7862_s13  ;;  %s9516_s13 = sld [smem:[#allocation35_spill]] }
 0x6cd   : > { %v5434_v17 = vrot.slane %v5426_v61, %v8453_v1  ;;  %v5441_v14 = vrot.slane %v5427_v63, %v8453_v1 }
 0x6ce   : > { %v4863_v62 = vpop.f32.mrb[12].mxu0 }
 0x6cf   : > { %v5474_v50 = vcombine.low %v5418_v23, %v5434_v17  ;;  %v5475_v46 = vcombine.high %v5418_v23, %v5434_v17  ;;  %v5490_v38 = vcombine.low %v5425_v24, %v5441_v14  ;;  %v5491_v59 = vcombine.high %v5425_v24, %v5441_v14  ;;  %v7030_v60 = vpop.f32.mrb[13].mxu0 }
 0x6d0   : > { %5931 = vrot.lane.b32.xlu1 %v5781_v29, %s7861_s11 }
 0x6d1   : > { %v5482_v13 = vrot.slane %v5474_v50, %v8458_v11  ;;  %v5489_v2 = vrot.slane %v5475_v46, %v8458_v11  ;;  %v5498_v25 = vrot.slane %v5490_v38, %v8458_v11  ;;  %v5505_v19 = vrot.slane %v5491_v59, %v8458_v11  ;;  %v6011_v50 = vld [vmem:[#allocation11] sm:$0xff]  ;;  %v6012_v46 = vld [vmem:[#allocation11 + $0x8] sm:$0xff] }
 0x6d2   : > { %v4936_v48 = vpop.f32.mrb[42].mxu1 }
 0x6d3   : > { %v6611_v37 = vcombine.low %v5482_v13, %v5489_v2  ;;  %v6613_v12 = vcombine.high %v5482_v13, %v5489_v2  ;;  %v6615_v10 = vcombine.low %v5498_v25, %v5505_v19  ;;  %v6617_v21 = vcombine.high %v5498_v25, %v5505_v19  ;;  %v7035_v44 = vpop.f32.mrb[43].mxu1  ;;  %v6013_v2 = vld [vmem:[#allocation11 + $0x10] sm:$0xff]  ;;  %v6014_v25 = vld [vmem:[#allocation11 + $0x18] sm:$0xff] }
 0x6d4   : > { %v7244_v19 = vpack.c.bf16 %v6012_v46, %v6011_v50 }
 0x6d5   : > { %v5665_v7 = vrot.slane %v6611_v37, %v8453_v1  ;;  %v5681_v18 = vrot.slane %v6613_v12, %v8453_v1  ;;  %v5697_v34 = vrot.slane %v6615_v10, %v8453_v1  ;;  %v5713_v40 = vrot.slane %v6617_v21, %v8453_v1 }
 0x6d6   : > { %7245 = vmatpush3.bf16.msra.mxu0 %v7244_v19  ;;  %v7247_v21 = vpack.c.bf16 %v6014_v25, %v6013_v2 }
 0x6d7   : > { %v5730_v53 = vcombine.low %v5665_v7, %v5681_v18  ;;  %v5762_v45 = vcombine.low %v5697_v34, %v5713_v40  ;;  %v5731_v49 = vcombine.high %v5665_v7, %v5681_v18  ;;  %v5763_v4 = vcombine.high %v5697_v34, %v5713_v40  ;;  %7246 = vmatprep.subr.bf16.mxu0 %v7845_v8  ;;  %v6015_v40 = vld [vmem:[#allocation11 + $0x20] sm:$0xff] }
 0x6d8   : > { %v5009_v27 = vpop.f32.mrb[14].mxu0 }
 0x6d9   : > { %v5514_v51 = vcombine.low %v4863_v62, %v5009_v27  ;;  %v5515_v57 = vcombine.high %v4863_v62, %v5009_v27  ;;  %v7040_v5 = vpop.f32.mrb[15].mxu0  ;;  %v5738_v41 = vrot.slane %v5730_v53, %v8458_v11  ;;  %v5770_v56 = vrot.slane %v5762_v45, %v8458_v11  ;;  %v6016_v53 = vld [vmem:[#allocation11 + $0x28] sm:$0xff] }
 0x6da   : > { %v5745_v16 = vrot.slane %v5731_v49, %v8458_v11  ;;  %v5777_v47 = vrot.slane %v5763_v4, %v8458_v11  ;;  %7248 = vmatpush3.bf16.msra.mxu0 %v7247_v21  ;;  %v6018_v5 = vld [vmem:[#allocation11 + $0x38] sm:$0xff] }
 0x6db   : > { %v5783_v9 = vcombine.high %v5738_v41, %v5770_v56  ;;  %v5782_v55 = vcombine.low %v5738_v41, %v5770_v56  ;;  %v5522_v43 = vrot.slane %v5514_v51, %v8453_v1  ;;  %v5529_v31 = vrot.slane %v5515_v57, %v8453_v1  ;;  %v6017_v57 = vld [vmem:[#allocation11 + $0x30] sm:$0xff]  ;;  %7249 = vmatprep.subr.bf16.mxu0 %v7845_v8  ;;  %v6019_v56 = vld [vmem:[#allocation11 + $0x40] sm:$0xff] }
 0x6dc   : > { %v5082_v15 = vpop.f32.mrb[44].mxu1  ;;  %v5785_v6 = vcombine.high %v5745_v16, %v5777_v47  ;;  %v5784_v33 = vcombine.low %v5745_v16, %v5777_v47  ;;  %v7250_v51 = vpack.c.bf16 %v6016_v53, %v6015_v40  ;;  %v7253_v41 = vpack.c.bf16 %v6018_v5, %v6017_v57  ;;  %v6020_v16 = vld [vmem:[#allocation11 + $0x48] sm:$0xff] }
 0x6dd   : > { %v5530_v42 = vcombine.low %v4936_v48, %v5082_v15  ;;  %v5531_v0 = vcombine.high %v4936_v48, %v5082_v15  ;;  %v7045_v26 = vpop.f32.mrb[45].mxu1  ;;  %5939 = vrot.lane.b32.xlu1 %v5783_v9, %s7858_s15  ;;  %5935 = vrot.lane.b32.xlu0 %v5782_v55, %s7859_s23  ;;  %v7256_v47 = vpack.c.bf16 %v6020_v16, %v6019_v56  ;;  %v6021_v9 = vld [vmem:[#allocation11 + $0x50] sm:$0xff]  ;;  %v6022_v55 = vld [vmem:[#allocation11 + $0x58] sm:$0xff] }
 0x6de   : > { %7251 = vmatpush3.bf16.msra.mxu0 %v7250_v51  ;;  %v7259_v15 = vpack.c.bf16 %v6022_v55, %v6021_v9 }
 0x6df   : > { %v5538_v30 = vrot.slane %v5530_v42, %v8453_v1  ;;  %v5545_v32 = vrot.slane %v5531_v0, %v8453_v1  ;;  %7252 = vmatprep.subr.bf16.mxu0 %v7845_v8 }
 0x6e1   : > { %v5578_v28 = vcombine.low %v5522_v43, %v5538_v30  ;;  %v5579_v29 = vcombine.high %v5522_v43, %v5538_v30  ;;  %v5594_v58 = vcombine.low %v5529_v31, %v5545_v32  ;;  %v5595_v52 = vcombine.high %v5529_v31, %v5545_v32  ;;  %5947 = vrot.lane.b32.xlu1 %v5785_v6, %s9513_s10  ;;  %v6023_v6 = vld [vmem:[#allocation11 + $0x60] sm:$0xff]  ;;  %s6632_s10 = sshll.u32 %s7982_s1, 7  ;;  %s7865_s1 = smov [#allocation16]  }
 0x6e2   : > { %5943 = vrot.lane.b32.xlu0 %v5784_v33, %s9512_s16  ;;  %7254 = vmatpush3.bf16.msra.mxu0 %v7253_v41  ;;  %v6024_v33 = vld [vmem:[#allocation11 + $0x68] sm:$0xff]  ;;  %s9518_s16 = sld [smem:[#allocation39_spill]] }
 0x6e3   : > { %v5586_v61 = vrot.slane %v5578_v28, %v8458_v11  ;;  %v5593_v63 = vrot.slane %v5579_v29, %v8458_v11  ;;  %v5602_v20 = vrot.slane %v5594_v58, %v8458_v11  ;;  %v5609_v23 = vrot.slane %v5595_v52, %v8458_v11  ;;  %7255 = vmatprep.subr.bf16.mxu0 %v7845_v8 }
 0x6e4   : > { %v7262_v42 = vpack.c.bf16 %v6024_v33, %v6023_v6 }
 0x6e5   : > { %v6618_v24 = vcombine.low %v5586_v61, %v5593_v63  ;;  %v6620_v17 = vcombine.high %v5586_v61, %v5593_v63  ;;  %v6622_v14 = vcombine.low %v5602_v20, %v5609_v23  ;;  %v6624_v62 = vcombine.high %v5602_v20, %v5609_v23 }
 0x6e6   : > { %7257 = vmatpush3.bf16.msra.mxu0 %v7256_v47 }
 0x6e7   : > { %v5794_v38 = vrot.slane %v6618_v24, %v8453_v1  ;;  %v5810_v59 = vrot.slane %v6620_v17, %v8453_v1  ;;  %v5826_v60 = vrot.slane %v6622_v14, %v8453_v1  ;;  %v5842_v13 = vrot.slane %v6624_v62, %v8453_v1  ;;  %7258 = vmatprep.subr.bf16.mxu0 %v7845_v8 }
 0x6e9   : > { %v5850_v48 = vcombine.low %v5794_v38, %v5810_v59  ;;  %v5882_v37 = vcombine.low %v5826_v60, %v5842_v13  ;;  %v5851_v12 = vcombine.high %v5794_v38, %v5810_v59  ;;  %v5883_v10 = vcombine.high %v5826_v60, %v5842_v13  ;;  %v6025_v38 = vld [vmem:[#allocation11 + $0x70] sm:$0xff]  ;;  %v6026_v59 = vld [vmem:[#allocation11 + $0x78] sm:$0xff] }
 0x6ea   : > { %7260 = vmatpush3.bf16.msra.mxu0 %v7259_v15  ;;  %v7265_v19 = vpack.c.bf16 %v6026_v59, %v6025_v38 }
 0x6eb   : > { %v5858_v44 = vrot.slane %v5850_v48, %v8458_v11  ;;  %v5890_v7 = vrot.slane %v5882_v37, %v8458_v11  ;;  %v5865_v18 = vrot.slane %v5851_v12, %v8458_v11  ;;  %v5897_v34 = vrot.slane %v5883_v10, %v8458_v11  ;;  %7261 = vmatprep.subr.bf16.mxu0 %v7845_v8 }
 0x6ed   : > { %v5915_v45 = vcombine.high %v5858_v44, %v5890_v7  ;;  %v5914_v49 = vcombine.low %v5858_v44, %v5890_v7  ;;  %v5917_v4 = vcombine.high %v5865_v18, %v5897_v34  ;;  %v5916_v27 = vcombine.low %v5865_v18, %v5897_v34 }
 0x6ee   : > { %7263 = vmatpush3.bf16.msra.mxu0 %v7262_v42 }
 0x6ef   : > { %5955 = vrot.lane.b32.xlu1 %v5915_v45, %s7854_s17  ;;  %5951 = vrot.lane.b32.xlu0 %v5914_v49, %s7855_s18  ;;  %s6323_s17 = scalar_lea.sflag [#allocation4], %s8262_s22 }
 0x6f0   : > { %7264 = vmatprep.subr.bf16.mxu0 %v7845_v8 }
 0x6f2   : > { %7266 = vmatpush3.bf16.msra.mxu0 %v7265_v19  ;;  %v6136_v19 = vld [vmem:[#allocation13 + $0x18] sm:$0xff] }
 0x6f3   : > { %5963 = vrot.lane.b32.xlu1 %v5917_v4, %s7853_s24  ;;  %5959 = vrot.lane.b32.xlu0 %v5916_v27, %s7852_s20  ;;  %s9515_s24 = sld [smem:[#allocation34_spill]]  ;;  %s9519_s20 = sld [smem:[#allocation40_spill]] }
 0x6f4   : > { %7291 = vmatprep.subr.bf16.mxu0 %v7845_v8 }
 0x727   : > { %v5155_v0 = vpop.f32.mrb[16].mxu0  ;;  %v5228_v26 = vpop.f32.mrb[46].mxu1 }
 0x728   : > { %v7050_v43 = vpop.f32.mrb[17].mxu0  ;;  %v7055_v31 = vpop.f32.mrb[47].mxu1 }
 0x72b   : > { %v5301_v30 = vpop.f32.mrb[18].mxu0  ;;  %v5374_v32 = vpop.f32.mrb[48].mxu1 }
 0x72c   : > { %v5546_v28 = vcombine.low %v5155_v0, %v5301_v30  ;;  %v5547_v29 = vcombine.high %v5155_v0, %v5301_v30  ;;  %v5562_v58 = vcombine.low %v5228_v26, %v5374_v32  ;;  %v5563_v52 = vcombine.high %v5228_v26, %v5374_v32  ;;  %v7060_v61 = vpop.f32.mrb[19].mxu0  ;;  %v7065_v63 = vpop.f32.mrb[49].mxu1 }
 0x72e   : > { %v5554_v20 = vrot.slane %v5546_v28, %v8453_v1  ;;  %v5561_v23 = vrot.slane %v5547_v29, %v8453_v1  ;;  %v5570_v24 = vrot.slane %v5562_v58, %v8453_v1  ;;  %v5577_v17 = vrot.slane %v5563_v52, %v8453_v1 }
 0x730   : > { %v5610_v14 = vcombine.low %v5554_v20, %v5570_v24  ;;  %v5611_v62 = vcombine.high %v5554_v20, %v5570_v24  ;;  %v5626_v50 = vcombine.low %v5561_v23, %v5577_v17  ;;  %v5627_v46 = vcombine.high %v5561_v23, %v5577_v17 }
 0x732   : > { %v5618_v60 = vrot.slane %v5610_v14, %v8458_v11  ;;  %v5625_v13 = vrot.slane %v5611_v62, %v8458_v11  ;;  %v5634_v2 = vrot.slane %v5626_v50, %v8458_v11  ;;  %v5641_v25 = vrot.slane %v5627_v46, %v8458_v11 }
 0x734   : > { %v6619_v48 = vcombine.low %v5618_v60, %v5625_v13  ;;  %v6621_v37 = vcombine.high %v5618_v60, %v5625_v13  ;;  %v6623_v12 = vcombine.low %v5634_v2, %v5641_v25  ;;  %v6625_v10 = vcombine.high %v5634_v2, %v5641_v25  ;;  %v6133_v60 = vld [vmem:[#allocation13] sm:$0xff]  ;;  %v6134_v13 = vld [vmem:[#allocation13 + $0x8] sm:$0xff]  ;;  %v6135_v2 = vld [vmem:[#allocation13 + $0x10] sm:$0xff] }
 0x735   : > { %v7268_v25 = vpack.c.bf16 %v6134_v13, %v6133_v60 }
 0x736   : > { %v5801_v21 = vrot.slane %v6619_v48, %v8453_v1  ;;  %v5817_v44 = vrot.slane %v6621_v37, %v8453_v1  ;;  %v5833_v7 = vrot.slane %v6623_v12, %v8453_v1  ;;  %v5849_v18 = vrot.slane %v6625_v10, %v8453_v1  ;;  %v6138_v37 = vld [vmem:[#allocation13 + $0x28] sm:$0xff] }
 0x737   : > { %7269 = vmatpush3.bf16.msra.mxu1 %v7268_v25  ;;  %v7271_v48 = vpack.c.bf16 %v6136_v19, %v6135_v2  ;;  %v6630_v25 = vld [vmem:[%s9518_s16] ss:$0 sm:$0xff] }
 0x738   : > { %v5866_v34 = vcombine.low %v5801_v21, %v5817_v44  ;;  %v5898_v40 = vcombine.low %v5833_v7, %v5849_v18  ;;  %v5867_v53 = vcombine.high %v5801_v21, %v5817_v44  ;;  %v5899_v45 = vcombine.high %v5833_v7, %v5849_v18  ;;  %7270 = vmatprep.subr.bf16.mxu1 %v7845_v8  ;;  %v6139_v18 = vld [vmem:[#allocation13 + $0x30] sm:$0xff] }
 0x73a   : > { %v5874_v49 = vrot.slane %v5866_v34, %v8458_v11  ;;  %v5906_v4 = vrot.slane %v5898_v40, %v8458_v11  ;;  %v5881_v27 = vrot.slane %v5867_v53, %v8458_v11  ;;  %v5913_v51 = vrot.slane %v5899_v45, %v8458_v11  ;;  %v6140_v34 = vld [vmem:[#allocation13 + $0x38] sm:$0xff]  ;;  %v6141_v40 = vld [vmem:[#allocation13 + $0x40] sm:$0xff]  ;;  %v6142_v45 = vld [vmem:[#allocation13 + $0x48] sm:$0xff] }
 0x73b   : > { %7272 = vmatpush3.bf16.msra.mxu1 %v7271_v48  ;;  %v7277_v53 = vpack.c.bf16 %v6140_v34, %v6139_v18 }
 0x73c   : > { %v5919_v57 = vcombine.high %v5874_v49, %v5906_v4  ;;  %v5918_v5 = vcombine.low %v5874_v49, %v5906_v4  ;;  %v5921_v41 = vcombine.high %v5881_v27, %v5913_v51  ;;  %v5920_v56 = vcombine.low %v5881_v27, %v5913_v51  ;;  %7273 = vmatprep.subr.bf16.mxu1 %v7845_v8  ;;  %v6143_v4 = vld [vmem:[#allocation13 + $0x50] sm:$0xff]  ;;  %v6144_v27 = vld [vmem:[#allocation13 + $0x58] sm:$0xff] }
 0x73d   : > { %v5928_v16 = vpop.permute.xlu0 %5927  ;;  %v7280_v49 = vpack.c.bf16 %v6142_v45, %v6141_v40  ;;  %v7283_v51 = vpack.c.bf16 %v6144_v27, %v6143_v4 }
 0x73e   : > { %5971 = vrot.lane.b32.xlu1 %v5919_v57, %s7850_s12  ;;  %5967 = vrot.lane.b32.xlu0 %v5918_v5, %s7851_s5  ;;  %v5924_v1 = vpop.permute.xlu1 %5923  ;;  %s9514_s12 = sld [smem:[#allocation33_spill]]  ;;  %v6146_v57 = vld [vmem:[#allocation13 + $0x68] sm:$0xff] }
 0x73f   : > { %v5982_v11 = vsel %vm2817_vm3, %v5778_v36, %v5924_v1  ;;  %vm6009_vm3 = vcmask 982016   ;;  %v7286_v5 = vpack.c.bf16 %v6146_v57, %v6145_v3 }
 0x740   : > { %v5984_v15 = vsel %vm5983_vm4, %v5982_v11, %v5928_v16  ;;  %v6227_v16 = vld [vmem:[#allocation14] sm:$0xff] }
 0x742   : > { %5979 = vrot.lane.b32.xlu1 %v5921_v41, %s7848_s19  ;;  %5975 = vrot.lane.b32.xlu0 %v5920_v56, %s7849_s2  ;;  %v5932_v47 = vpop.permute.xlu1 %5931  ;;  %v6147_v41 = vld [vmem:[#allocation13 + $0x70] sm:$0xff]  ;;  %v6148_v56 = vld [vmem:[#allocation13 + $0x78] sm:$0xff]  ;;  %s714_s19 = scalar_lea.vmem [#allocation16], %s8265_s14  ;;  %s7751_s14 = sshll.u32 %s7865_s1, 4  ;;  %s7752_s14 = int_to_ptr.vmem [resolvable:$false] %s7751_s14 }
 0x743   : > { %v5986_v6 = vsel %vm5985_vm5, %v5984_v15, %v5932_v47  ;;  %v7289_v1 = vpack.c.bf16 %v6148_v56, %v6147_v41  ;;  %v6228_v47 = vld [vmem:[#allocation14 + $0x8] sm:$0xff]  ;;  %s6336_s2 = sshll.u32 %s714_s19, 4  ;;  %s9394_s2 = int_to_ptr.vmem [resolvable:$true] %s6336_s2 }
 0x744   : > { %v6626_v62 = vld [vmem:[%s9514_s12] ss:$0 sm:$0xff]  ;;  %v7292_v11 = vpack.c.bf16 %v6228_v47, %v6227_v16  ;;  %s7747_s18 = scalar_lea.vmem %s9394_s2, 128  ;;  %p7754_p3 = scmp.lt.s32.totalorder %s9394_s2, %s7752_s14 }
 0x745   : > { %p7748_p4 = scmp.ne.s32.totalorder %s9394_s2, %s7747_s18 }
 0x747   : > { %p7749_p5 = pnand %p7748_p4, %p9520_p10 }
 0x749   : > { %p7750_p7 = pneg %p7749_p5 }
 0x74f   : > { %v5936_v9 = vpop.permute.xlu0 %5935  ;;  %v5940_v55 = vpop.permute.xlu1 %5939 }
 0x750   : > { %v5988_v42 = vsel %vm5987_vm6, %v5986_v6, %v5936_v9  ;;  %v6229_v9 = vld [vmem:[#allocation14 + $0x10] sm:$0xff]  ;;  %v6231_v6 = vld [vmem:[#allocation14 + $0x20] sm:$0xff] }
 0x751   : > { %v5990_v26 = vsel %vm5989_vm7, %v5988_v42, %v5940_v55  ;;  %v6230_v55 = vld [vmem:[#allocation14 + $0x18] sm:$0xff] }
 0x752   : > { %v7295_v15 = vpack.c.bf16 %v6230_v55, %v6229_v9 }
 0x753   : > { %v5948_v0 = vpop.permute.xlu1 %5947 }
 0x754   : > { %v5944_v33 = vpop.permute.xlu0 %5943 }
 0x755   : > { %v5992_v31 = vsel %vm5991_vm8, %v5990_v26, %v5944_v33  ;;  %v6232_v33 = vld [vmem:[#allocation14 + $0x28] sm:$0xff]  ;;  %v6234_v26 = vld [vmem:[#allocation14 + $0x38] sm:$0xff] }
 0x756   : > { %v5994_v35 = vsel %vm5993_vm9, %v5992_v31, %v5948_v0  ;;  %v7298_v42 = vpack.c.bf16 %v6232_v33, %v6231_v6  ;;  %v6233_v0 = vld [vmem:[#allocation14 + $0x30] sm:$0xff]  ;;  %v6235_v31 = vld [vmem:[#allocation14 + $0x40] sm:$0xff] }
 0x761   : > { %v5952_v43 = vpop.permute.xlu0 %5951  ;;  %v5956_v30 = vpop.permute.xlu1 %5955 }
 0x762   : > { %v5996_v39 = vsel %vm5995_vm10, %v5994_v35, %v5952_v43  ;;  %v7301_v43 = vpack.c.bf16 %v6234_v26, %v6233_v0 }
 0x763   : > { %v5998_v28 = vsel %vm5997_vm11, %v5996_v39, %v5956_v30  ;;  %v6236_v30 = vld [vmem:[#allocation14 + $0x48] sm:$0xff]  ;;  %v6237_v39 = vld [vmem:[#allocation14 + $0x50] sm:$0xff] }
 0x764   : > { %v7304_v35 = vpack.c.bf16 %v6236_v30, %v6235_v31 }
 0x765   : > { %v5960_v36 = vpop.permute.xlu0 %5959  ;;  %v5964_v32 = vpop.permute.xlu1 %5963 }
 0x766   : > { %v6000_v29 = vsel %vm5999_vm12, %v5998_v28, %v5960_v36  ;;  %v6238_v36 = vld [vmem:[#allocation14 + $0x58] sm:$0xff]  ;;  %v6239_v28 = vld [vmem:[#allocation14 + $0x60] sm:$0xff] }
 0x767   : > { %v6002_v52 = vsel %vm6001_vm13, %v6000_v29, %v5964_v32  ;;  %v7307_v32 = vpack.c.bf16 %v6238_v36, %v6237_v39  ;;  %v6240_v29 = vld [vmem:[#allocation14 + $0x68] sm:$0xff] }
 0x7b0   : > { %v5972_v58 = vpop.permute.xlu1 %5971  ;;  %v5968_v61 = vpop.permute.xlu0 %5967 }
 0x7b1   : > { %v6004_v63 = vsel %vm6003_vm14, %v6002_v52, %v5968_v61 }
 0x7b2   : > { %v6006_v23 = vsel %vm6005_vm15, %v6004_v63, %v5972_v58  ;;  %v7310_v58 = vpack.c.bf16 %v6240_v29, %v6239_v28 }
 0x7b4   : > { %v5980_v20 = vpop.permute.xlu1 %5979  ;;  %v5976_v24 = vpop.permute.xlu0 %5975 }
 0x7b5   : > { %v6008_v17 = vsel %vm6007_vm0, %v6006_v23, %v5976_v24  ;;  %v6627_v23 = vld [vmem:[%s9515_s24] ss:$0 sm:$0xff]  ;;  %s9392_s24 = scalar_lea.hbm %s9519_s20, %s6632_s10 }
 0x7b6   : > { %v6010_v14 = vsel %vm6009_vm3, %v6008_v17, %v5980_v20  ;;  %v6628_v17 = vld [vmem:[%s9516_s13] ss:$0 sm:$0xff]  ;;  %s7753_s13 = scalar_lea.vmem %s7752_s14, 256 }
 0x7b7   : > { %7099 = vmatmul.mubr.f32.vlgmr.msra.gmra.mrb[20].mxu0 %v6010_v14  ;;  %p7755_p6 = scmp.lt.s32.totalorder %s7753_s13, %s7747_s18 }
 0x7b8   : > { %7168 = vmatprep.mubr.msk.f32.mxu0 %vm7846_vm2, %v7847_v54  ;;  %v6137_v54 = vld [vmem:[#allocation13 + $0x20] sm:$0xff]  ;;  %7293 = vmatpush3.bf16.msra.mxu0 %v7292_v11 }
 0x7b9   : > { %v7274_v12 = vpack.c.bf16 %v6138_v37, %v6137_v54  ;;  %7294 = vmatprep.subr.bf16.mxu0 %v7845_v8  ;;  %p7756_p11 = por %p7755_p6, %p7754_p3 }
 0x7bb   : > { %7275 = vmatpush3.bf16.msra.mxu1 %v7274_v12  ;;  %p7757_p8 = pnand %p7756_p11, %p7750_p7 }
 0x7bc   : > { %7276 = vmatprep.subr.bf16.mxu1 %v7845_v8  ;;  %7296 = vmatpush3.bf16.msra.mxu0 %v7295_v15 }
 0x7bd   : > { %7297 = vmatprep.subr.bf16.mxu0 %v7845_v8 }
 0x7bf   : > { %7278 = vmatpush3.bf16.msra.mxu1 %v7277_v53 }
 0x7c0   : > { %7279 = vmatprep.subr.bf16.mxu1 %v7845_v8  ;;  %7299 = vmatpush3.bf16.msra.mxu0 %v7298_v42 }
 0x7c1   : > { %7300 = vmatprep.subr.bf16.mxu0 %v7845_v8 }
 0x7c3   : > { %7281 = vmatpush3.bf16.msra.mxu1 %v7280_v49 }
 0x7c4   : > { %7282 = vmatprep.subr.bf16.mxu1 %v7845_v8  ;;  %7302 = vmatpush3.bf16.msra.mxu0 %v7301_v43 }
 0x7c5   : > { %7303 = vmatprep.subr.bf16.mxu0 %v7845_v8 }
 0x7c7   : > { %7284 = vmatpush3.bf16.msra.mxu1 %v7283_v51 }
 0x7c8   : > { %7285 = vmatprep.subr.bf16.mxu1 %v7845_v8  ;;  %7305 = vmatpush3.bf16.msra.mxu0 %v7304_v35 }
 0x7c9   : > { %7306 = vmatprep.subr.bf16.mxu0 %v7845_v8 }
 0x7cb   : > { %7287 = vmatpush3.bf16.msra.mxu1 %v7286_v5 }
 0x7cc   : > { %7288 = vmatprep.subr.bf16.mxu1 %v7845_v8  ;;  %7308 = vmatpush3.bf16.msra.mxu0 %v7307_v32 }
 0x7cd   : > { %7309 = vmatprep.subr.bf16.mxu0 %v7845_v8 }
 0x7cf   : > { %7290 = vmatpush3.bf16.msra.mxu1 %v7289_v1 }
 0x7d0   : > { %7311 = vmatpush3.bf16.msra.mxu0 %v7310_v58 }
 0x7d1   : > { %7312 = vmatprep.subr.bf16.mxu0 %v7845_v8  ;;  %v6241_v8 = vld [vmem:[#allocation14 + $0x70] sm:$0xff] }
 0x88a   : > { %v6100_v50 = vpop.f32.mrb[20].mxu0 }
 0x88b   : > { %v6101_v46 = vadd.f32 %v6626_v62, %v6100_v50  ;;  %v7100_v38 = vpop.f32.mrb[21].mxu0  ;;  %v6242_v50 = vld [vmem:[#allocation14 + $0x78] sm:$0xff] }
 0x88c   : > { %v6629_v38 = vld [vmem:[%s9517_s4] ss:$0 sm:$0xff] }
 0x88d   : > { %v6104_v59 = vadd.f32 %v6101_v46, %v8346_v22  ;;  %v7313_v46 = vpack.c.bf16 %v6242_v50, %v6241_v8 }
 0x88f   : > { %6107 = vadd.xlane.f32.xlu0 %v6104_v59  ;;  %7314 = vmatpush3.bf16.msra.mxu0 %v7313_v46 }
 0x91c   : > { %v6108_v22 = vpop.xlane.xlu0 %6107 }
 0x91d   : > { %v6109_v10 = vmul.f32 0.03125, %v6108_v22 }
 0x91f   : > { %v6110_v21 = vsub.f32 %v6104_v59, %v6109_v10 }
 0x921   : > { %v9359_v44 = vsel %vm719_vm1, %v6110_v21, 0.0 }
 0x922   : > { %v6112_v7 = vmul.f32 %v9359_v44, %v9359_v44 }
 0x924   : > { %6113 = vadd.xlane.f32.xlu1 %v6112_v7 }
 0x9b1   : > { %v6114_v52 = vpop.xlane.xlu1 %6113 }
 0x9b2   : > { %v6115_v61 = vmul.f32 0.03125, %v6114_v52 }
 0x9b4   : > { %v6116_v63 = vadd.f32 1e-05, %v6115_v61 }
 0x9b6   : > { %7517 = vrsqrt.f32 %v6116_v63 }
 0x9c0   : > { %v7518_v20 = vpop.eup %7517 }
 0x9c1   : > { %v6118_v24 = vmul.f32 %v7518_v20, %v9359_v44 }
 0x9c3   : > { %v6125_v14 = vmul.f32 %v6627_v23, %v6118_v24 }
 0x9c5   : > { %v6132_v62 = vadd.f32 %v6628_v17, %v6125_v14 }
 0x9c7   : > { %7134 = vmatmul.mubr.f32.vlgmr.msra.gmra.mrb[50].mxu1 %v6132_v62 }
 0xa9a   : > { %v6222_v59 = vpop.f32.mrb[50].mxu1 }
 0xa9b   : > { %v6223_v60 = vadd.f32 %v6629_v38, %v6222_v59  ;;  %v7135_v13 = vpop.f32.mrb[51].mxu1 }
 0xa9d   : > { %v6226_v2 = vmax.f32 %v6223_v60, 0.0 }
 0xa9f   : > { %7169 = vmatmul.mubr.f32.vlgmr.msra.gmra.mrb[22].mxu0 %v6226_v2 }
 0xb72   : > { %v6316_v19 = vpop.f32.mrb[22].mxu0 }
 0xb73   : > { %v6317_v48 = vadd.f32 %v6630_v25, %v6316_v19  ;;  %v7170_v54 = vpop.f32.mrb[23].mxu0 }
 0xb75   : > { %v6320_v37 = vadd.f32 %v6317_v48, %v6132_v62 }
 0xb77   : > { %6321 = vst [vmem:[%s714_s19] sm:$0xff] %v6320_v37 }
 0xb78   : > { %7760 = shalt.err (!%p7757_p8)
}
 0xb79   : > { %s7761_s22 = scalar_lea.hbm %s9392_s24, 128  ;;  %s7765_s4 = scalar_lea.hbm %s9519_s20, 256 }
 0xb7a   : > { %p7762_p9 = scmp.ne.s32.totalorder %s9392_s24, %s7761_s22  ;;  %p7766_p13 = scmp.lt.u32.totalorder %s9392_s24, %s9519_s20 }
 0xb7b   : > { %p7767_p0 = scmp.lt.u32.totalorder %s7765_s4, %s7761_s22  ;;  %p7769_p4 = scmp.lt.u32.totalorder %s7761_s22, %s9392_s24 }
 0xb7c   : > { %p7763_p12 = pnand %p7762_p9, %p9520_p10 }
 0xb7d   : > { %p7768_p2 = por %p7767_p0, %p7766_p13 }
 0xb7e   : > { %p7764_p1 = pneg %p7763_p12 }
 0xb7f   : > { %p7770_p5 = por %p7769_p4, %p7768_p2 }
 0xb81   : > { %p7771_p7 = pnand %p7770_p5, %p7764_p1 }
 0xb83   : > { %7774 = shalt.err (!%p7771_p7)
}
 0xb84   : > { %7343 = dma.vmem_to_hbm [thread:$0]  (%p9520_p10), %s9394_s2, 128, %s9392_s24, %s6323_s17  }
 0xb85 PF: > { %s6348_s16 = sand.u32 1, %s7821_s27   ;;  %p9521_p3 = scmp.ne.s32.totalorder %s9496_s26, 0 }
 0xb86   : > { %p9522_p6 = scmp.ge.s32.totalorder %s7833_s30, 2  ;;  %s6349_s10 = scalar_lea.sflag [#allocation4], %s6348_s16 }
 0xb88   : > { %p7372_p11 = pnand %p9522_p6, %p9521_p3 }
 0xb8a   : > { %7816 = dma.done.wait (!%p7372_p11), %s6349_s10, 128  }
 0xb8b   : > { %7818 = vsyncadd (!%p7372_p11), %s6349_s10, 4294967168  ;;  %s9523_s19 = sld [smem:[#allocation24_spill]]  ;;  %p37_p8 = scmp.ge.s32.totalorder %s8155_s21, 4  }
 0xb8c   : > { %s9524_s27 = smov %s7825_s28  ;;  %s9525_s28 = smov %s7829_s29 }
 0xb8d   : > { %s9527_s30 = smov %s8155_s21  ;;  %39 = sbr.rel (!%p37_p8) target bundleno = 27 (0x1b), region = 174 }
 0xb91   : > { %s9526_s29 = smov %s9523_s19 }
 0xb94   :  { %6354 = vsyncpa [#allocation3], 1 }
 0xb95   :  { %6356 = vsyncpa [#allocation3 + $0x1], 1 }
 0xb96   :  { %6357 = vsyncpa [#allocation6], 1 }
 0xb97   :  { %6359 = vsyncpa [#allocation6 + $0x1], 1 }
 0xb98   :  { %6360 = vsyncpa [#allocation9], 1 }
 0xb99   :  { %6361 = vsyncpa [#allocation12], 1 }
 0xb9a   :  { %6362 = vsyncpa [#allocation15], 1 }
 0xb9b   :  { %6363 = vsyncpa [#allocation4], 1 }
 0xb9c   :  { %6365 = vsyncpa [#allocation4 + $0x1], 1 }

</bundles_post_ra>
